<compile_context>
chip_gen: v7x
topology: tpu7x:2x2x1
jax: 0.10.0
libtpu: 0.0.40
codegen_flags: <defaults>
</compile_context>

<pallas_src>
import jax
import jax.numpy as jnp
from jax.experimental import pallas as pl
from jax.experimental.pallas import tpu as pltpu  # noqa: F401  (TPU backend)

# ------------- configuration (UNO(in_d_co_domain=2, d_co_domain=4, s=16, pad=0,
#                groups=0, fmult=0.5, mult_dims=[1,2,4,4])) -------------------
IN_CO = 2
D_CO = 4
S = 16
PAD = 0
FMULT = 0.5
MULT_DIMS = [1, 2, 4, 4]

_sdim = S + PAD
_A = MULT_DIMS
# (name, c_in, c_out, in_dim, out_dim)  -- exactly the ResnetBlock wiring in UNO.__init__
BLOCK_CFGS = [
    ("block1", D_CO,             _A[0] * D_CO, _sdim,               _sdim),
    ("block2", _A[0] * D_CO,     _A[1] * D_CO, _sdim,               int(_sdim * 0.75)),
    ("block3", _A[1] * D_CO,     _A[2] * D_CO, int(_sdim * 0.75),   _sdim // 2),
    ("block4", _A[2] * D_CO,     _A[3] * D_CO, _sdim // 2,          _sdim // 4),
    ("inv2_9", _A[3] * D_CO,     _A[2] * D_CO, _sdim // 4,          _sdim // 2),
    ("inv3",   _A[2] * 2 * D_CO, _A[1] * D_CO, _sdim // 2,          int(_sdim * 0.75)),
    ("inv4",   _A[1] * 2 * D_CO, _A[0] * D_CO, int(_sdim * 0.75),   _sdim),
    ("inv5",   _A[0] * 2 * D_CO, D_CO,         _sdim,               _sdim),
]


# ---------------------------- Pallas kernels --------------------------------

def _lin_bias_kernel(w_ref, x_ref, b_ref, o_ref):
    # (Cout, Cin) @ (Cin, N) + bias ; long N axis on lanes.
    o_ref[...] = jnp.dot(w_ref[...], x_ref[...],
                         preferred_element_type=jnp.float32) + b_ref[...]


def _lin_bias_scale_kernel(w_ref, x_ref, b_ref, s_ref, o_ref):
    # Final 1x1 conv fused with the division by sigmas (s_ref holds 1/sigma per column).
    y = jnp.dot(w_ref[...], x_ref[...], preferred_element_type=jnp.float32)
    o_ref[...] = (y + b_ref[...]) * s_ref[...]


def _fno_block_kernel(xs2_ref, wskip_ref, xm_ref, wbig_ref, skip2_ref, ym_ref):
    # Skip path (Fourier-domain 1x1 conv): (Cout,Cin) @ (Cin, 2*Ns); real|imag packed
    # along the long lane axis, so one dense dot handles both parts.
    skip2_ref[...] = jnp.dot(wskip_ref[...], xs2_ref[...],
                             preferred_element_type=jnp.float32)
    # Spectral conv: ALL retained modes mixed by one 2-D matmul against the
    # block-diagonal packed-complex weight (no per-mode grid, no 4-dot complex mul).
    ym_ref[...] = jnp.dot(xm_ref[...], wbig_ref[...],
                          preferred_element_type=jnp.float32)


# ---------------------------- FNO block --------------------------------------

def fno_block(x, bp):
    """One ResnetBlock == one FNOBlock (spectral conv + linear 1x1 skip, no norm/act).

    x: (Cin, B, H, W) float32  ->  (Cout, B, out_h, out_w) float32
    """
    cin, b, h_in, w_in = x.shape
    cout = bp["wskip"].shape[0]
    hm = bp["half"]                       # half_n_modes of the spectral conv
    out_h, out_w = bp["out_hw"]
    wf = w_in // 2 + 1
    out_wf = out_w // 2 + 1
    r = min(h_in, out_h) // 2             # rows kept per band by the skip resample
    cc = min(wf, out_wf)                  # cols kept by the skip resample
    m = 2 * hm * hm                       # number of retained conv modes

    xft = jnp.fft.rfft2(x, norm="forward")                            # (Cin,B,H,Wf)

    # --- skip-resample band (the conv-mode corners are a subset of this band) ---
    band_in = jnp.concatenate([xft[:, :, :r, :cc],
                               xft[:, :, h_in - r:, :cc]], axis=2)    # (Cin,B,2r,cc)
    ns = b * 2 * r * cc
    band_flat = band_in.reshape(cin, ns)
    xs2 = jnp.concatenate([jnp.real(band_flat), jnp.imag(band_flat)], axis=1)  # (Cin,2Ns)

    # --- conv modes, packed real|imag per mode, modes flattened m-major ---
    xm = jnp.concatenate([xft[:, :, :hm, :hm],
                          xft[:, :, h_in - hm:, :hm]], axis=2)        # (Cin,B,2hm,hm)
    xm = jnp.transpose(xm, (1, 2, 3, 0)).reshape(b, m, cin)           # (B,M,Cin)
    xm2 = jnp.concatenate([jnp.real(xm), jnp.imag(xm)], axis=-1)      # (B,M,2Cin)
    xm2 = xm2.reshape(b, m * 2 * cin)                                 # (B, M*2Cin)

    skip2, ym_flat = pl.pallas_call(
        _fno_block_kernel,
        out_shape=[jax.ShapeDtypeStruct((cout, 2 * ns), jnp.float32),
                   jax.ShapeDtypeStruct((b, m * 2 * cout), jnp.float32)],
    )(xs2, bp["wskip"], xm2, bp["w_big"])

    # reassemble complex spectra
    skip_c = (skip2[:, :ns] + 1j * skip2[:, ns:]).reshape(cout, b, 2 * r, cc)
    ym = ym_flat.reshape(b, m, 2 * cout)
    ym_c = (ym[..., :cout] + 1j * ym[..., cout:]).reshape(b, 2 * hm, hm, cout)
    ym_c = jnp.transpose(ym_c, (3, 0, 1, 2))                          # (Cout,B,2hm,hm)

    # add the spectral-conv contribution onto the (larger) skip band, then a single
    # inverse FFT gives  spectral_conv(x) + resampled_skip(x)  at once.
    band = skip_c.at[:, :, :hm, :hm].add(ym_c[:, :, :hm])
    band = band.at[:, :, 2 * r - hm:, :hm].add(ym_c[:, :, hm:])

    if 2 * r == out_h and cc == out_wf:
        out_ft = band                                   # band covers the whole spectrum
    else:
        out_ft = jnp.zeros((cout, b, out_h, out_wf), dtype=jnp.complex64)
        out_ft = out_ft.at[:, :, :r, :cc].set(band[:, :, :r])
        out_ft = out_ft.at[:, :, out_h - r:, :cc].set(band[:, :, r:])

    y = jnp.fft.irfft2(out_ft, s=(out_h, out_w), norm="forward")
    return y + bp["bias"][:, None, None, None]


# ---------------------------- parameters -------------------------------------

def init_params(key):
    ks = iter(jax.random.split(key, 64))

    def rnd(shape, scale):
        return jax.random.normal(next(ks), shape, jnp.float32) * scale

    params = {
        "init_w": rnd((D_CO, IN_CO + 2), (1.0 / (IN_CO + 2)) ** 0.5),   # (Cout, Cin)
        "init_b": rnd((D_CO, 1), 0.02),
        "final_w": rnd((2, 2 * D_CO), (1.0 / (2 * D_CO)) ** 0.5),
        "final_b": rnd((2, 1), 0.02),
        "blocks": {},
    }
    for name, cin, cout, in_dim, out_dim in BLOCK_CFGS:
        hm = int(in_dim * FMULT) // 2                  # half_n_modes
        m = 2 * hm * hm                                # 2 corner blocks of kept modes
        w_scale = 1.0 / (cin * cout)
        wskip = rnd((cout, cin), (1.0 / cin) ** 0.5)
        wr = rnd((m, cin, cout), w_scale)
        wi = rnd((m, cin, cout), w_scale)
        bias = rnd((cout,), 0.02)
        # packed complex weight per mode: [xr|xi] @ [[wr, wi], [-wi, wr]] = [re|im]
        w2 = jnp.concatenate([jnp.concatenate([wr, wi], axis=2),
                              jnp.concatenate([-wi, wr], axis=2)], axis=1)  # (M,2Cin,2Cout)
        tci, tco = 2 * cin, 2 * cout
        # block-diagonal layout over modes -> ONE plain 2-D matmul mixes all modes
        w_big = (jnp.eye(m, dtype=jnp.float32)[:, None, :, None]
                 * w2[:, :, None, :]).reshape(m * tci, m * tco)
        params["blocks"][name] = {
            "wskip": wskip,
            "w_big": w_big,
            "bias": bias,
            "half": hm,
            "out_hw": (out_dim, out_dim),
        }
    return params


# ---------------------------- forward -----------------------------------------

def uno_forward(params, x, t, sigmas):
    del t  # time embedding is dead code in the reference (ResnetBlock ignores time_emb)
    bsz, h_sp, w_sp, _ = x.shape
    n = bsz * h_sp * w_sp

    # build (IN_CO+2, B, H, W) channels-first input: [x channels, gridx, gridy]
    gx = jnp.broadcast_to(
        jnp.linspace(0.0, 1.0, h_sp, dtype=jnp.float32).reshape(1, 1, h_sp, 1),
        (1, bsz, h_sp, w_sp))
    gy = jnp.broadcast_to(
        jnp.linspace(0.0, 1.0, w_sp, dtype=jnp.float32).reshape(1, 1, 1, w_sp),
        (1, bsz, h_sp, w_sp))
    xin = jnp.concatenate([jnp.transpose(x, (3, 0, 1, 2)), gx, gy], axis=0)

    # init 1x1 conv: (D_CO, IN_CO+2) @ (IN_CO+2, B*H*W) + bias
    h0 = pl.pallas_call(
        _lin_bias_kernel,
        out_shape=jax.ShapeDtypeStruct((D_CO, n), jnp.float32),
    )(params["init_w"], xin.reshape(IN_CO + 2, n), params["init_b"])
    x_fc0 = h0.reshape(D_CO, bsz, h_sp, w_sp)
    # self.padding == 0 -> F.pad is a no-op

    blk = params["blocks"]
    x_c0 = fno_block(x_fc0, blk["block1"])
    x_c1 = fno_block(x_c0, blk["block2"])
    x_c2 = fno_block(x_c1, blk["block3"])
    x_c2_1 = fno_block(x_c2, blk["block4"])
    x_c2_9 = fno_block(x_c2_1, blk["inv2_9"])
    x_c2_9 = jnp.concatenate([x_c2_9, x_c2], axis=0)
    x_c3 = fno_block(x_c2_9, blk["inv3"])
    x_c3 = jnp.concatenate([x_c3, x_c1], axis=0)
    x_c4 = fno_block(x_c3, blk["inv4"])
    x_c4 = jnp.concatenate([x_c4, x_c0], axis=0)
    x_c5 = fno_block(x_c4, blk["inv5"])
    x_c5 = jnp.concatenate([x_c5, x_fc0], axis=0)             # (2*D_CO, B, H, W)
    # self.padding == 0 -> no crop

    # final 1x1 conv fused with division by sigmas
    inv_sig = jnp.broadcast_to(1.0 / sigmas.reshape(bsz, 1),
                               (bsz, h_sp * w_sp)).reshape(1, n)
    out = pl.pallas_call(
        _lin_bias_scale_kernel,
        out_shape=jax.ShapeDtypeStruct((2, n), jnp.float32),
    )(params["final_w"], x_c5.reshape(2 * D_CO, n), params["final_b"], inv_sig)

    out = jnp.transpose(out.reshape(2, bsz, h_sp, w_sp), (1, 2, 3, 0))
    return out


# ---------------------------- main ---------------------------------------------

if __name__ == "__main__":
    key = jax.random.PRNGKey(0)
    kp, kx, ks = jax.random.split(key, 3)
    params = init_params(kp)

    x = jax.random.normal(kx, (2, S, S, IN_CO), jnp.float32)
    t = jnp.array([3, 11], dtype=jnp.int32)
    sigmas = jnp.abs(jax.random.normal(ks, (2, 1, 1, 1), jnp.float32)) + 0.5

    fwd = jax.jit(lambda x_, t_, s_: uno_forward(params, x_, t_, s_))
    out = fwd(x, t, sigmas)
    jax.block_until_ready(out)

    assert out.shape == (2, S, S, 2) and out.dtype == jnp.float32
    print("KERNEL_OK")
</pallas_src>

<mosaic_0001>
module attributes {stable_mosaic.version = 11 : i64} {
  func.func @_lin_bias_kernel(%arg0: memref<4x4xf32, #tpu.memory_space<vmem>>, %arg1: memref<4x512xf32, #tpu.memory_space<vmem>>, %arg2: memref<4x1xf32, #tpu.memory_space<vmem>>, %arg3: memref<4x512xf32, #tpu.memory_space<vmem>>) attributes {dimension_semantics = [], scalar_prefetch = 0 : i64, scratch_operands = 0 : i64, tpu.core_type = #tpu.core_type<tc>} {
    %c0 = arith.constant 0 : index
    %c0_0 = arith.constant 0 : index
    %0 = vector.load %arg0[%c0, %c0_0] : memref<4x4xf32, #tpu.memory_space<vmem>>, vector<4x4xf32>
    %c0_1 = arith.constant 0 : index
    %c0_2 = arith.constant 0 : index
    %1 = vector.load %arg1[%c0_1, %c0_2] : memref<4x512xf32, #tpu.memory_space<vmem>>, vector<4x512xf32>
    %cst = arith.constant dense<0.000000e+00> : vector<4x512xf32>
    %2 = tpu.matmul %0, %1, %cst {dimension_numbers = #tpu.dot_dimension_numbers<[1], [0], [0], [1], [0, 0, 1, 1], [], []>} : vector<4x4xf32>, vector<4x512xf32>, vector<4x512xf32> -> vector<4x512xf32>
    %c0_3 = arith.constant 0 : index
    %c0_4 = arith.constant 0 : index
    %3 = vector.load %arg2[%c0_3, %c0_4] : memref<4x1xf32, #tpu.memory_space<vmem>>, vector<4x1xf32>
    %4 = vector.broadcast %3 : vector<4x1xf32> to vector<4x512xf32>
    %5 = arith.addf %2, %4 : vector<4x512xf32>
    %c0_5 = arith.constant 0 : index
    %c0_6 = arith.constant 0 : index
    %6 = vector.load %arg3[%c0_5, %c0_6] : memref<4x512xf32, #tpu.memory_space<vmem>>, vector<4x512xf32>
    tpu.vector_store %arg3[%c0_5, %c0_6], %5 {strides = array<i32>} : memref<4x512xf32, #tpu.memory_space<vmem>>, vector<4x512xf32>,
    return
  }
}

module attributes {stable_mosaic.version = 11 : i64} {
  func.func @_fno_block_kernel(%arg0: memref<4x576xf32, #tpu.memory_space<vmem>>, %arg1: memref<4x4xf32, #tpu.memory_space<vmem>>, %arg2: memref<2x256xf32, #tpu.memory_space<vmem>>, %arg3: memref<256x256xf32, #tpu.memory_space<vmem>>, %arg4: memref<4x576xf32, #tpu.memory_space<vmem>>, %arg5: memref<2x256xf32, #tpu.memory_space<vmem>>) attributes {dimension_semantics = [], scalar_prefetch = 0 : i64, scratch_operands = 0 : i64, tpu.core_type = #tpu.core_type<tc>} {
    %c0 = arith.constant 0 : index
    %c0_0 = arith.constant 0 : index
    %0 = vector.load %arg1[%c0, %c0_0] : memref<4x4xf32, #tpu.memory_space<vmem>>, vector<4x4xf32>
    %c0_1 = arith.constant 0 : index
    %c0_2 = arith.constant 0 : index
    %1 = vector.load %arg0[%c0_1, %c0_2] : memref<4x576xf32, #tpu.memory_space<vmem>>, vector<4x576xf32>
    %cst = arith.constant dense<0.000000e+00> : vector<4x576xf32>
    %2 = tpu.matmul %0, %1, %cst {dimension_numbers = #tpu.dot_dimension_numbers<[1], [0], [0], [1], [0, 0, 1, 1], [], []>} : vector<4x4xf32>, vector<4x576xf32>, vector<4x576xf32> -> vector<4x576xf32>
    %c0_3 = arith.constant 0 : index
    %c0_4 = arith.constant 0 : index
    %3 = vector.load %arg4[%c0_3, %c0_4] : memref<4x576xf32, #tpu.memory_space<vmem>>, vector<4x576xf32>
    tpu.vector_store %arg4[%c0_3, %c0_4], %2 {strides = array<i32>} : memref<4x576xf32, #tpu.memory_space<vmem>>, vector<4x576xf32>,
    %c0_5 = arith.constant 0 : index
    %c0_6 = arith.constant 0 : index
    %4 = vector.load %arg2[%c0_5, %c0_6] : memref<2x256xf32, #tpu.memory_space<vmem>>, vector<2x256xf32>
    %c0_7 = arith.constant 0 : index
    %c0_8 = arith.constant 0 : index
    %5 = vector.load %arg3[%c0_7, %c0_8] : memref<256x256xf32, #tpu.memory_space<vmem>>, vector<256x256xf32>
    %cst_9 = arith.constant dense<0.000000e+00> : vector<2x256xf32>
    %6 = tpu.matmul %4, %5, %cst_9 {dimension_numbers = #tpu.dot_dimension_numbers<[1], [0], [0], [1], [0, 0, 1, 1], [], []>} : vector<2x256xf32>, vector<256x256xf32>, vector<2x256xf32> -> vector<2x256xf32>
    %c0_10 = arith.constant 0 : index
    %c0_11 = arith.constant 0 : index
    %7 = vector.load %arg5[%c0_10, %c0_11] : memref<2x256xf32, #tpu.memory_space<vmem>>, vector<2x256xf32>
    tpu.vector_store %arg5[%c0_10, %c0_11], %6 {strides = array<i32>} : memref<2x256xf32, #tpu.memory_space<vmem>>, vector<2x256xf32>,
    return
  }
}

module attributes {stable_mosaic.version = 11 : i64} {
  func.func @_fno_block_kernel(%arg0: memref<4x336xf32, #tpu.memory_space<vmem>>, %arg1: memref<8x4xf32, #tpu.memory_space<vmem>>, %arg2: memref<2x256xf32, #tpu.memory_space<vmem>>, %arg3: memref<256x512xf32, #tpu.memory_space<vmem>>, %arg4: memref<8x336xf32, #tpu.memory_space<vmem>>, %arg5: memref<2x512xf32, #tpu.memory_space<vmem>>) attributes {dimension_semantics = [], scalar_prefetch = 0 : i64, scratch_operands = 0 : i64, tpu.core_type = #tpu.core_type<tc>} {
    %c0 = arith.constant 0 : index
    %c0_0 = arith.constant 0 : index
    %0 = vector.load %arg1[%c0, %c0_0] : memref<8x4xf32, #tpu.memory_space<vmem>>, vector<8x4xf32>
    %c0_1 = arith.constant 0 : index
    %c0_2 = arith.constant 0 : index
    %1 = vector.load %arg0[%c0_1, %c0_2] : memref<4x336xf32, #tpu.memory_space<vmem>>, vector<4x336xf32>
    %cst = arith.constant dense<0.000000e+00> : vector<8x336xf32>
    %2 = tpu.matmul %0, %1, %cst {dimension_numbers = #tpu.dot_dimension_numbers<[1], [0], [0], [1], [0, 0, 1, 1], [], []>} : vector<8x4xf32>, vector<4x336xf32>, vector<8x336xf32> -> vector<8x336xf32>
    %c0_3 = arith.constant 0 : index
    %c0_4 = arith.constant 0 : index
    %3 = vector.load %arg4[%c0_3, %c0_4] : memref<8x336xf32, #tpu.memory_space<vmem>>, vector<8x336xf32>
    tpu.vector_store %arg4[%c0_3, %c0_4], %2 {strides = array<i32>} : memref<8x336xf32, #tpu.memory_space<vmem>>, vector<8x336xf32>,
    %c0_5 = arith.constant 0 : index
    %c0_6 = arith.constant 0 : index
    %4 = vector.load %arg2[%c0_5, %c0_6] : memref<2x256xf32, #tpu.memory_space<vmem>>, vector<2x256xf32>
    %c0_7 = arith.constant 0 : index
    %c0_8 = arith.constant 0 : index
    %5 = vector.load %arg3[%c0_7, %c0_8] : memref<256x512xf32, #tpu.memory_space<vmem>>, vector<256x512xf32>
    %cst_9 = arith.constant dense<0.000000e+00> : vector<2x512xf32>
    %6 = tpu.matmul %4, %5, %cst_9 {dimension_numbers = #tpu.dot_dimension_numbers<[1], [0], [0], [1], [0, 0, 1, 1], [], []>} : vector<2x256xf32>, vector<256x512xf32>, vector<2x512xf32> -> vector<2x512xf32>
    %c0_10 = arith.constant 0 : index
    %c0_11 = arith.constant 0 : index
    %7 = vector.load %arg5[%c0_10, %c0_11] : memref<2x512xf32, #tpu.memory_space<vmem>>, vector<2x512xf32>
    tpu.vector_store %arg5[%c0_10, %c0_11], %6 {strides = array<i32>} : memref<2x512xf32, #tpu.memory_space<vmem>>, vector<2x512xf32>,
    return
  }
}

module attributes {stable_mosaic.version = 11 : i64} {
  func.func @_fno_block_kernel(%arg0: memref<8x160xf32, #tpu.memory_space<vmem>>, %arg1: memref<16x8xf32, #tpu.memory_space<vmem>>, %arg2: memref<2x288xf32, #tpu.memory_space<vmem>>, %arg3: memref<288x576xf32, #tpu.memory_space<vmem>>, %arg4: memref<16x160xf32, #tpu.memory_space<vmem>>, %arg5: memref<2x576xf32, #tpu.memory_space<vmem>>) attributes {dimension_semantics = [], scalar_prefetch = 0 : i64, scratch_operands = 0 : i64, tpu.core_type = #tpu.core_type<tc>} {
    %c0 = arith.constant 0 : index
    %c0_0 = arith.constant 0 : index
    %0 = vector.load %arg1[%c0, %c0_0] : memref<16x8xf32, #tpu.memory_space<vmem>>, vector<16x8xf32>
    %c0_1 = arith.constant 0 : index
    %c0_2 = arith.constant 0 : index
    %1 = vector.load %arg0[%c0_1, %c0_2] : memref<8x160xf32, #tpu.memory_space<vmem>>, vector<8x160xf32>
    %cst = arith.constant dense<0.000000e+00> : vector<16x160xf32>
    %2 = tpu.matmul %0, %1, %cst {dimension_numbers = #tpu.dot_dimension_numbers<[1], [0], [0], [1], [0, 0, 1, 1], [], []>} : vector<16x8xf32>, vector<8x160xf32>, vector<16x160xf32> -> vector<16x160xf32>
    %c0_3 = arith.constant 0 : index
    %c0_4 = arith.constant 0 : index
    %3 = vector.load %arg4[%c0_3, %c0_4] : memref<16x160xf32, #tpu.memory_space<vmem>>, vector<16x160xf32>
    tpu.vector_store %arg4[%c0_3, %c0_4], %2 {strides = array<i32>} : memref<16x160xf32, #tpu.memory_space<vmem>>, vector<16x160xf32>,
    %c0_5 = arith.constant 0 : index
    %c0_6 = arith.constant 0 : index
    %4 = vector.load %arg2[%c0_5, %c0_6] : memref<2x288xf32, #tpu.memory_space<vmem>>, vector<2x288xf32>
    %c0_7 = arith.constant 0 : index
    %c0_8 = arith.constant 0 : index
    %5 = vector.load %arg3[%c0_7, %c0_8] : memref<288x576xf32, #tpu.memory_space<vmem>>, vector<288x576xf32>
    %cst_9 = arith.constant dense<0.000000e+00> : vector<2x576xf32>
    %6 = tpu.matmul %4, %5, %cst_9 {dimension_numbers = #tpu.dot_dimension_numbers<[1], [0], [0], [1], [0, 0, 1, 1], [], []>} : vector<2x288xf32>, vector<288x576xf32>, vector<2x576xf32> -> vector<2x576xf32>
    %c0_10 = arith.constant 0 : index
    %c0_11 = arith.constant 0 : index
    %7 = vector.load %arg5[%c0_10, %c0_11] : memref<2x576xf32, #tpu.memory_space<vmem>>, vector<2x576xf32>
    tpu.vector_store %arg5[%c0_10, %c0_11], %6 {strides = array<i32>} : memref<2x576xf32, #tpu.memory_space<vmem>>, vector<2x576xf32>,
    return
  }
}

module attributes {stable_mosaic.version = 11 : i64} {
  func.func @_fno_block_kernel(%arg0: memref<16x48xf32, #tpu.memory_space<vmem>>, %arg1: memref<16x16xf32, #tpu.memory_space<vmem>>, %arg2: memref<2x256xf32, #tpu.memory_space<vmem>>, %arg3: memref<256x256xf32, #tpu.memory_space<vmem>>, %arg4: memref<16x48xf32, #tpu.memory_space<vmem>>, %arg5: memref<2x256xf32, #tpu.memory_space<vmem>>) attributes {dimension_semantics = [], scalar_prefetch = 0 : i64, scratch_operands = 0 : i64, tpu.core_type = #tpu.core_type<tc>} {
    %c0 = arith.constant 0 : index
    %c0_0 = arith.constant 0 : index
    %0 = vector.load %arg1[%c0, %c0_0] : memref<16x16xf32, #tpu.memory_space<vmem>>, vector<16x16xf32>
    %c0_1 = arith.constant 0 : index
    %c0_2 = arith.constant 0 : index
    %1 = vector.load %arg0[%c0_1, %c0_2] : memref<16x48xf32, #tpu.memory_space<vmem>>, vector<16x48xf32>
    %cst = arith.constant dense<0.000000e+00> : vector<16x48xf32>
    %2 = tpu.matmul %0, %1, %cst {dimension_numbers = #tpu.dot_dimension_numbers<[1], [0], [0], [1], [0, 0, 1, 1], [], []>} : vector<16x16xf32>, vector<16x48xf32>, vector<16x48xf32> -> vector<16x48xf32>
    %c0_3 = arith.constant 0 : index
    %c0_4 = arith.constant 0 : index
    %3 = vector.load %arg4[%c0_3, %c0_4] : memref<16x48xf32, #tpu.memory_space<vmem>>, vector<16x48xf32>
    tpu.vector_store %arg4[%c0_3, %c0_4], %2 {strides = array<i32>} : memref<16x48xf32, #tpu.memory_space<vmem>>, vector<16x48xf32>,
    %c0_5 = arith.constant 0 : index
    %c0_6 = arith.constant 0 : index
    %4 = vector.load %arg2[%c0_5, %c0_6] : memref<2x256xf32, #tpu.memory_space<vmem>>, vector<2x256xf32>
    %c0_7 = arith.constant 0 : index
    %c0_8 = arith.constant 0 : index
    %5 = vector.load %arg3[%c0_7, %c0_8] : memref<256x256xf32, #tpu.memory_space<vmem>>, vector<256x256xf32>
    %cst_9 = arith.constant dense<0.000000e+00> : vector<2x256xf32>
    %6 = tpu.matmul %4, %5, %cst_9 {dimension_numbers = #tpu.dot_dimension_numbers<[1], [0], [0], [1], [0, 0, 1, 1], [], []>} : vector<2x256xf32>, vector<256x256xf32>, vector<2x256xf32> -> vector<2x256xf32>
    %c0_10 = arith.constant 0 : index
    %c0_11 = arith.constant 0 : index
    %7 = vector.load %arg5[%c0_10, %c0_11] : memref<2x256xf32, #tpu.memory_space<vmem>>, vector<2x256xf32>
    tpu.vector_store %arg5[%c0_10, %c0_11], %6 {strides = array<i32>} : memref<2x256xf32, #tpu.memory_space<vmem>>, vector<2x256xf32>,
    return
  }
}

module attributes {stable_mosaic.version = 11 : i64} {
  func.func @_fno_block_kernel(%arg0: memref<16x48xf32, #tpu.memory_space<vmem>>, %arg1: memref<16x16xf32, #tpu.memory_space<vmem>>, %arg2: memref<2x64xf32, #tpu.memory_space<vmem>>, %arg3: memref<64x64xf32, #tpu.memory_space<vmem>>, %arg4: memref<16x48xf32, #tpu.memory_space<vmem>>, %arg5: memref<2x64xf32, #tpu.memory_space<vmem>>) attributes {dimension_semantics = [], scalar_prefetch = 0 : i64, scratch_operands = 0 : i64, tpu.core_type = #tpu.core_type<tc>} {
    %c0 = arith.constant 0 : index
    %c0_0 = arith.constant 0 : index
    %0 = vector.load %arg1[%c0, %c0_0] : memref<16x16xf32, #tpu.memory_space<vmem>>, vector<16x16xf32>
    %c0_1 = arith.constant 0 : index
    %c0_2 = arith.constant 0 : index
    %1 = vector.load %arg0[%c0_1, %c0_2] : memref<16x48xf32, #tpu.memory_space<vmem>>, vector<16x48xf32>
    %cst = arith.constant dense<0.000000e+00> : vector<16x48xf32>
    %2 = tpu.matmul %0, %1, %cst {dimension_numbers = #tpu.dot_dimension_numbers<[1], [0], [0], [1], [0, 0, 1, 1], [], []>} : vector<16x16xf32>, vector<16x48xf32>, vector<16x48xf32> -> vector<16x48xf32>
    %c0_3 = arith.constant 0 : index
    %c0_4 = arith.constant 0 : index
    %3 = vector.load %arg4[%c0_3, %c0_4] : memref<16x48xf32, #tpu.memory_space<vmem>>, vector<16x48xf32>
    tpu.vector_store %arg4[%c0_3, %c0_4], %2 {strides = array<i32>} : memref<16x48xf32, #tpu.memory_space<vmem>>, vector<16x48xf32>,
    %c0_5 = arith.constant 0 : index
    %c0_6 = arith.constant 0 : index
    %4 = vector.load %arg2[%c0_5, %c0_6] : memref<2x64xf32, #tpu.memory_space<vmem>>, vector<2x64xf32>
    %c0_7 = arith.constant 0 : index
    %c0_8 = arith.constant 0 : index
    %5 = vector.load %arg3[%c0_7, %c0_8] : memref<64x64xf32, #tpu.memory_space<vmem>>, vector<64x64xf32>
    %cst_9 = arith.constant dense<0.000000e+00> : vector<2x64xf32>
    %6 = tpu.matmul %4, %5, %cst_9 {dimension_numbers = #tpu.dot_dimension_numbers<[1], [0], [0], [1], [0, 0, 1, 1], [], []>} : vector<2x64xf32>, vector<64x64xf32>, vector<2x64xf32> -> vector<2x64xf32>
    %c0_10 = arith.constant 0 : index
    %c0_11 = arith.constant 0 : index
    %7 = vector.load %arg5[%c0_10, %c0_11] : memref<2x64xf32, #tpu.memory_space<vmem>>, vector<2x64xf32>
    tpu.vector_store %arg5[%c0_10, %c0_11], %6 {strides = array<i32>} : memref<2x64xf32, #tpu.memory_space<vmem>>, vector<2x64xf32>,
    return
  }
}

module attributes {stable_mosaic.version = 11 : i64} {
  func.func @_fno_block_kernel(%arg0: memref<32x160xf32, #tpu.memory_space<vmem>>, %arg1: memref<8x32xf32, #tpu.memory_space<vmem>>, %arg2: memref<2x512xf32, #tpu.memory_space<vmem>>, %arg3: memref<512x128xf32, #tpu.memory_space<vmem>>, %arg4: memref<8x160xf32, #tpu.memory_space<vmem>>, %arg5: memref<2x128xf32, #tpu.memory_space<vmem>>) attributes {dimension_semantics = [], scalar_prefetch = 0 : i64, scratch_operands = 0 : i64, tpu.core_type = #tpu.core_type<tc>} {
    %c0 = arith.constant 0 : index
    %c0_0 = arith.constant 0 : index
    %0 = vector.load %arg1[%c0, %c0_0] : memref<8x32xf32, #tpu.memory_space<vmem>>, vector<8x32xf32>
    %c0_1 = arith.constant 0 : index
    %c0_2 = arith.constant 0 : index
    %1 = vector.load %arg0[%c0_1, %c0_2] : memref<32x160xf32, #tpu.memory_space<vmem>>, vector<32x160xf32>
    %cst = arith.constant dense<0.000000e+00> : vector<8x160xf32>
    %2 = tpu.matmul %0, %1, %cst {dimension_numbers = #tpu.dot_dimension_numbers<[1], [0], [0], [1], [0, 0, 1, 1], [], []>} : vector<8x32xf32>, vector<32x160xf32>, vector<8x160xf32> -> vector<8x160xf32>
    %c0_3 = arith.constant 0 : index
    %c0_4 = arith.constant 0 : index
    %3 = vector.load %arg4[%c0_3, %c0_4] : memref<8x160xf32, #tpu.memory_space<vmem>>, vector<8x160xf32>
    tpu.vector_store %arg4[%c0_3, %c0_4], %2 {strides = array<i32>} : memref<8x160xf32, #tpu.memory_space<vmem>>, vector<8x160xf32>,
    %c0_5 = arith.constant 0 : index
    %c0_6 = arith.constant 0 : index
    %4 = vector.load %arg2[%c0_5, %c0_6] : memref<2x512xf32, #tpu.memory_space<vmem>>, vector<2x512xf32>
    %c0_7 = arith.constant 0 : index
    %c0_8 = arith.constant 0 : index
    %5 = vector.load %arg3[%c0_7, %c0_8] : memref<512x128xf32, #tpu.memory_space<vmem>>, vector<512x128xf32>
    %cst_9 = arith.constant dense<0.000000e+00> : vector<2x128xf32>
    %6 = tpu.matmul %4, %5, %cst_9 {dimension_numbers = #tpu.dot_dimension_numbers<[1], [0], [0], [1], [0, 0, 1, 1], [], []>} : vector<2x512xf32>, vector<512x128xf32>, vector<2x128xf32> -> vector<2x128xf32>
    %c0_10 = arith.constant 0 : index
    %c0_11 = arith.constant 0 : index
    %7 = vector.load %arg5[%c0_10, %c0_11] : memref<2x128xf32, #tpu.memory_space<vmem>>, vector<2x128xf32>
    tpu.vector_store %arg5[%c0_10, %c0_11], %6 {strides = array<i32>} : memref<2x128xf32, #tpu.memory_space<vmem>>, vector<2x128xf32>,
    return
  }
}

module attributes {stable_mosaic.version = 11 : i64} {
  func.func @_fno_block_kernel(%arg0: memref<16x336xf32, #tpu.memory_space<vmem>>, %arg1: memref<4x16xf32, #tpu.memory_space<vmem>>, %arg2: memref<2x576xf32, #tpu.memory_space<vmem>>, %arg3: memref<576x144xf32, #tpu.memory_space<vmem>>, %arg4: memref<4x336xf32, #tpu.memory_space<vmem>>, %arg5: memref<2x144xf32, #tpu.memory_space<vmem>>) attributes {dimension_semantics = [], scalar_prefetch = 0 : i64, scratch_operands = 0 : i64, tpu.core_type = #tpu.core_type<tc>} {
    %c0 = arith.constant 0 : index
    %c0_0 = arith.constant 0 : index
    %0 = vector.load %arg1[%c0, %c0_0] : memref<4x16xf32, #tpu.memory_space<vmem>>, vector<4x16xf32>
    %c0_1 = arith.constant 0 : index
    %c0_2 = arith.constant 0 : index
    %1 = vector.load %arg0[%c0_1, %c0_2] : memref<16x336xf32, #tpu.memory_space<vmem>>, vector<16x336xf32>
    %cst = arith.constant dense<0.000000e+00> : vector<4x336xf32>
    %2 = tpu.matmul %0, %1, %cst {dimension_numbers = #tpu.dot_dimension_numbers<[1], [0], [0], [1], [0, 0, 1, 1], [], []>} : vector<4x16xf32>, vector<16x336xf32>, vector<4x336xf32> -> vector<4x336xf32>
    %c0_3 = arith.constant 0 : index
    %c0_4 = arith.constant 0 : index
    %3 = vector.load %arg4[%c0_3, %c0_4] : memref<4x336xf32, #tpu.memory_space<vmem>>, vector<4x336xf32>
    tpu.vector_store %arg4[%c0_3, %c0_4], %2 {strides = array<i32>} : memref<4x336xf32, #tpu.memory_space<vmem>>, vector<4x336xf32>,
    %c0_5 = arith.constant 0 : index
    %c0_6 = arith.constant 0 : index
    %4 = vector.load %arg2[%c0_5, %c0_6] : memref<2x576xf32, #tpu.memory_space<vmem>>, vector<2x576xf32>
    %c0_7 = arith.constant 0 : index
    %c0_8 = arith.constant 0 : index
    %5 = vector.load %arg3[%c0_7, %c0_8] : memref<576x144xf32, #tpu.memory_space<vmem>>, vector<576x144xf32>
    %cst_9 = arith.constant dense<0.000000e+00> : vector<2x144xf32>
    %6 = tpu.matmul %4, %5, %cst_9 {dimension_numbers = #tpu.dot_dimension_numbers<[1], [0], [0], [1], [0, 0, 1, 1], [], []>} : vector<2x576xf32>, vector<576x144xf32>, vector<2x144xf32> -> vector<2x144xf32>
    %c0_10 = arith.constant 0 : index
    %c0_11 = arith.constant 0 : index
    %7 = vector.load %arg5[%c0_10, %c0_11] : memref<2x144xf32, #tpu.memory_space<vmem>>, vector<2x144xf32>
    tpu.vector_store %arg5[%c0_10, %c0_11], %6 {strides = array<i32>} : memref<2x144xf32, #tpu.memory_space<vmem>>, vector<2x144xf32>,
    return
  }
}

module attributes {stable_mosaic.version = 11 : i64} {
  func.func @_fno_block_kernel(%arg0: memref<8x576xf32, #tpu.memory_space<vmem>>, %arg1: memref<4x8xf32, #tpu.memory_space<vmem>>, %arg2: memref<2x512xf32, #tpu.memory_space<vmem>>, %arg3: memref<512x256xf32, #tpu.memory_space<vmem>>, %arg4: memref<4x576xf32, #tpu.memory_space<vmem>>, %arg5: memref<2x256xf32, #tpu.memory_space<vmem>>) attributes {dimension_semantics = [], scalar_prefetch = 0 : i64, scratch_operands = 0 : i64, tpu.core_type = #tpu.core_type<tc>} {
    %c0 = arith.constant 0 : index
    %c0_0 = arith.constant 0 : index
    %0 = vector.load %arg1[%c0, %c0_0] : memref<4x8xf32, #tpu.memory_space<vmem>>, vector<4x8xf32>
    %c0_1 = arith.constant 0 : index
    %c0_2 = arith.constant 0 : index
    %1 = vector.load %arg0[%c0_1, %c0_2] : memref<8x576xf32, #tpu.memory_space<vmem>>, vector<8x576xf32>
    %cst = arith.constant dense<0.000000e+00> : vector<4x576xf32>
    %2 = tpu.matmul %0, %1, %cst {dimension_numbers = #tpu.dot_dimension_numbers<[1], [0], [0], [1], [0, 0, 1, 1], [], []>} : vector<4x8xf32>, vector<8x576xf32>, vector<4x576xf32> -> vector<4x576xf32>
    %c0_3 = arith.constant 0 : index
    %c0_4 = arith.constant 0 : index
    %3 = vector.load %arg4[%c0_3, %c0_4] : memref<4x576xf32, #tpu.memory_space<vmem>>, vector<4x576xf32>
    tpu.vector_store %arg4[%c0_3, %c0_4], %2 {strides = array<i32>} : memref<4x576xf32, #tpu.memory_space<vmem>>, vector<4x576xf32>,
    %c0_5 = arith.constant 0 : index
    %c0_6 = arith.constant 0 : index
    %4 = vector.load %arg2[%c0_5, %c0_6] : memref<2x512xf32, #tpu.memory_space<vmem>>, vector<2x512xf32>
    %c0_7 = arith.constant 0 : index
    %c0_8 = arith.constant 0 : index
    %5 = vector.load %arg3[%c0_7, %c0_8] : memref<512x256xf32, #tpu.memory_space<vmem>>, vector<512x256xf32>
    %cst_9 = arith.constant dense<0.000000e+00> : vector<2x256xf32>
    %6 = tpu.matmul %4, %5, %cst_9 {dimension_numbers = #tpu.dot_dimension_numbers<[1], [0], [0], [1], [0, 0, 1, 1], [], []>} : vector<2x512xf32>, vector<512x256xf32>, vector<2x256xf32> -> vector<2x256xf32>
    %c0_10 = arith.constant 0 : index
    %c0_11 = arith.constant 0 : index
    %7 = vector.load %arg5[%c0_10, %c0_11] : memref<2x256xf32, #tpu.memory_space<vmem>>, vector<2x256xf32>
    tpu.vector_store %arg5[%c0_10, %c0_11], %6 {strides = array<i32>} : memref<2x256xf32, #tpu.memory_space<vmem>>, vector<2x256xf32>,
    return
  }
}

module attributes {stable_mosaic.version = 11 : i64} {
  func.func @_lin_bias_scale_kernel(%arg0: memref<2x8xf32, #tpu.memory_space<vmem>>, %arg1: memref<8x512xf32, #tpu.memory_space<vmem>>, %arg2: memref<2x1xf32, #tpu.memory_space<vmem>>, %arg3: memref<1x512xf32, #tpu.memory_space<vmem>>, %arg4: memref<2x512xf32, #tpu.memory_space<vmem>>) attributes {dimension_semantics = [], scalar_prefetch = 0 : i64, scratch_operands = 0 : i64, tpu.core_type = #tpu.core_type<tc>} {
    %c0 = arith.constant 0 : index
    %c0_0 = arith.constant 0 : index
    %0 = vector.load %arg0[%c0, %c0_0] : memref<2x8xf32, #tpu.memory_space<vmem>>, vector<2x8xf32>
    %c0_1 = arith.constant 0 : index
    %c0_2 = arith.constant 0 : index
    %1 = vector.load %arg1[%c0_1, %c0_2] : memref<8x512xf32, #tpu.memory_space<vmem>>, vector<8x512xf32>
    %cst = arith.constant dense<0.000000e+00> : vector<2x512xf32>
    %2 = tpu.matmul %0, %1, %cst {dimension_numbers = #tpu.dot_dimension_numbers<[1], [0], [0], [1], [0, 0, 1, 1], [], []>} : vector<2x8xf32>, vector<8x512xf32>, vector<2x512xf32> -> vector<2x512xf32>
    %c0_3 = arith.constant 0 : index
    %c0_4 = arith.constant 0 : index
    %3 = vector.load %arg2[%c0_3, %c0_4] : memref<2x1xf32, #tpu.memory_space<vmem>>, vector<2x1xf32>
    %4 = vector.broadcast %3 : vector<2x1xf32> to vector<2x512xf32>
    %5 = arith.addf %2, %4 : vector<2x512xf32>
    %c0_5 = arith.constant 0 : index
    %c0_6 = arith.constant 0 : index
    %6 = vector.load %arg3[%c0_5, %c0_6] : memref<1x512xf32, #tpu.memory_space<vmem>>, vector<1x512xf32>
    %7 = vector.broadcast %6 : vector<1x512xf32> to vector<2x512xf32>
    %8 = arith.mulf %5, %7 : vector<2x512xf32>
    %c0_7 = arith.constant 0 : index
    %c0_8 = arith.constant 0 : index
    %9 = vector.load %arg4[%c0_7, %c0_8] : memref<2x512xf32, #tpu.memory_space<vmem>>, vector<2x512xf32>
    tpu.vector_store %arg4[%c0_7, %c0_8], %8 {strides = array<i32>} : memref<2x512xf32, #tpu.memory_space<vmem>>, vector<2x512xf32>,
    return
  }
}

</mosaic_0001>

<bundles_post_ra>
// kernel: _lambda_.10
= control target key start
LH: loop header
LB: loop body
LE: loop exit
PB: predicated region body
PF: predicated region fallthrough
CT: control target
= control target key end

     0   :  { %vm31_vm0 = vcmask 1043456   ;;  %v207_v2 = vmov 0.0   ;;  %v208_v5 = vmov 0   ;;  %vm27_vm1 = vcmask 31744   ;;  %s251_s1 = inlined_call_operand.vmem [shape: f32[4,512], index: 1, kind: input, shape index: {}]   ;;  %s252_s0 = inlined_call_operand.vmem [shape: f32[4,4], index: 0, kind: input, shape index: {}]   ;;  %s253_s2 = inlined_call_operand.vmem [shape: f32[4,1], index: 2, kind: input, shape index: {}]   ;;  %s254_s3 = inlined_call_operand.vmem [shape: f32[4,512], index: 3, kind: output, shape index: {}]  }
   0x1   :  { %v15_v0 = vld [vmem:[%s251_s1] sm:$0xff]  ;;  %v16_v1 = vld [vmem:[%s251_s1 + $0x8] sm:$0xff]  ;;  %104 = vmatprep.mubr.f32.mxu0 %v207_v2  ;;  %175 = vmatprep.mubr.f32.mxu1 %v207_v2 }
   0x2   :  { %v25_v3 = vcombine.high %v15_v0, %v15_v0  ;;  %v26_v4 = vcombine.high %v16_v1, %v16_v1  ;;  %204 = vset.pattern.permute.xlu0 %v208_v5  ;;  %v17_v6 = vld [vmem:[%s253_s2] sm:$0xf] }
   0x3   :  { %v14_v7 = vld [vmem:[%s252_s0] sm:$0xf]  ;;  %20 = vperm.xlu0 %204, %v17_v6  }
   0x4   :  { %196 = vmatprep.subr.msk.mxu0 %vm31_vm0, %v25_v3  ;;  %199 = vmatprep.subr.msk.mxu1 %vm31_vm0, %v26_v4 }
   0x5   :  { %197 = vmatpush1.msk.msra.mxu0 %vm31_vm0, %v15_v0  ;;  %200 = vmatpush1.msk.msra.mxu1 %vm31_vm0, %v16_v1 }
   0x6   :  { %198 = vmatmul.mubr.msk.f32.vlgmr.msra.gmra.mrb[0].mxu0 %vm27_vm1, %v14_v7  ;;  %201 = vmatmul.mubr.msk.f32.vlgmr.msra.gmra.mrb[0].mxu1 %vm27_vm1, %v14_v7 }
  0x82   :  { %v21_v8 = vpop.permute.xlu0 %20 }
  0xd9   :  { %v106_v9 = vpop.f32.mrb[0].mxu0  ;;  %v177_v10 = vpop.f32.mrb[0].mxu1 }
  0xda   :  { %v107_v11 = vadd.f32 %v106_v9, %v21_v8  ;;  %v178_v12 = vadd.f32 %v177_v10, %v21_v8  ;;  %v108_v13 = vpop.f32.mrb[1].mxu0  ;;  %v179_v14 = vpop.f32.mrb[1].mxu1 }
  0xdb   :  { %v109_v15 = vadd.f32 %v108_v13, %v21_v8  ;;  %v180_v16 = vadd.f32 %v179_v14, %v21_v8 }
  0xdd   :  { %v186_v17 = vcombine.low %v107_v11, %v109_v15  ;;  %v187_v18 = vcombine.low %v178_v12, %v180_v16 }
  0xdf   :  { %190 = vst [vmem:[%s254_s3] sm:$0xff] %v186_v17  ;;  %191 = vst [vmem:[%s254_s3 + $0x8] sm:$0xff] %v187_v18 }

// kernel: _lambda_.11
= control target key start
LH: loop header
LB: loop body
LE: loop exit
PB: predicated region body
PF: predicated region fallthrough
CT: control target
= control target key end

     0   :  { %v519_v3 = vmov 0.0   ;;  %vm32_vm0 = vcmask 1043456   ;;  %vm28_vm1 = vcmask 31744   ;;  %vm520_vm2 = vmmov 0   ;;  %s787_s3 = inlined_call_operand.vmem [shape: f32[256,256], index: 3, kind: input, shape index: {}]   ;;  %s788_s0 = inlined_call_operand.vmem [shape: f32[4,576], index: 0, kind: input, shape index: {}]   ;;  %s789_s1 = inlined_call_operand.vmem [shape: f32[4,4], index: 1, kind: input, shape index: {}]   ;;  %s790_s2 = inlined_call_operand.vmem [shape: f32[2,256], index: 2, kind: input, shape index: {}]   ;;  %s791_s4 = inlined_call_operand.vmem [shape: f32[4,576], index: 4, kind: output, shape index: {0}]   ;;  %s792_s5 = inlined_call_operand.vmem [shape: f32[2,256], index: 5, kind: output, shape index: {1}]  }
   0x1   :  { %v269_v0 = vld [vmem:[%s787_s3 + $0x8] sm:$0xff]  ;;  %v271_v1 = vld [vmem:[%s787_s3 + $0x18] sm:$0xff]  ;;  %v268_v2 = vld [vmem:[%s787_s3] sm:$0xff]  ;;  %107 = vmatprep.mubr.f32.mxu0 %v519_v3  ;;  %vm265_vm3 = vcmask 519168  }
   0x2   :  { %v451_v4 = vpack.c.bf16 %v271_v1, %v269_v0  ;;  %v270_v5 = vld [vmem:[%s787_s3 + $0x10] sm:$0xff]  ;;  %v273_v6 = vld [vmem:[%s787_s3 + $0x28] sm:$0xff]  ;;  %v275_v7 = vld [vmem:[%s787_s3 + $0x38] sm:$0xff] }
   0x3   :  { %v453_v8 = vpack.c.bf16 %v270_v5, %v268_v2  ;;  %v455_v9 = vpack.c.bf16 %v275_v7, %v273_v6  ;;  %v272_v10 = vld [vmem:[%s787_s3 + $0x20] sm:$0xff]  ;;  %v274_v11 = vld [vmem:[%s787_s3 + $0x30] sm:$0xff]  ;;  %v277_v12 = vld [vmem:[%s787_s3 + $0x48] sm:$0xff] }
   0x4   :  { %452 = vmatprep.subr.bf16.mxu1 %v451_v4  ;;  %v279_v13 = vld [vmem:[%s787_s3 + $0x58] sm:$0xff]  ;;  %v457_v14 = vpack.c.bf16 %v274_v11, %v272_v10  ;;  %v276_v16 = vld [vmem:[%s787_s3 + $0x40] sm:$0xff]  ;;  %v278_v17 = vld [vmem:[%s787_s3 + $0x50] sm:$0xff] }
   0x5   :  { %454 = vmatpush1.bf16.msra.mxu1 %v453_v8  ;;  %v459_v15 = vpack.c.bf16 %v279_v13, %v277_v12  ;;  %v281_v18 = vld [vmem:[%s787_s3 + $0x68] sm:$0xff]  ;;  %v283_v19 = vld [vmem:[%s787_s3 + $0x78] sm:$0xff]  ;;  %v461_v20 = vpack.c.bf16 %v278_v17, %v276_v16  ;;  %v280_v22 = vld [vmem:[%s787_s3 + $0x60] sm:$0xff] }
   0x6   :  { %456 = vmatprep.subr.bf16.mxu1 %v455_v9  ;;  %v463_v21 = vpack.c.bf16 %v283_v19, %v281_v18  ;;  %v282_v23 = vld [vmem:[%s787_s3 + $0x70] sm:$0xff]  ;;  %v285_v24 = vld [vmem:[%s787_s3 + $0x88] sm:$0xff]  ;;  %v287_v25 = vld [vmem:[%s787_s3 + $0x98] sm:$0xff] }
   0x7   :  { %v465_v26 = vpack.c.bf16 %v282_v23, %v280_v22  ;;  %v467_v27 = vpack.c.bf16 %v287_v25, %v285_v24  ;;  %v284_v28 = vld [vmem:[%s787_s3 + $0x80] sm:$0xff]  ;;  %v286_v29 = vld [vmem:[%s787_s3 + $0x90] sm:$0xff]  ;;  %v289_v30 = vld [vmem:[%s787_s3 + $0xa8] sm:$0xff] }
   0x8   :  { %v291_v31 = vld [vmem:[%s787_s3 + $0xb8] sm:$0xff]  ;;  %v469_v32 = vpack.c.bf16 %v286_v29, %v284_v28  ;;  %v288_v34 = vld [vmem:[%s787_s3 + $0xa0] sm:$0xff]  ;;  %v290_v35 = vld [vmem:[%s787_s3 + $0xb0] sm:$0xff] }
   0x9   :  { %458 = vmatpush1.bf16.msra.mxu1 %v457_v14  ;;  %v471_v33 = vpack.c.bf16 %v291_v31, %v289_v30  ;;  %v293_v36 = vld [vmem:[%s787_s3 + $0xc8] sm:$0xff]  ;;  %v295_v37 = vld [vmem:[%s787_s3 + $0xd8] sm:$0xff]  ;;  %v20_v38 = vld [vmem:[%s788_s0] sm:$0xff]  ;;  %v473_v41 = vpack.c.bf16 %v290_v35, %v288_v34 }
   0xa   :  { %460 = vmatprep.subr.bf16.mxu1 %v459_v15  ;;  %v21_v39 = vld [vmem:[%s788_s0 + $0x8] sm:$0xff]  ;;  %v26_v40 = vcombine.high %v20_v38, %v20_v38  ;;  %v19_v42 = vld [vmem:[%s789_s1] sm:$0xf]  ;;  %v475_v44 = vpack.c.bf16 %v295_v37, %v293_v36  ;;  %v294_v46 = vld [vmem:[%s787_s3 + $0xd0] sm:$0xff] }
   0xb   :  { %v27_v43 = vcombine.high %v21_v39, %v21_v39  ;;  %v292_v45 = vld [vmem:[%s787_s3 + $0xc0] sm:$0xff]  ;;  %v297_v47 = vld [vmem:[%s787_s3 + $0xe8] sm:$0xff]  ;;  %v299_v48 = vld [vmem:[%s787_s3 + $0xf8] sm:$0xff] }
   0xc   :  { %434 = vmatprep.subr.msk.mxu0 %vm32_vm0, %v26_v40  ;;  %v658_v49 = vld.sshfl [vmem:[%s790_s2] sm:$0x33 pattern:$0x76325410]  ;;  %v477_v50 = vpack.c.bf16 %v294_v46, %v292_v45  ;;  %v479_v52 = vpack.c.bf16 %v299_v48, %v297_v47  ;;  %v298_v54 = vld [vmem:[%s787_s3 + $0xf0] sm:$0xff]  ;;  %v301_v56 = vld [vmem:[%s787_s3 + $0x108] sm:$0xff] }
   0xd   :  { %462 = vmatpush1.bf16.msra.mxu1 %v461_v20  ;;  %435 = vmatpush1.msk.msra.mxu0 %vm32_vm0, %v20_v38  ;;  %v340_v51 = vcombine.high %v658_v49, %v658_v49  ;;  %v296_v53 = vld [vmem:[%s787_s3 + $0xe0] sm:$0xff]  ;;  %v22_v55 = vld [vmem:[%s788_s0 + $0x10] sm:$0xf]  ;;  %v303_v57 = vld [vmem:[%s787_s3 + $0x118] sm:$0xff] }
   0xe   :  { %464 = vmatprep.subr.bf16.mxu1 %v463_v21  ;;  %436 = vmatmul.mubr.msk.f32.vlgmr.msra.gmra.mrb[0].mxu0 %vm28_vm1, %v19_v42  ;;  %v481_v58 = vpack.c.bf16 %v298_v54, %v296_v53  ;;  %v483_v59 = vpack.c.bf16 %v303_v57, %v301_v56  ;;  %v300_v60 = vld [vmem:[%s787_s3 + $0x100] sm:$0xff]  ;;  %v302_v61 = vld [vmem:[%s787_s3 + $0x110] sm:$0xff]  ;;  %v305_v62 = vld [vmem:[%s787_s3 + $0x128] sm:$0xff] }
   0xf   :  { %437 = vmatprep.subr.msk.mxu0 %vm32_vm0, %v27_v43  ;;  %178 = vmatprep.mubr.f32.mxu0 %v519_v3  ;;  %v307_v63 = vld [vmem:[%s787_s3 + $0x138] sm:$0xff]  ;;  %v485_v0 = vpack.c.bf16 %v302_v61, %v300_v60  ;;  %v304_v2 = vld [vmem:[%s787_s3 + $0x120] sm:$0xff]  ;;  %v309_v4 = vld [vmem:[%s787_s3 + $0x148] sm:$0xff] }
  0x10   :  { %438 = vmatpush1.msk.msra.mxu0 %vm32_vm0, %v21_v39  ;;  %407 = vmatprep.mubr.f32.mxu1 %v340_v51  ;;  %v487_v1 = vpack.c.bf16 %v307_v63, %v305_v62  ;;  %v311_v5 = vld [vmem:[%s787_s3 + $0x158] sm:$0xff]  ;;  %v308_v8 = vld [vmem:[%s787_s3 + $0x140] sm:$0xff]  ;;  %v310_v9 = vld [vmem:[%s787_s3 + $0x150] sm:$0xff] }
  0x11   :  { %466 = vmatpush1.bf16.msra.mxu1 %v465_v26  ;;  %446 = vmatprep.subr.mxu0 %v519_v3  ;;  %v491_v7 = vpack.c.bf16 %v311_v5, %v309_v4  ;;  %v313_v10 = vld [vmem:[%s787_s3 + $0x168] sm:$0xff]  ;;  %v315_v11 = vld [vmem:[%s787_s3 + $0x178] sm:$0xff]  ;;  %v493_v12 = vpack.c.bf16 %v310_v9, %v308_v8  ;;  %v312_v14 = vld [vmem:[%s787_s3 + $0x160] sm:$0xff] }
  0x12   :  { %468 = vmatprep.subr.bf16.mxu1 %v467_v27  ;;  %439 = vmatmul.mubr.msk.f32.vlgmr.msra.gmra.mrb[2].mxu0 %vm28_vm1, %v19_v42  ;;  %v495_v13 = vpack.c.bf16 %v315_v11, %v313_v10  ;;  %v314_v15 = vld [vmem:[%s787_s3 + $0x170] sm:$0xff]  ;;  %v317_v16 = vld [vmem:[%s787_s3 + $0x188] sm:$0xff]  ;;  %v319_v17 = vld [vmem:[%s787_s3 + $0x198] sm:$0xff] }
  0x13   :  { %447 = vmatpush3.msk.msra.mxu0 %vm32_vm0, %v22_v55  ;;  %448 = vmatprep.mubr.msk.f32.mxu0 %vm520_vm2, %v519_v3  ;;  %v306_v3 = vld [vmem:[%s787_s3 + $0x130] sm:$0xff]  ;;  %v497_v18 = vpack.c.bf16 %v314_v15, %v312_v14  ;;  %v499_v19 = vpack.c.bf16 %v319_v17, %v317_v16  ;;  %v316_v20 = vld [vmem:[%s787_s3 + $0x180] sm:$0xff]  ;;  %v321_v22 = vld [vmem:[%s787_s3 + $0x1a8] sm:$0xff] }
  0x14   :  { %v489_v6 = vpack.c.bf16 %v306_v3, %v304_v2  ;;  %v318_v21 = vld [vmem:[%s787_s3 + $0x190] sm:$0xff]  ;;  %v323_v23 = vld [vmem:[%s787_s3 + $0x1b8] sm:$0xff]  ;;  %v320_v26 = vld [vmem:[%s787_s3 + $0x1a0] sm:$0xff] }
  0x15   :  { %470 = vmatpush1.bf16.msra.mxu1 %v469_v32  ;;  %v501_v24 = vpack.c.bf16 %v318_v21, %v316_v20  ;;  %v503_v25 = vpack.c.bf16 %v323_v23, %v321_v22  ;;  %v322_v27 = vld [vmem:[%s787_s3 + $0x1b0] sm:$0xff]  ;;  %v325_v28 = vld [vmem:[%s787_s3 + $0x1c8] sm:$0xff]  ;;  %v327_v29 = vld [vmem:[%s787_s3 + $0x1d8] sm:$0xff] }
  0x16   :  { %472 = vmatprep.subr.bf16.mxu1 %v471_v33  ;;  %449 = vmatmul.mubr.msk.f32.vlgmr.msra.gmra.mrb[4].mxu0 %vm28_vm1, %v19_v42  ;;  %v505_v30 = vpack.c.bf16 %v322_v27, %v320_v26  ;;  %v507_v31 = vpack.c.bf16 %v327_v29, %v325_v28  ;;  %v324_v32 = vld [vmem:[%s787_s3 + $0x1c0] sm:$0xff]  ;;  %v326_v33 = vld [vmem:[%s787_s3 + $0x1d0] sm:$0xff]  ;;  %v329_v34 = vld [vmem:[%s787_s3 + $0x1e8] sm:$0xff] }
  0x17   :  { %v331_v35 = vld [vmem:[%s787_s3 + $0x1f8] sm:$0xff]  ;;  %v509_v36 = vpack.c.bf16 %v326_v33, %v324_v32  ;;  %v328_v38 = vld [vmem:[%s787_s3 + $0x1e0] sm:$0xff]  ;;  %v330_v39 = vld [vmem:[%s787_s3 + $0x1f0] sm:$0xff] }
  0x18   :  { %v511_v37 = vpack.c.bf16 %v331_v35, %v329_v34  ;;  %v513_v40 = vpack.c.bf16 %v330_v39, %v328_v38 }
  0x19   :  { %474 = vmatpush1.bf16.msra.mxu1 %v473_v41 }
  0x1a   :  { %476 = vmatprep.subr.bf16.mxu1 %v475_v44 }
  0x1d   :  { %478 = vmatpush1.bf16.msra.mxu1 %v477_v50 }
  0x1e   :  { %480 = vmatprep.subr.bf16.mxu1 %v479_v52 }
  0x21   :  { %482 = vmatpush1.bf16.msra.mxu1 %v481_v58 }
  0x22   :  { %484 = vmatprep.subr.bf16.mxu1 %v483_v59 }
  0x25   :  { %486 = vmatpush1.bf16.msra.mxu1 %v485_v0 }
  0x26   :  { %488 = vmatprep.subr.bf16.mxu1 %v487_v1 }
  0x29   :  { %490 = vmatpush1.bf16.msra.mxu1 %v489_v6 }
  0x2a   :  { %492 = vmatprep.subr.bf16.mxu1 %v491_v7 }
  0x2d   :  { %494 = vmatpush1.bf16.msra.mxu1 %v493_v12 }
  0x2e   :  { %496 = vmatprep.subr.bf16.mxu1 %v495_v13 }
  0x31   :  { %498 = vmatpush1.bf16.msra.mxu1 %v497_v18 }
  0x32   :  { %500 = vmatprep.subr.bf16.mxu1 %v499_v19 }
  0x35   :  { %502 = vmatpush1.bf16.msra.mxu1 %v501_v24 }
  0x36   :  { %504 = vmatprep.subr.bf16.mxu1 %v503_v25 }
  0x39   :  { %506 = vmatpush1.bf16.msra.mxu1 %v505_v30 }
  0x3a   :  { %508 = vmatprep.subr.bf16.mxu1 %v507_v31 }
  0x3d   :  { %510 = vmatpush1.bf16.msra.mxu1 %v509_v36 }
  0x3e   :  { %512 = vmatprep.subr.bf16.mxu1 %v511_v37 }
  0x41   :  { %514 = vmatpush1.bf16.msra.mxu1 %v513_v40 }
  0x44   :  { %408 = vmatmul.mubr.f32.vlgmr.msra.gmra.mrb[0].mxu1 %v658_v49 }
  0xe1   :  { %v109_v41 = vpop.f32.mrb[0].mxu0 }
  0xe2   :  { %v111_v42 = vpop.f32.mrb[1].mxu0 }
  0xe3   :  { %v259_v43 = vcombine.low %v109_v41, %v111_v42 }
  0xe5   :  { %263 = vst [vmem:[%s791_s4] sm:$0xff] %v259_v43  ;;  %v180_v44 = vpop.f32.mrb[2].mxu0 }
  0xe6   :  { %v182_v45 = vpop.f32.mrb[3].mxu0 }
  0xe7   :  { %v260_v46 = vcombine.low %v180_v44, %v182_v45 }
  0xe9   :  { %264 = vst [vmem:[%s791_s4 + $0x8] sm:$0xff] %v260_v46  ;;  %v251_v47 = vpop.f32.mrb[4].mxu0 }
  0xea   :  { %266 = vst.msk [vmem:[%s791_s4 + $0x10] sm:$0xf] %vm265_vm3, %v251_v47  ;;  %v450_v48 = vpop.f32.mrb[5].mxu0 }
 0x117   :  { %v409_v49 = vpop.f32.mrb[0].mxu1 }
 0x118   :  { %v411_v50 = vpop.f32.mrb[1].mxu1 }
 0x119   :  { %v416_v51 = vcombine.low %v409_v49, %v411_v50 }
 0x11b   :  { %443 = vst.sshfl [vmem:[%s792_s5] sm:$0x33 pattern:$0x76325410] %v416_v51 }

// kernel: reverse.17
= control target key start
LH: loop header
LB: loop body
LE: loop exit
PB: predicated region body
PF: predicated region fallthrough
CT: control target
= control target key end

     0   :  { %v71_v3 = vlaneseq  ;;  %v64_v9 = vld [vmem:[#allocation0 + $0x7] ss:$-1 sm:$0xff]  ;;  %v78_v12 = vld [vmem:[#allocation0 + $0x17] ss:$-1 sm:$0xff]  ;;  %s329_s0 = inlined_call_operand.vmem [shape: f32[4,2,16,7], index: 0, kind: input, shape index: {}]   ;;  %s330_s1 = inlined_call_operand.vmem [shape: f32[4,2,16,7], index: 1, kind: output, shape index: {}]  }
   0x1   :  { %v44_v0 = vld [vmem:[%s329_s0] sm:$0xff]  ;;  %v46_v1 = vld [vmem:[%s329_s0 + $0x8] sm:$0xff]  ;;  %v48_v2 = vld [vmem:[%s329_s0 + $0x10] sm:$0xff]  ;;  %v65_v10 = vrot.slane %v64_v9, 1  ;;  %v79_v14 = vrot.slane %v78_v12, 1 }
   0x2   :  { %45 = vst [vmem:[#allocation0 + $0x8] sm:$0xff] %v44_v0  ;;  %47 = vst [vmem:[#allocation0 + $0x18] sm:$0xff] %v46_v1  ;;  %v50_v4 = vld [vmem:[%s329_s0 + $0x18] sm:$0xff]  ;;  %v52_v5 = vld [vmem:[%s329_s0 + $0x20] sm:$0xff]  ;;  %v72_v11 = vshrl.u32 %v71_v3, 7 }
   0x3   :  { %49 = vst [vmem:[#allocation0 + $0x28] sm:$0xff] %v48_v2  ;;  %v54_v6 = vld [vmem:[%s329_s0 + $0x28] sm:$0xff]  ;;  %51 = vst [vmem:[#allocation0 + $0x38] sm:$0xff] %v50_v4  ;;  %v56_v7 = vld [vmem:[%s329_s0 + $0x30] sm:$0xff] }
   0x4   :  { %53 = vst [vmem:[#allocation0 + $0x48] sm:$0xff] %v52_v5  ;;  %55 = vst [vmem:[#allocation0 + $0x58] sm:$0xff] %v54_v6  ;;  %v58_v8 = vld [vmem:[%s329_s0 + $0x38] sm:$0xff]  ;;  %v92_v13 = vld [vmem:[#allocation0 + $0x27] ss:$-1 sm:$0xff]  ;;  %vm73_vm0 = vcmp.lt.s32.totalorder %v72_v11, 7 }
   0x5   :  { %57 = vst [vmem:[#allocation0 + $0x68] sm:$0xff] %v56_v7  ;;  %59 = vst [vmem:[#allocation0 + $0x78] sm:$0xff] %v58_v8  ;;  %v93_v15 = vrot.slane %v92_v13, 1  ;;  %v106_v16 = vld [vmem:[#allocation0 + $0x37] ss:$-1 sm:$0xff] }
   0x6   :  { %66 = vst [vmem:[#allocation1] sm:$0xff] %v65_v10  ;;  %v107_v17 = vrot.slane %v106_v16, 1  ;;  %v120_v18 = vld [vmem:[#allocation0 + $0x47] ss:$-1 sm:$0xff]  ;;  %v134_v19 = vld [vmem:[#allocation0 + $0x57] ss:$-1 sm:$0xff] }
   0x7   :  { %80 = vst [vmem:[#allocation1 + $0x8] sm:$0xff] %v79_v14  ;;  %94 = vst [vmem:[#allocation1 + $0x10] sm:$0xff] %v93_v15  ;;  %v121_v20 = vrot.slane %v120_v18, 1  ;;  %v135_v21 = vrot.slane %v134_v19, 1  ;;  %v148_v22 = vld [vmem:[#allocation0 + $0x67] ss:$-1 sm:$0xff] }
   0x8   :  { %v162_v23 = vld [vmem:[#allocation0 + $0x77] ss:$-1 sm:$0xff]  ;;  %108 = vst [vmem:[#allocation1 + $0x18] sm:$0xff] %v107_v17  ;;  %v149_v24 = vrot.slane %v148_v22, 1 }
   0x9   :  { %v163_v25 = vrot.slane %v162_v23, 1  ;;  %v69_v26 = vld [vmem:[#allocation0 + $0xf] ss:$-1 sm:$0xff]  ;;  %v83_v27 = vld [vmem:[#allocation0 + $0x1f] ss:$-1 sm:$0xff]  ;;  %122 = vst [vmem:[#allocation1 + $0x20] sm:$0xff] %v121_v20 }
   0xa   :  { %v97_v28 = vld [vmem:[#allocation0 + $0x2f] ss:$-1 sm:$0xff]  ;;  %136 = vst [vmem:[#allocation1 + $0x28] sm:$0xff] %v135_v21  ;;  %v70_v29 = vrot.slane %v69_v26, 1  ;;  %v84_v30 = vrot.slane %v83_v27, 1  ;;  %150 = vst [vmem:[#allocation1 + $0x30] sm:$0xff] %v149_v24 }
   0xb   :  { %v98_v31 = vrot.slane %v97_v28, 1  ;;  %v111_v32 = vld [vmem:[#allocation0 + $0x3f] ss:$-1 sm:$0xff]  ;;  %164 = vst [vmem:[#allocation1 + $0x38] sm:$0xff] %v163_v25  ;;  %v125_v34 = vld [vmem:[#allocation0 + $0x4f] ss:$-1 sm:$0xff] }
   0xc   :  { %v112_v33 = vrot.slane %v111_v32, 1  ;;  %v139_v35 = vld [vmem:[#allocation0 + $0x5f] ss:$-1 sm:$0xff]  ;;  %74 = vst.msk [vmem:[#allocation1] sm:$0xff] %vm73_vm0, %v70_v29  ;;  %88 = vst.msk [vmem:[#allocation1 + $0x8] sm:$0xff] %vm73_vm0, %v84_v30  ;;  %v126_v36 = vrot.slane %v125_v34, 1 }
   0xd   :  { %102 = vst.msk [vmem:[#allocation1 + $0x10] sm:$0xff] %vm73_vm0, %v98_v31  ;;  %v140_v37 = vrot.slane %v139_v35, 1  ;;  %v153_v38 = vld [vmem:[#allocation0 + $0x6f] ss:$-1 sm:$0xff]  ;;  %v167_v39 = vld [vmem:[#allocation0 + $0x7f] ss:$-1 sm:$0xff] }
   0xe   :  { %116 = vst.msk [vmem:[#allocation1 + $0x18] sm:$0xff] %vm73_vm0, %v112_v33  ;;  %v154_v40 = vrot.slane %v153_v38, 1  ;;  %v168_v41 = vrot.slane %v167_v39, 1  ;;  %130 = vst.msk [vmem:[#allocation1 + $0x20] sm:$0xff] %vm73_vm0, %v126_v36 }
   0xf   :  { %144 = vst.msk [vmem:[#allocation1 + $0x28] sm:$0xff] %vm73_vm0, %v140_v37 }
  0x10   :  { %158 = vst.msk [vmem:[#allocation1 + $0x30] sm:$0xff] %vm73_vm0, %v154_v40  ;;  %172 = vst.msk [vmem:[#allocation1 + $0x38] sm:$0xff] %vm73_vm0, %v168_v41 }
  0x13   :  { %v214_v42 = vld [vmem:[#allocation1] sm:$0xff]  ;;  %v216_v43 = vld [vmem:[#allocation1 + $0x8] sm:$0xff] }
  0x14   :  { %v218_v44 = vld [vmem:[#allocation1 + $0x10] sm:$0xff]  ;;  %215 = vst [vmem:[%s330_s1] sm:$0xff] %v214_v42  ;;  %217 = vst [vmem:[%s330_s1 + $0x8] sm:$0xff] %v216_v43 }
  0x15   :  { %219 = vst [vmem:[%s330_s1 + $0x10] sm:$0xff] %v218_v44  ;;  %v220_v45 = vld [vmem:[#allocation1 + $0x18] sm:$0xff]  ;;  %v222_v46 = vld [vmem:[#allocation1 + $0x20] sm:$0xff] }
  0x16   :  { %221 = vst [vmem:[%s330_s1 + $0x18] sm:$0xff] %v220_v45  ;;  %v224_v47 = vld [vmem:[#allocation1 + $0x28] sm:$0xff]  ;;  %223 = vst [vmem:[%s330_s1 + $0x20] sm:$0xff] %v222_v46 }
  0x17   :  { %225 = vst [vmem:[%s330_s1 + $0x28] sm:$0xff] %v224_v47  ;;  %v226_v48 = vld [vmem:[#allocation1 + $0x30] sm:$0xff]  ;;  %v228_v49 = vld [vmem:[#allocation1 + $0x38] sm:$0xff] }
  0x18   :  { %227 = vst [vmem:[%s330_s1 + $0x30] sm:$0xff] %v226_v48  ;;  %229 = vst [vmem:[%s330_s1 + $0x38] sm:$0xff] %v228_v49 }

// kernel: _lambda_.12
= control target key start
LH: loop header
LB: loop body
LE: loop exit
PB: predicated region body
PF: predicated region fallthrough
CT: control target
= control target key end

     0   :  { %vm29_vm0 = vcmask 1043456   ;;  %vm25_vm1 = vcmask 31744   ;;  %v639_v0 = vmov 0.0   ;;  %vm640_vm2 = vmmov 0   ;;  %s1091_s0 = inlined_call_operand.vmem [shape: f32[4,336], index: 0, kind: input, shape index: {}]   ;;  %s1092_s3 = inlined_call_operand.vmem [shape: f32[256,512], index: 3, kind: input, shape index: {}]   ;;  %s1093_s1 = inlined_call_operand.vmem [shape: f32[8,4], index: 1, kind: input, shape index: {}]   ;;  %s1094_s2 = inlined_call_operand.vmem [shape: f32[2,256], index: 2, kind: input, shape index: {}]   ;;  %s1095_s4 = inlined_call_operand.vmem [shape: f32[8,336], index: 4, kind: output, shape index: {0}]   ;;  %s1096_s5 = inlined_call_operand.vmem [shape: f32[2,512], index: 5, kind: output, shape index: {1}]  }
   0x1   :  { %502 = vmatprep.subr.mxu1 %v639_v0  ;;  %v20_v1 = vld [vmem:[%s1091_s0] sm:$0xff]  ;;  %v21_v2 = vld [vmem:[%s1091_s0 + $0x8] sm:$0xf]  ;;  %100 = vmatprep.mubr.f32.mxu0 %v639_v0  ;;  %v185_v3 = vld [vmem:[%s1092_s3 + $0x18] sm:$0xff]  ;;  %vm179_vm3 = vcmask 654336  }
   0x2   :  { %v24_v4 = vcombine.high %v20_v1, %v20_v1  ;;  %503 = vmatpush3.msk.msra.mxu1 %vm29_vm0, %v21_v2  ;;  %504 = vmatprep.mubr.msk.f32.mxu1 %vm640_vm2, %v639_v0  ;;  %v189_v5 = vld [vmem:[%s1092_s3 + $0x38] sm:$0xff]  ;;  %v19_v6 = vld [vmem:[%s1093_s1] sm:$0xff]  ;;  %v183_v7 = vld [vmem:[%s1092_s3 + $0x8] sm:$0xff] }
   0x3   :  { %v571_v8 = vpack.c.bf16 %v189_v5, %v185_v3  ;;  %505 = vmatmul.mubr.msk.f32.vlgmr.msra.gmra.mrb[0].mxu1 %vm25_vm1, %v19_v6  ;;  %v187_v9 = vld [vmem:[%s1092_s3 + $0x28] sm:$0xff]  ;;  %v184_v10 = vld [vmem:[%s1092_s3 + $0x10] sm:$0xff]  ;;  %v182_v14 = vld [vmem:[%s1092_s3] sm:$0xff] }
   0x4   :  { %v188_v11 = vld [vmem:[%s1092_s3 + $0x30] sm:$0xff]  ;;  %494 = vmatprep.subr.msk.mxu0 %vm29_vm0, %v24_v4  ;;  %v507_v12 = vpack.c.bf16 %v187_v9, %v183_v7  ;;  %v186_v15 = vld [vmem:[%s1092_s3 + $0x20] sm:$0xff]  ;;  %v193_v16 = vld [vmem:[%s1092_s3 + $0x58] sm:$0xff] }
   0x5   :  { %v573_v13 = vpack.c.bf16 %v188_v11, %v184_v10  ;;  %495 = vmatpush1.msk.msra.mxu0 %vm29_vm0, %v20_v1  ;;  %572 = vmatprep.subr.bf16.mxu1 %v571_v8  ;;  %v509_v17 = vpack.c.bf16 %v186_v15, %v182_v14  ;;  %v197_v18 = vld [vmem:[%s1092_s3 + $0x78] sm:$0xff]  ;;  %v191_v19 = vld [vmem:[%s1092_s3 + $0x48] sm:$0xff]  ;;  %v192_v23 = vld [vmem:[%s1092_s3 + $0x50] sm:$0xff] }
   0x6   :  { %v195_v20 = vld [vmem:[%s1092_s3 + $0x68] sm:$0xff]  ;;  %496 = vmatmul.mubr.msk.f32.vlgmr.msra.gmra.mrb[0].mxu0 %vm25_vm1, %v19_v6  ;;  %508 = vmatprep.subr.bf16.mxu0 %v507_v12  ;;  %v575_v21 = vpack.c.bf16 %v197_v18, %v193_v16  ;;  %v196_v24 = vld [vmem:[%s1092_s3 + $0x70] sm:$0xff]  ;;  %v190_v25 = vld [vmem:[%s1092_s3 + $0x40] sm:$0xff] }
   0x7   :  { %v511_v22 = vpack.c.bf16 %v195_v20, %v191_v19  ;;  %574 = vmatpush1.bf16.msra.mxu1 %v573_v13  ;;  %510 = vmatpush1.bf16.msra.mxu0 %v509_v17  ;;  %v577_v26 = vpack.c.bf16 %v196_v24, %v192_v23  ;;  %v194_v27 = vld [vmem:[%s1092_s3 + $0x60] sm:$0xff]  ;;  %v201_v28 = vld [vmem:[%s1092_s3 + $0x98] sm:$0xff]  ;;  %v199_v32 = vld [vmem:[%s1092_s3 + $0x88] sm:$0xff] }
   0x8   :  { %v205_v29 = vld [vmem:[%s1092_s3 + $0xb8] sm:$0xff]  ;;  %576 = vmatprep.subr.bf16.mxu1 %v575_v21  ;;  %v513_v30 = vpack.c.bf16 %v194_v27, %v190_v25  ;;  %v203_v33 = vld [vmem:[%s1092_s3 + $0xa8] sm:$0xff]  ;;  %v200_v34 = vld [vmem:[%s1092_s3 + $0x90] sm:$0xff] }
   0x9   :  { %512 = vmatprep.subr.bf16.mxu0 %v511_v22  ;;  %v579_v31 = vpack.c.bf16 %v205_v29, %v201_v28  ;;  %v515_v35 = vpack.c.bf16 %v203_v33, %v199_v32  ;;  %v204_v36 = vld [vmem:[%s1092_s3 + $0xb0] sm:$0xff]  ;;  %v198_v37 = vld [vmem:[%s1092_s3 + $0x80] sm:$0xff]  ;;  %v209_v39 = vld [vmem:[%s1092_s3 + $0xd8] sm:$0xff] }
   0xa   :  { %v202_v38 = vld [vmem:[%s1092_s3 + $0xa0] sm:$0xff]  ;;  %v213_v40 = vld [vmem:[%s1092_s3 + $0xf8] sm:$0xff]  ;;  %v207_v41 = vld [vmem:[%s1092_s3 + $0xc8] sm:$0xff]  ;;  %v581_v42 = vpack.c.bf16 %v204_v36, %v200_v34 }
   0xb   :  { %578 = vmatpush1.bf16.msra.mxu1 %v577_v26  ;;  %514 = vmatpush1.bf16.msra.mxu0 %v513_v30  ;;  %v517_v43 = vpack.c.bf16 %v202_v38, %v198_v37  ;;  %v211_v44 = vld [vmem:[%s1092_s3 + $0xe8] sm:$0xff]  ;;  %v208_v45 = vld [vmem:[%s1092_s3 + $0xd0] sm:$0xff]  ;;  %v583_v47 = vpack.c.bf16 %v213_v40, %v209_v39  ;;  %v206_v49 = vld [vmem:[%s1092_s3 + $0xc0] sm:$0xff] }
   0xc   :  { %v212_v46 = vld [vmem:[%s1092_s3 + $0xf0] sm:$0xff]  ;;  %580 = vmatprep.subr.bf16.mxu1 %v579_v31  ;;  %516 = vmatprep.subr.bf16.mxu0 %v515_v35  ;;  %v519_v48 = vpack.c.bf16 %v211_v44, %v207_v41  ;;  %v210_v50 = vld [vmem:[%s1092_s3 + $0xe0] sm:$0xff]  ;;  %v217_v51 = vld [vmem:[%s1092_s3 + $0x118] sm:$0xff] }
   0xd   :  { %v221_v52 = vld [vmem:[%s1092_s3 + $0x138] sm:$0xff]  ;;  %v215_v53 = vld [vmem:[%s1092_s3 + $0x108] sm:$0xff]  ;;  %v585_v55 = vpack.c.bf16 %v212_v46, %v208_v45  ;;  %v521_v56 = vpack.c.bf16 %v210_v50, %v206_v49  ;;  %v216_v57 = vld [vmem:[%s1092_s3 + $0x110] sm:$0xff] }
   0xe   :  { %v219_v54 = vld [vmem:[%s1092_s3 + $0x128] sm:$0xff]  ;;  %v220_v58 = vld [vmem:[%s1092_s3 + $0x130] sm:$0xff]  ;;  %v587_v59 = vpack.c.bf16 %v221_v52, %v217_v51  ;;  %v214_v61 = vld [vmem:[%s1092_s3 + $0x100] sm:$0xff] }
   0xf   :  { %582 = vmatpush1.bf16.msra.mxu1 %v581_v42  ;;  %518 = vmatpush1.bf16.msra.mxu0 %v517_v43  ;;  %v523_v60 = vpack.c.bf16 %v219_v54, %v215_v53  ;;  %v218_v62 = vld [vmem:[%s1092_s3 + $0x120] sm:$0xff]  ;;  %v225_v63 = vld [vmem:[%s1092_s3 + $0x158] sm:$0xff]  ;;  %v223_v1 = vld [vmem:[%s1092_s3 + $0x148] sm:$0xff]  ;;  %v589_v3 = vpack.c.bf16 %v220_v58, %v216_v57 }
  0x10   :  { %584 = vmatprep.subr.bf16.mxu1 %v583_v47  ;;  %520 = vmatprep.subr.bf16.mxu0 %v519_v48  ;;  %v229_v0 = vld [vmem:[%s1092_s3 + $0x178] sm:$0xff]  ;;  %v227_v2 = vld [vmem:[%s1092_s3 + $0x168] sm:$0xff]  ;;  %v525_v4 = vpack.c.bf16 %v218_v62, %v214_v61  ;;  %v224_v5 = vld [vmem:[%s1092_s3 + $0x150] sm:$0xff] }
  0x11   :  { %v228_v6 = vld [vmem:[%s1092_s3 + $0x170] sm:$0xff]  ;;  %v591_v7 = vpack.c.bf16 %v229_v0, %v225_v63  ;;  %v527_v8 = vpack.c.bf16 %v227_v2, %v223_v1  ;;  %v222_v9 = vld [vmem:[%s1092_s3 + $0x140] sm:$0xff]  ;;  %v233_v11 = vld [vmem:[%s1092_s3 + $0x198] sm:$0xff] }
  0x12   :  { %v226_v10 = vld [vmem:[%s1092_s3 + $0x160] sm:$0xff]  ;;  %v237_v12 = vld [vmem:[%s1092_s3 + $0x1b8] sm:$0xff]  ;;  %v231_v13 = vld [vmem:[%s1092_s3 + $0x188] sm:$0xff]  ;;  %v593_v15 = vpack.c.bf16 %v228_v6, %v224_v5 }
  0x13   :  { %586 = vmatpush1.bf16.msra.mxu1 %v585_v55  ;;  %522 = vmatpush1.bf16.msra.mxu0 %v521_v56  ;;  %v235_v14 = vld [vmem:[%s1092_s3 + $0x1a8] sm:$0xff]  ;;  %v529_v16 = vpack.c.bf16 %v226_v10, %v222_v9  ;;  %v232_v17 = vld [vmem:[%s1092_s3 + $0x190] sm:$0xff]  ;;  %v595_v19 = vpack.c.bf16 %v237_v12, %v233_v11  ;;  %v230_v21 = vld [vmem:[%s1092_s3 + $0x180] sm:$0xff] }
  0x14   :  { %588 = vmatprep.subr.bf16.mxu1 %v587_v59  ;;  %524 = vmatprep.subr.bf16.mxu0 %v523_v60  ;;  %v236_v18 = vld [vmem:[%s1092_s3 + $0x1b0] sm:$0xff]  ;;  %v531_v20 = vpack.c.bf16 %v235_v14, %v231_v13  ;;  %v234_v22 = vld [vmem:[%s1092_s3 + $0x1a0] sm:$0xff]  ;;  %v241_v23 = vld [vmem:[%s1092_s3 + $0x1d8] sm:$0xff] }
  0x15   :  { %v245_v24 = vld [vmem:[%s1092_s3 + $0x1f8] sm:$0xff]  ;;  %v239_v25 = vld [vmem:[%s1092_s3 + $0x1c8] sm:$0xff]  ;;  %v597_v27 = vpack.c.bf16 %v236_v18, %v232_v17  ;;  %v533_v28 = vpack.c.bf16 %v234_v22, %v230_v21  ;;  %v240_v29 = vld [vmem:[%s1092_s3 + $0x1d0] sm:$0xff] }
  0x16   :  { %v243_v26 = vld [vmem:[%s1092_s3 + $0x1e8] sm:$0xff]  ;;  %v244_v30 = vld [vmem:[%s1092_s3 + $0x1f0] sm:$0xff]  ;;  %v599_v31 = vpack.c.bf16 %v245_v24, %v241_v23  ;;  %v238_v33 = vld [vmem:[%s1092_s3 + $0x1c0] sm:$0xff] }
  0x17   :  { %590 = vmatpush1.bf16.msra.mxu1 %v589_v3  ;;  %526 = vmatpush1.bf16.msra.mxu0 %v525_v4  ;;  %v535_v32 = vpack.c.bf16 %v243_v26, %v239_v25  ;;  %v242_v34 = vld [vmem:[%s1092_s3 + $0x1e0] sm:$0xff]  ;;  %v249_v35 = vld [vmem:[%s1092_s3 + $0x218] sm:$0xff]  ;;  %v247_v37 = vld [vmem:[%s1092_s3 + $0x208] sm:$0xff]  ;;  %v601_v39 = vpack.c.bf16 %v244_v30, %v240_v29 }
  0x18   :  { %592 = vmatprep.subr.bf16.mxu1 %v591_v7  ;;  %528 = vmatprep.subr.bf16.mxu0 %v527_v8  ;;  %v253_v36 = vld [vmem:[%s1092_s3 + $0x238] sm:$0xff]  ;;  %v251_v38 = vld [vmem:[%s1092_s3 + $0x228] sm:$0xff]  ;;  %v537_v40 = vpack.c.bf16 %v242_v34, %v238_v33  ;;  %v248_v41 = vld [vmem:[%s1092_s3 + $0x210] sm:$0xff] }
  0x19   :  { %v252_v42 = vld [vmem:[%s1092_s3 + $0x230] sm:$0xff]  ;;  %v603_v43 = vpack.c.bf16 %v253_v36, %v249_v35  ;;  %v539_v44 = vpack.c.bf16 %v251_v38, %v247_v37  ;;  %v246_v45 = vld [vmem:[%s1092_s3 + $0x200] sm:$0xff]  ;;  %v257_v47 = vld [vmem:[%s1092_s3 + $0x258] sm:$0xff] }
  0x1a   :  { %v250_v46 = vld [vmem:[%s1092_s3 + $0x220] sm:$0xff]  ;;  %v261_v48 = vld [vmem:[%s1092_s3 + $0x278] sm:$0xff]  ;;  %v255_v49 = vld [vmem:[%s1092_s3 + $0x248] sm:$0xff]  ;;  %v605_v51 = vpack.c.bf16 %v252_v42, %v248_v41 }
  0x1b   :  { %594 = vmatpush1.bf16.msra.mxu1 %v593_v15  ;;  %530 = vmatpush1.bf16.msra.mxu0 %v529_v16  ;;  %v259_v50 = vld [vmem:[%s1092_s3 + $0x268] sm:$0xff]  ;;  %v541_v52 = vpack.c.bf16 %v250_v46, %v246_v45  ;;  %v256_v53 = vld [vmem:[%s1092_s3 + $0x250] sm:$0xff]  ;;  %v607_v55 = vpack.c.bf16 %v261_v48, %v257_v47  ;;  %v254_v57 = vld [vmem:[%s1092_s3 + $0x240] sm:$0xff] }
  0x1c   :  { %596 = vmatprep.subr.bf16.mxu1 %v595_v19  ;;  %532 = vmatprep.subr.bf16.mxu0 %v531_v20  ;;  %v260_v54 = vld [vmem:[%s1092_s3 + $0x270] sm:$0xff]  ;;  %v543_v56 = vpack.c.bf16 %v259_v50, %v255_v49  ;;  %v258_v58 = vld [vmem:[%s1092_s3 + $0x260] sm:$0xff]  ;;  %v265_v59 = vld [vmem:[%s1092_s3 + $0x298] sm:$0xff] }
  0x1d   :  { %v269_v60 = vld [vmem:[%s1092_s3 + $0x2b8] sm:$0xff]  ;;  %v263_v61 = vld [vmem:[%s1092_s3 + $0x288] sm:$0xff]  ;;  %v609_v63 = vpack.c.bf16 %v260_v54, %v256_v53  ;;  %v545_v0 = vpack.c.bf16 %v258_v58, %v254_v57  ;;  %v264_v1 = vld [vmem:[%s1092_s3 + $0x290] sm:$0xff] }
  0x1e   :  { %v267_v62 = vld [vmem:[%s1092_s3 + $0x2a8] sm:$0xff]  ;;  %v268_v2 = vld [vmem:[%s1092_s3 + $0x2b0] sm:$0xff]  ;;  %v611_v3 = vpack.c.bf16 %v269_v60, %v265_v59  ;;  %v262_v5 = vld [vmem:[%s1092_s3 + $0x280] sm:$0xff] }
  0x1f   :  { %598 = vmatpush1.bf16.msra.mxu1 %v597_v27  ;;  %534 = vmatpush1.bf16.msra.mxu0 %v533_v28  ;;  %v547_v4 = vpack.c.bf16 %v267_v62, %v263_v61  ;;  %v266_v6 = vld [vmem:[%s1092_s3 + $0x2a0] sm:$0xff]  ;;  %v273_v7 = vld [vmem:[%s1092_s3 + $0x2d8] sm:$0xff]  ;;  %v271_v9 = vld [vmem:[%s1092_s3 + $0x2c8] sm:$0xff]  ;;  %v613_v11 = vpack.c.bf16 %v268_v2, %v264_v1 }
  0x20   :  { %600 = vmatprep.subr.bf16.mxu1 %v599_v31  ;;  %536 = vmatprep.subr.bf16.mxu0 %v535_v32  ;;  %v277_v8 = vld [vmem:[%s1092_s3 + $0x2f8] sm:$0xff]  ;;  %v275_v10 = vld [vmem:[%s1092_s3 + $0x2e8] sm:$0xff]  ;;  %v549_v12 = vpack.c.bf16 %v266_v6, %v262_v5  ;;  %v272_v13 = vld [vmem:[%s1092_s3 + $0x2d0] sm:$0xff] }
  0x21   :  { %v276_v14 = vld [vmem:[%s1092_s3 + $0x2f0] sm:$0xff]  ;;  %v270_v15 = vld [vmem:[%s1092_s3 + $0x2c0] sm:$0xff]  ;;  %v615_v16 = vpack.c.bf16 %v277_v8, %v273_v7  ;;  %v551_v17 = vpack.c.bf16 %v275_v10, %v271_v9  ;;  %v281_v19 = vld [vmem:[%s1092_s3 + $0x318] sm:$0xff] }
  0x22   :  { %v274_v18 = vld [vmem:[%s1092_s3 + $0x2e0] sm:$0xff]  ;;  %v285_v21 = vld [vmem:[%s1092_s3 + $0x338] sm:$0xff]  ;;  %v279_v22 = vld [vmem:[%s1092_s3 + $0x308] sm:$0xff]  ;;  %v617_v25 = vpack.c.bf16 %v276_v14, %v272_v13  ;;  %v472_v13 = vlaneseq }
  0x23   :  { %602 = vmatpush1.bf16.msra.mxu1 %v601_v39  ;;  %538 = vmatpush1.bf16.msra.mxu0 %v537_v40  ;;  %v980_v20 = vld.sshfl [vmem:[%s1094_s2] sm:$0x33 pattern:$0x76325410]  ;;  %v283_v23 = vld [vmem:[%s1092_s3 + $0x328] sm:$0xff]  ;;  %v553_v26 = vpack.c.bf16 %v274_v18, %v270_v15  ;;  %v280_v27 = vld [vmem:[%s1092_s3 + $0x310] sm:$0xff]  ;;  %v619_v29 = vpack.c.bf16 %v285_v21, %v281_v19 }
  0x24   :  { %604 = vmatprep.subr.bf16.mxu1 %v603_v43  ;;  %540 = vmatprep.subr.bf16.mxu0 %v539_v44  ;;  %v318_v24 = vcombine.high %v980_v20, %v980_v20  ;;  %v284_v28 = vld [vmem:[%s1092_s3 + $0x330] sm:$0xff]  ;;  %v555_v30 = vpack.c.bf16 %v283_v23, %v279_v22  ;;  %v278_v31 = vld [vmem:[%s1092_s3 + $0x300] sm:$0xff]  ;;  %v289_v33 = vld [vmem:[%s1092_s3 + $0x358] sm:$0xff]  ;;  %v473_v15 = vshrl.u32 %v472_v13, 7 }
  0x25   :  { %v282_v32 = vld [vmem:[%s1092_s3 + $0x320] sm:$0xff]  ;;  %v293_v34 = vld [vmem:[%s1092_s3 + $0x378] sm:$0xff]  ;;  %v287_v35 = vld [vmem:[%s1092_s3 + $0x348] sm:$0xff]  ;;  %v621_v37 = vpack.c.bf16 %v284_v28, %v280_v27 }
  0x26   :  { %v291_v36 = vld [vmem:[%s1092_s3 + $0x368] sm:$0xff]  ;;  %456 = vmatprep.mubr.f32.mxu1 %v318_v24  ;;  %385 = vmatprep.mubr.f32.mxu0 %v318_v24  ;;  %v557_v38 = vpack.c.bf16 %v282_v32, %v278_v31  ;;  %v288_v39 = vld [vmem:[%s1092_s3 + $0x350] sm:$0xff]  ;;  %v623_v41 = vpack.c.bf16 %v293_v34, %v289_v33  ;;  %v286_v43 = vld [vmem:[%s1092_s3 + $0x340] sm:$0xff] }
  0x27   :  { %606 = vmatpush1.bf16.msra.mxu1 %v605_v51  ;;  %542 = vmatpush1.bf16.msra.mxu0 %v541_v52  ;;  %v292_v40 = vld [vmem:[%s1092_s3 + $0x370] sm:$0xff]  ;;  %v559_v42 = vpack.c.bf16 %v291_v36, %v287_v35  ;;  %v290_v44 = vld [vmem:[%s1092_s3 + $0x360] sm:$0xff]  ;;  %v297_v45 = vld [vmem:[%s1092_s3 + $0x398] sm:$0xff] }
  0x28   :  { %608 = vmatprep.subr.bf16.mxu1 %v607_v55  ;;  %544 = vmatprep.subr.bf16.mxu0 %v543_v56  ;;  %v301_v46 = vld [vmem:[%s1092_s3 + $0x3b8] sm:$0xff]  ;;  %v295_v47 = vld [vmem:[%s1092_s3 + $0x388] sm:$0xff]  ;;  %v625_v49 = vpack.c.bf16 %v292_v40, %v288_v39  ;;  %v561_v50 = vpack.c.bf16 %v290_v44, %v286_v43  ;;  %v296_v51 = vld [vmem:[%s1092_s3 + $0x390] sm:$0xff] }
  0x29   :  { %v299_v48 = vld [vmem:[%s1092_s3 + $0x3a8] sm:$0xff]  ;;  %v300_v52 = vld [vmem:[%s1092_s3 + $0x3b0] sm:$0xff]  ;;  %v627_v53 = vpack.c.bf16 %v301_v46, %v297_v45  ;;  %v294_v55 = vld [vmem:[%s1092_s3 + $0x380] sm:$0xff] }
  0x2a   :  { %v563_v54 = vpack.c.bf16 %v299_v48, %v295_v47  ;;  %v298_v56 = vld [vmem:[%s1092_s3 + $0x3a0] sm:$0xff]  ;;  %v305_v57 = vld [vmem:[%s1092_s3 + $0x3d8] sm:$0xff]  ;;  %v303_v59 = vld [vmem:[%s1092_s3 + $0x3c8] sm:$0xff]  ;;  %v629_v61 = vpack.c.bf16 %v300_v52, %v296_v51 }
  0x2b   :  { %610 = vmatpush1.bf16.msra.mxu1 %v609_v63  ;;  %546 = vmatpush1.bf16.msra.mxu0 %v545_v0  ;;  %v309_v58 = vld [vmem:[%s1092_s3 + $0x3f8] sm:$0xff]  ;;  %v307_v60 = vld [vmem:[%s1092_s3 + $0x3e8] sm:$0xff]  ;;  %v565_v62 = vpack.c.bf16 %v298_v56, %v294_v55  ;;  %v304_v63 = vld [vmem:[%s1092_s3 + $0x3d0] sm:$0xff] }
  0x2c   :  { %612 = vmatprep.subr.bf16.mxu1 %v611_v3  ;;  %548 = vmatprep.subr.bf16.mxu0 %v547_v4  ;;  %v631_v0 = vpack.c.bf16 %v309_v58, %v305_v57  ;;  %v567_v1 = vpack.c.bf16 %v307_v60, %v303_v59  ;;  %v308_v2 = vld [vmem:[%s1092_s3 + $0x3f0] sm:$0xff]  ;;  %v302_v3 = vld [vmem:[%s1092_s3 + $0x3c0] sm:$0xff] }
  0x2d   :  { %v306_v4 = vld [vmem:[%s1092_s3 + $0x3e0] sm:$0xff]  ;;  %v633_v5 = vpack.c.bf16 %v308_v2, %v304_v63 }
  0x2e   :  { %v569_v6 = vpack.c.bf16 %v306_v4, %v302_v3 }
  0x2f   :  { %614 = vmatpush1.bf16.msra.mxu1 %v613_v11  ;;  %550 = vmatpush1.bf16.msra.mxu0 %v549_v12  ;;  %v641_v11 = vmov 1983009808  }
  0x30   :  { %616 = vmatprep.subr.bf16.mxu1 %v615_v16  ;;  %552 = vmatprep.subr.bf16.mxu0 %v551_v17  ;;  %v470_v12 = vunpack.c.l.s4 %v641_v11 }
  0x32   :  { %v471_v14 = vunpack.c.0.s8 %v470_v12 }
  0x33   :  { %618 = vmatpush1.bf16.msra.mxu1 %v617_v25  ;;  %554 = vmatpush1.bf16.msra.mxu0 %v553_v26 }
  0x34   :  { %620 = vmatprep.subr.bf16.mxu1 %v619_v29  ;;  %556 = vmatprep.subr.bf16.mxu0 %v555_v30  ;;  %v474_v18 = vsub.s32 %v471_v14, %v473_v15 }
  0x37   :  { %622 = vmatpush1.bf16.msra.mxu1 %v621_v37  ;;  %558 = vmatpush1.bf16.msra.mxu0 %v557_v38 }
  0x38   :  { %624 = vmatprep.subr.bf16.mxu1 %v623_v41  ;;  %560 = vmatprep.subr.bf16.mxu0 %v559_v42 }
  0x3b   :  { %626 = vmatpush1.bf16.msra.mxu1 %v625_v49  ;;  %562 = vmatpush1.bf16.msra.mxu0 %v561_v50 }
  0x3c   :  { %628 = vmatprep.subr.bf16.mxu1 %v627_v53  ;;  %564 = vmatprep.subr.bf16.mxu0 %v563_v54 }
  0x3f   :  { %630 = vmatpush1.bf16.msra.mxu1 %v629_v61  ;;  %566 = vmatpush1.bf16.msra.mxu0 %v565_v62 }
  0x40   :  { %632 = vmatprep.subr.bf16.mxu1 %v631_v0  ;;  %568 = vmatprep.subr.bf16.mxu0 %v567_v1 }
  0x43   :  { %634 = vmatpush1.bf16.msra.mxu1 %v633_v5  ;;  %570 = vmatpush1.bf16.msra.mxu0 %v569_v6 }
  0x46   :  { %457 = vmatmul.mubr.f32.vlgmr.msra.gmra.mrb[2].mxu1 %v980_v20  ;;  %386 = vmatmul.mubr.f32.vlgmr.msra.gmra.mrb[2].mxu0 %v980_v20 }
  0xd6   :  { %v173_v7 = vpop.f32.mrb[0].mxu1 }
  0xd7   :  { %180 = vst.msk [vmem:[%s1095_s4 + $0x10] sm:$0xff] %vm179_vm3, %v173_v7  ;;  %v506_v8 = vpop.f32.mrb[1].mxu1 }
  0xd9   :  { %v102_v9 = vpop.f32.mrb[0].mxu0 }
  0xda   :  { %177 = vst [vmem:[%s1095_s4] sm:$0xff] %v102_v9  ;;  %v104_v10 = vpop.f32.mrb[1].mxu0 }
  0xdb   :  { %178 = vst [vmem:[%s1095_s4 + $0x8] sm:$0xff] %v104_v10 }
 0x119   :  { %v458_v16 = vpop.f32.mrb[2].mxu1  ;;  %v387_v17 = vpop.f32.mrb[2].mxu0 }
 0x11a   :  { %v460_v19 = vpop.f32.mrb[3].mxu1  ;;  %v389_v20 = vpop.f32.mrb[3].mxu0 }
 0x11b   :  { %v468_v21 = vcombine.low %v458_v16, %v460_v19  ;;  %v467_v22 = vcombine.low %v387_v17, %v389_v20 }
 0x11d   :  { %v482_v23 = vrot.slane %v468_v21, %v474_v18  ;;  %v475_v24 = vrot.slane %v467_v22, %v474_v18 }
 0x11f   :  { %v483_v25 = vcombine.low %v475_v24, %v482_v23 }
 0x121   :  { %485 = vst [vmem:[%s1096_s5] sm:$0xff] %v483_v25 }

// kernel: reverse.19
= control target key start
LH: loop header
LB: loop body
LE: loop exit
PB: predicated region body
PF: predicated region fallthrough
CT: control target
= control target key end

     0   :  { %v103_v3 = vlaneseq  ;;  %v96_v18 = vld [vmem:[#allocation0 + $0x7] ss:$-1 sm:$0xff]  ;;  %v110_v19 = vld [vmem:[#allocation0 + $0x17] ss:$-1 sm:$0xff]  ;;  %s604_s0 = inlined_call_operand.vmem [shape: f32[8,2,12,5], index: 0, kind: input, shape index: {}]   ;;  %s605_s1 = inlined_call_operand.vmem [shape: f32[8,2,12,5], index: 1, kind: output, shape index: {}]  }
   0x1   :  { %v60_v0 = vld [vmem:[%s604_s0] sm:$0xff]  ;;  %v62_v1 = vld [vmem:[%s604_s0 + $0x8] sm:$0xff]  ;;  %v64_v2 = vld [vmem:[%s604_s0 + $0x10] sm:$0xff]  ;;  %v97_v20 = vrot.slane %v96_v18, 3  ;;  %v111_v21 = vrot.slane %v110_v19, 3 }
   0x2   :  { %61 = vst [vmem:[#allocation0 + $0x8] sm:$0xff] %v60_v0  ;;  %63 = vst [vmem:[#allocation0 + $0x18] sm:$0xff] %v62_v1  ;;  %v66_v4 = vld [vmem:[%s604_s0 + $0x18] sm:$0xff]  ;;  %v68_v5 = vld [vmem:[%s604_s0 + $0x20] sm:$0xff]  ;;  %v500_v10 = vshrl.u32 %v103_v3, 7 }
   0x3   :  { %65 = vst [vmem:[#allocation0 + $0x28] sm:$0xff] %v64_v2  ;;  %v70_v6 = vld [vmem:[%s604_s0 + $0x28] sm:$0xff]  ;;  %67 = vst [vmem:[#allocation0 + $0x38] sm:$0xff] %v66_v4  ;;  %v72_v7 = vld [vmem:[%s604_s0 + $0x30] sm:$0xff] }
   0x4   :  { %69 = vst [vmem:[#allocation0 + $0x48] sm:$0xff] %v68_v5  ;;  %71 = vst [vmem:[#allocation0 + $0x58] sm:$0xff] %v70_v6  ;;  %v74_v8 = vld [vmem:[%s604_s0 + $0x38] sm:$0xff]  ;;  %v76_v9 = vld [vmem:[%s604_s0 + $0x40] sm:$0xff]  ;;  %vm105_vm0 = vcmp.lt.s32.totalorder %v500_v10, 5 }
   0x5   :  { %73 = vst [vmem:[#allocation0 + $0x68] sm:$0xff] %v72_v7  ;;  %75 = vst [vmem:[#allocation0 + $0x78] sm:$0xff] %v74_v8  ;;  %v78_v11 = vld [vmem:[%s604_s0 + $0x48] sm:$0xff]  ;;  %v80_v12 = vld [vmem:[%s604_s0 + $0x50] sm:$0xff] }
   0x6   :  { %77 = vst [vmem:[#allocation0 + $0x88] sm:$0xff] %v76_v9  ;;  %v82_v13 = vld [vmem:[%s604_s0 + $0x58] sm:$0xff]  ;;  %79 = vst [vmem:[#allocation0 + $0x98] sm:$0xff] %v78_v11  ;;  %v84_v14 = vld [vmem:[%s604_s0 + $0x60] sm:$0xff] }
   0x7   :  { %81 = vst [vmem:[#allocation0 + $0xa8] sm:$0xff] %v80_v12  ;;  %83 = vst [vmem:[#allocation0 + $0xb8] sm:$0xff] %v82_v13  ;;  %v86_v15 = vld [vmem:[%s604_s0 + $0x68] sm:$0xff]  ;;  %v88_v16 = vld [vmem:[%s604_s0 + $0x70] sm:$0xff] }
   0x8   :  { %85 = vst [vmem:[#allocation0 + $0xc8] sm:$0xff] %v84_v14  ;;  %87 = vst [vmem:[#allocation0 + $0xd8] sm:$0xff] %v86_v15  ;;  %v90_v17 = vld [vmem:[%s604_s0 + $0x78] sm:$0xff]  ;;  %v124_v22 = vld [vmem:[#allocation0 + $0x27] ss:$-1 sm:$0xff] }
   0x9   :  { %89 = vst [vmem:[#allocation0 + $0xe8] sm:$0xff] %v88_v16  ;;  %91 = vst [vmem:[#allocation0 + $0xf8] sm:$0xff] %v90_v17  ;;  %v138_v23 = vld [vmem:[#allocation0 + $0x37] ss:$-1 sm:$0xff]  ;;  %v125_v24 = vrot.slane %v124_v22, 3 }
   0xa   :  { %v139_v25 = vrot.slane %v138_v23, 3  ;;  %v152_v26 = vld [vmem:[#allocation0 + $0x47] ss:$-1 sm:$0xff]  ;;  %v166_v27 = vld [vmem:[#allocation0 + $0x57] ss:$-1 sm:$0xff]  ;;  %98 = vst [vmem:[#allocation1] sm:$0xff] %v97_v20 }
   0xb   :  { %v101_v28 = vld [vmem:[#allocation0 + $0xf] ss:$-1 sm:$0xff]  ;;  %112 = vst [vmem:[#allocation1 + $0x8] sm:$0xff] %v111_v21  ;;  %v115_v29 = vld [vmem:[#allocation0 + $0x1f] ss:$-1 sm:$0xff]  ;;  %126 = vst [vmem:[#allocation1 + $0x10] sm:$0xff] %v125_v24 }
   0xc   :  { %v129_v30 = vld [vmem:[#allocation0 + $0x2f] ss:$-1 sm:$0xff]  ;;  %v102_v31 = vrot.slane %v101_v28, 3  ;;  %v116_v32 = vrot.slane %v115_v29, 3  ;;  %140 = vst [vmem:[#allocation1 + $0x18] sm:$0xff] %v139_v25  ;;  %v153_v35 = vrot.slane %v152_v26, 3 }
   0xd   :  { %v130_v33 = vrot.slane %v129_v30, 3  ;;  %v143_v34 = vld [vmem:[#allocation0 + $0x3f] ss:$-1 sm:$0xff]  ;;  %v157_v37 = vld [vmem:[#allocation0 + $0x4f] ss:$-1 sm:$0xff]  ;;  %v167_v38 = vrot.slane %v166_v27, 3 }
   0xe   :  { %v144_v36 = vrot.slane %v143_v34, 3  ;;  %v171_v39 = vld [vmem:[#allocation0 + $0x5f] ss:$-1 sm:$0xff]  ;;  %106 = vst.msk [vmem:[#allocation1] sm:$0xff] %vm105_vm0, %v102_v31  ;;  %120 = vst.msk [vmem:[#allocation1 + $0x8] sm:$0xff] %vm105_vm0, %v116_v32  ;;  %v158_v40 = vrot.slane %v157_v37, 3 }
   0xf   :  { %134 = vst.msk [vmem:[#allocation1 + $0x10] sm:$0xff] %vm105_vm0, %v130_v33  ;;  %154 = vst [vmem:[#allocation1 + $0x20] sm:$0xff] %v153_v35  ;;  %v172_v41 = vrot.slane %v171_v39, 3  ;;  %v180_v42 = vld [vmem:[#allocation0 + $0x67] ss:$-1 sm:$0xff] }
  0x10   :  { %v185_v43 = vld [vmem:[#allocation0 + $0x6f] ss:$-1 sm:$0xff]  ;;  %148 = vst.msk [vmem:[#allocation1 + $0x18] sm:$0xff] %vm105_vm0, %v144_v36  ;;  %168 = vst [vmem:[#allocation1 + $0x28] sm:$0xff] %v167_v38  ;;  %v181_v44 = vrot.slane %v180_v42, 3 }
  0x11   :  { %v186_v45 = vrot.slane %v185_v43, 3  ;;  %v194_v46 = vld [vmem:[#allocation0 + $0x77] ss:$-1 sm:$0xff]  ;;  %v199_v47 = vld [vmem:[#allocation0 + $0x7f] ss:$-1 sm:$0xff]  ;;  %162 = vst.msk [vmem:[#allocation1 + $0x20] sm:$0xff] %vm105_vm0, %v158_v40 }
  0x12   :  { %176 = vst.msk [vmem:[#allocation1 + $0x28] sm:$0xff] %vm105_vm0, %v172_v41  ;;  %v195_v48 = vrot.slane %v194_v46, 3  ;;  %v200_v49 = vrot.slane %v199_v47, 3  ;;  %v208_v50 = vld [vmem:[#allocation0 + $0x87] ss:$-1 sm:$0xff]  ;;  %182 = vst [vmem:[#allocation1 + $0x30] sm:$0xff] %v181_v44 }
  0x13   :  { %v213_v51 = vld [vmem:[#allocation0 + $0x8f] ss:$-1 sm:$0xff]  ;;  %v209_v52 = vrot.slane %v208_v50, 3  ;;  %v222_v54 = vld [vmem:[#allocation0 + $0x97] ss:$-1 sm:$0xff]  ;;  %190 = vst.msk [vmem:[#allocation1 + $0x30] sm:$0xff] %vm105_vm0, %v186_v45 }
  0x14   :  { %v214_v53 = vrot.slane %v213_v51, 3  ;;  %v227_v55 = vld [vmem:[#allocation0 + $0x9f] ss:$-1 sm:$0xff]  ;;  %196 = vst [vmem:[#allocation1 + $0x38] sm:$0xff] %v195_v48  ;;  %v223_v56 = vrot.slane %v222_v54, 3 }
  0x15   :  { %v228_v57 = vrot.slane %v227_v55, 3  ;;  %v236_v58 = vld [vmem:[#allocation0 + $0xa7] ss:$-1 sm:$0xff]  ;;  %v241_v59 = vld [vmem:[#allocation0 + $0xaf] ss:$-1 sm:$0xff]  ;;  %204 = vst.msk [vmem:[#allocation1 + $0x38] sm:$0xff] %vm105_vm0, %v200_v49 }
  0x16   :  { %210 = vst [vmem:[#allocation1 + $0x40] sm:$0xff] %v209_v52  ;;  %v237_v60 = vrot.slane %v236_v58, 3  ;;  %v242_v61 = vrot.slane %v241_v59, 3  ;;  %v250_v62 = vld [vmem:[#allocation0 + $0xb7] ss:$-1 sm:$0xff]  ;;  %224 = vst [vmem:[#allocation1 + $0x48] sm:$0xff] %v223_v56 }
  0x17   :  { %v255_v63 = vld [vmem:[#allocation0 + $0xbf] ss:$-1 sm:$0xff]  ;;  %218 = vst.msk [vmem:[#allocation1 + $0x40] sm:$0xff] %vm105_vm0, %v214_v53  ;;  %v251_v0 = vrot.slane %v250_v62, 3  ;;  %v264_v2 = vld [vmem:[#allocation0 + $0xc7] ss:$-1 sm:$0xff] }
  0x18   :  { %v256_v1 = vrot.slane %v255_v63, 3  ;;  %v269_v3 = vld [vmem:[#allocation0 + $0xcf] ss:$-1 sm:$0xff]  ;;  %232 = vst.msk [vmem:[#allocation1 + $0x48] sm:$0xff] %vm105_vm0, %v228_v57  ;;  %238 = vst [vmem:[#allocation1 + $0x50] sm:$0xff] %v237_v60  ;;  %v265_v4 = vrot.slane %v264_v2, 3 }
  0x19   :  { %v270_v5 = vrot.slane %v269_v3, 3  ;;  %v278_v6 = vld [vmem:[#allocation0 + $0xd7] ss:$-1 sm:$0xff]  ;;  %v283_v7 = vld [vmem:[#allocation0 + $0xdf] ss:$-1 sm:$0xff]  ;;  %246 = vst.msk [vmem:[#allocation1 + $0x50] sm:$0xff] %vm105_vm0, %v242_v61 }
  0x1a   :  { %252 = vst [vmem:[#allocation1 + $0x58] sm:$0xff] %v251_v0  ;;  %v279_v8 = vrot.slane %v278_v6, 3  ;;  %v284_v9 = vrot.slane %v283_v7, 3  ;;  %v292_v11 = vld [vmem:[#allocation0 + $0xe7] ss:$-1 sm:$0xff]  ;;  %266 = vst [vmem:[#allocation1 + $0x60] sm:$0xff] %v265_v4 }
  0x1b   :  { %v297_v12 = vld [vmem:[#allocation0 + $0xef] ss:$-1 sm:$0xff]  ;;  %260 = vst.msk [vmem:[#allocation1 + $0x58] sm:$0xff] %vm105_vm0, %v256_v1  ;;  %v293_v13 = vrot.slane %v292_v11, 3  ;;  %v306_v15 = vld [vmem:[#allocation0 + $0xf7] ss:$-1 sm:$0xff] }
  0x1c   :  { %v298_v14 = vrot.slane %v297_v12, 3  ;;  %v311_v16 = vld [vmem:[#allocation0 + $0xff] ss:$-1 sm:$0xff]  ;;  %274 = vst.msk [vmem:[#allocation1 + $0x60] sm:$0xff] %vm105_vm0, %v270_v5  ;;  %280 = vst [vmem:[#allocation1 + $0x68] sm:$0xff] %v279_v8  ;;  %v307_v17 = vrot.slane %v306_v15, 3 }
  0x1d   :  { %v312_v18 = vrot.slane %v311_v16, 3  ;;  %v374_v19 = vld [vmem:[#allocation1] sm:$0xff]  ;;  %v376_v20 = vld [vmem:[#allocation1 + $0x8] sm:$0xff]  ;;  %v378_v21 = vld [vmem:[#allocation1 + $0x10] sm:$0xff]  ;;  %288 = vst.msk [vmem:[#allocation1 + $0x68] sm:$0xff] %vm105_vm0, %v284_v9 }
  0x1e   :  { %294 = vst [vmem:[#allocation1 + $0x70] sm:$0xff] %v293_v13  ;;  %375 = vst [vmem:[%s605_s1] sm:$0xff] %v374_v19  ;;  %v380_v22 = vld [vmem:[#allocation1 + $0x18] sm:$0xff]  ;;  %v382_v23 = vld [vmem:[#allocation1 + $0x20] sm:$0xff] }
  0x1f   :  { %377 = vst [vmem:[%s605_s1 + $0x8] sm:$0xff] %v376_v20  ;;  %379 = vst [vmem:[%s605_s1 + $0x10] sm:$0xff] %v378_v21  ;;  %v384_v24 = vld [vmem:[#allocation1 + $0x28] sm:$0xff]  ;;  %v386_v25 = vld [vmem:[#allocation1 + $0x30] sm:$0xff] }
  0x20   :  { %302 = vst.msk [vmem:[#allocation1 + $0x70] sm:$0xff] %vm105_vm0, %v298_v14  ;;  %308 = vst [vmem:[#allocation1 + $0x78] sm:$0xff] %v307_v17  ;;  %v388_v26 = vld [vmem:[#allocation1 + $0x38] sm:$0xff]  ;;  %v390_v10 = vld [vmem:[#allocation1 + $0x40] sm:$0xff] }
  0x21   :  { %381 = vst [vmem:[%s605_s1 + $0x18] sm:$0xff] %v380_v22  ;;  %383 = vst [vmem:[%s605_s1 + $0x20] sm:$0xff] %v382_v23  ;;  %v392_v27 = vld [vmem:[#allocation1 + $0x48] sm:$0xff]  ;;  %v394_v28 = vld [vmem:[#allocation1 + $0x50] sm:$0xff] }
  0x22   :  { %385 = vst [vmem:[%s605_s1 + $0x28] sm:$0xff] %v384_v24  ;;  %316 = vst.msk [vmem:[#allocation1 + $0x78] sm:$0xff] %vm105_vm0, %v312_v18  ;;  %v396_v29 = vld [vmem:[#allocation1 + $0x58] sm:$0xff] }
  0x23   :  { %387 = vst [vmem:[%s605_s1 + $0x30] sm:$0xff] %v386_v25  ;;  %389 = vst [vmem:[%s605_s1 + $0x38] sm:$0xff] %v388_v26  ;;  %v398_v30 = vld [vmem:[#allocation1 + $0x60] sm:$0xff] }
  0x24   :  { %391 = vst [vmem:[%s605_s1 + $0x40] sm:$0xff] %v390_v10  ;;  %393 = vst [vmem:[%s605_s1 + $0x48] sm:$0xff] %v392_v27  ;;  %v400_v31 = vld [vmem:[#allocation1 + $0x68] sm:$0xff] }
  0x25   :  { %395 = vst [vmem:[%s605_s1 + $0x50] sm:$0xff] %v394_v28  ;;  %397 = vst [vmem:[%s605_s1 + $0x58] sm:$0xff] %v396_v29 }
  0x26   :  { %399 = vst [vmem:[%s605_s1 + $0x60] sm:$0xff] %v398_v30  ;;  %401 = vst [vmem:[%s605_s1 + $0x68] sm:$0xff] %v400_v31 }
  0x27   :  { %v402_v32 = vld [vmem:[#allocation1 + $0x70] sm:$0xff] }
  0x28   :  { %403 = vst [vmem:[%s605_s1 + $0x70] sm:$0xff] %v402_v32 }
  0x29   :  { %v404_v33 = vld [vmem:[#allocation1 + $0x78] sm:$0xff] }
  0x2a   :  { %405 = vst [vmem:[%s605_s1 + $0x78] sm:$0xff] %v404_v33 }

// kernel: reverse.20
= control target key start
LH: loop header
LB: loop body
LE: loop exit
PB: predicated region body
PF: predicated region fallthrough
CT: control target
= control target key end

     0   :  { %s80_s0 = inlined_call_operand.vmem [shape: f32[16,2,8,3], index: 0, kind: input, shape index: {}]   ;;  %s81_s1 = inlined_call_operand.vmem [shape: f32[16,2,8,3], index: 1, kind: output, shape index: {}]  }
   0x1   :  { %v24_v0 = vld [vmem:[%s80_s0 + $0x10] sm:$0xff]  ;;  %v25_v1 = vld [vmem:[%s80_s0 + $0x28] sm:$0xff]  ;;  %v29_v3 = vld [vmem:[%s80_s0 + $0x20] sm:$0xff] }
   0x2   :  { %v27_v2 = vld [vmem:[%s80_s0 + $0x8] sm:$0xff]  ;;  %4 = vst [vmem:[%s81_s1] sm:$0xff] %v24_v0  ;;  %26 = vst [vmem:[%s81_s1 + $0x18] sm:$0xff] %v25_v1  ;;  %v17_v4 = vld [vmem:[%s80_s0] sm:$0xff] }
   0x3   :  { %28 = vst [vmem:[%s81_s1 + $0x8] sm:$0xff] %v27_v2  ;;  %v32_v5 = vld [vmem:[%s80_s0 + $0x18] sm:$0xff]  ;;  %30 = vst [vmem:[%s81_s1 + $0x20] sm:$0xff] %v29_v3 }
   0x4   :  { %31 = vst [vmem:[%s81_s1 + $0x10] sm:$0xff] %v17_v4  ;;  %33 = vst [vmem:[%s81_s1 + $0x28] sm:$0xff] %v32_v5 }

// kernel: _lambda_.13
= control target key start
LH: loop header
LB: loop body
LE: loop exit
PB: predicated region body
PF: predicated region fallthrough
CT: control target
= control target key end

     0   :  { %v1027_v2 = vmov 0.0   ;;  %vm23_vm0 = vcmask 64512   ;;  %v1028_v4 = vmov 1983009808   ;;  %v298_v6 = vlaneseq  ;;  %s1670_s0 = inlined_call_operand.vmem [shape: f32[8,160], index: 0, kind: input, shape index: {}]   ;;  %s1671_s3 = inlined_call_operand.vmem [shape: f32[288,576], index: 3, kind: input, shape index: {}]   ;;  %s1672_s1 = inlined_call_operand.vmem [shape: f32[16,8], index: 1, kind: input, shape index: {}]   ;;  %s1673_s2 = inlined_call_operand.vmem [shape: f32[2,288], index: 2, kind: input, shape index: {}]   ;;  %s1674_s4 = inlined_call_operand.vmem [shape: f32[16,160], index: 4, kind: output, shape index: {0}]   ;;  %s1675_s5 = inlined_call_operand.vmem [shape: f32[2,576], index: 5, kind: output, shape index: {1}]  }
   0x1   :  { %v22_v0 = vld [vmem:[%s1670_s0 + $0x8] sm:$0xff]  ;;  %v21_v1 = vld [vmem:[%s1670_s0] sm:$0xff]  ;;  %94 = vmatprep.mubr.f32.mxu0 %v1027_v2  ;;  %v296_v5 = vunpack.c.l.s4 %v1028_v4  ;;  %v119_v7 = vld [vmem:[%s1671_s3 + $0x30] sm:$0xff]  ;;  %vm108_vm1 = vcmask 261120   ;;  %vm1030_vm2 = vmmov 0   ;;  %vm770_vm3 = vcmask 517120  }
   0x2   :  { %v114_v3 = vld [vmem:[%s1671_s3 + $0x8] sm:$0xff]  ;;  %30 = vmatprep.subr.mxu0 %v22_v0  ;;  %v279_v9 = vld [vmem:[%s1671_s3 + $0x530] sm:$0xff]  ;;  %v19_v12 = vld [vmem:[%s1672_s1] sm:$0xff]  ;;  %v299_v20 = vshrl.u32 %v298_v6, 7 }
   0x3   :  { %v274_v8 = vld [vmem:[%s1671_s3 + $0x508] sm:$0xff]  ;;  %31 = vmatpush1.msra.mxu0 %v21_v1  ;;  %v836_v10 = vpack.c.bf16 %v119_v7, %v114_v3  ;;  %v113_v13 = vld [vmem:[%s1671_s3] sm:$0xff]  ;;  %v124_v18 = vld [vmem:[%s1671_s3 + $0x58] sm:$0xff]  ;;  %v297_v19 = vunpack.c.0.s8 %v296_v5 }
   0x4   :  { %v900_v11 = vpack.c.bf16 %v279_v9, %v274_v8  ;;  %v118_v14 = vld [vmem:[%s1671_s3 + $0x28] sm:$0xff]  ;;  %780 = vmatmul.mubr.msk.f32.vlgmr.msra.gmra.mrb[0].mxu0 %vm23_vm0, %v19_v12  ;;  %v273_v16 = vld [vmem:[%s1671_s3 + $0x500] sm:$0xff]  ;;  %v284_v23 = vld [vmem:[%s1671_s3 + $0x558] sm:$0xff] }
   0x5   :  { %v838_v15 = vpack.c.bf16 %v118_v14, %v113_v13  ;;  %v278_v17 = vld [vmem:[%s1671_s3 + $0x528] sm:$0xff]  ;;  %837 = vmatprep.subr.bf16.mxu1 %v836_v10  ;;  %v129_v22 = vld [vmem:[%s1671_s3 + $0x80] sm:$0xff]  ;;  %100 = vmatprep.mubr.f32.mxu0 %v1027_v2  ;;  %v123_v28 = vld [vmem:[%s1671_s3 + $0x50] sm:$0xff]  ;;  %v1136_v38 = vsub.s32 %v297_v19, %v299_v20 }
   0x6   :  { %901 = vmatprep.subr.bf16.mxu0 %v900_v11  ;;  %v902_v21 = vpack.c.bf16 %v278_v17, %v273_v16  ;;  %v289_v24 = vld [vmem:[%s1671_s3 + $0x580] sm:$0xff]  ;;  %v840_v25 = vpack.c.bf16 %v129_v22, %v124_v18  ;;  %v20_v27 = vld [vmem:[%s1672_s1 + $0x8] sm:$0xff]  ;;  %v128_v29 = vld [vmem:[%s1671_s3 + $0x78] sm:$0xff] }
   0x7   :  { %839 = vmatpush1.bf16.msra.mxu1 %v838_v15  ;;  %v904_v26 = vpack.c.bf16 %v289_v24, %v284_v23  ;;  %v842_v30 = vpack.c.bf16 %v128_v29, %v123_v28  ;;  %v283_v31 = vld [vmem:[%s1671_s3 + $0x550] sm:$0xff]  ;;  %v288_v32 = vld [vmem:[%s1671_s3 + $0x578] sm:$0xff]  ;;  %v134_v33 = vld [vmem:[%s1671_s3 + $0xa8] sm:$0xff] }
   0x8   :  { %903 = vmatpush1.bf16.msra.mxu0 %v902_v21  ;;  %841 = vmatprep.subr.bf16.mxu1 %v840_v25  ;;  %v906_v34 = vpack.c.bf16 %v288_v32, %v283_v31  ;;  %v139_v35 = vld [vmem:[%s1671_s3 + $0xd0] sm:$0xff]  ;;  %v116_v36 = vld [vmem:[%s1671_s3 + $0x18] sm:$0xff]  ;;  %v121_v37 = vld [vmem:[%s1671_s3 + $0x40] sm:$0xff] }
   0x9   :  { %905 = vmatprep.subr.bf16.mxu0 %v904_v26  ;;  %781 = vmatmul.mubr.msk.f32.gmra.mrb[2].mxu0 %vm23_vm0, %v20_v27  ;;  %v844_v39 = vpack.c.bf16 %v139_v35, %v134_v33  ;;  %v908_v40 = vpack.c.bf16 %v121_v37, %v116_v36  ;;  %v133_v41 = vld [vmem:[%s1671_s3 + $0xa0] sm:$0xff]  ;;  %v138_v42 = vld [vmem:[%s1671_s3 + $0xc8] sm:$0xff]  ;;  %v115_v46 = vld [vmem:[%s1671_s3 + $0x10] sm:$0xff] }
   0xa   :  { %v112_v43 = vld [vmem:[%s1673_s2] sm:$0x3f]  ;;  %449 = vmatprep.mubr.f32.mxu0 %v1027_v2  ;;  %v846_v44 = vpack.c.bf16 %v138_v42, %v133_v41  ;;  %v120_v47 = vld [vmem:[%s1671_s3 + $0x38] sm:$0xff]  ;;  %v126_v52 = vld [vmem:[%s1671_s3 + $0x68] sm:$0xff] }
   0xb   :  { %843 = vmatpush1.bf16.msra.mxu1 %v842_v30  ;;  %v294_v45 = vcombine.high %v112_v43, %v112_v43  ;;  %v144_v48 = vld [vmem:[%s1671_s3 + $0xf8] sm:$0xff]  ;;  %v1159_v49 = vrot.slane %v112_v43, %v1136_v38  ;;  %v910_v50 = vpack.c.bf16 %v120_v47, %v115_v46  ;;  %v149_v51 = vld [vmem:[%s1671_s3 + $0x120] sm:$0xff]  ;;  %v131_v53 = vld [vmem:[%s1671_s3 + $0x90] sm:$0xff] }
   0xc   :  { %907 = vmatpush1.bf16.msra.mxu0 %v906_v34  ;;  %845 = vmatprep.subr.bf16.mxu1 %v844_v39  ;;  %v848_v55 = vpack.c.bf16 %v149_v51, %v144_v48  ;;  %v912_v56 = vpack.c.bf16 %v131_v53, %v126_v52  ;;  %v143_v57 = vld [vmem:[%s1671_s3 + $0xf0] sm:$0xff]  ;;  %v148_v58 = vld [vmem:[%s1671_s3 + $0x118] sm:$0xff]  ;;  %v125_v59 = vld [vmem:[%s1671_s3 + $0x60] sm:$0xff] }
   0xd   :  { %909 = vmatprep.subr.bf16.mxu0 %v908_v40  ;;  %v1171_v54 = vrot.slane %v294_v45, %v1136_v38  ;;  %v1184_v60 = vcombine.high %v1159_v49, %v1159_v49  ;;  %v130_v61 = vld [vmem:[%s1671_s3 + $0x88] sm:$0xff]  ;;  %v159_v63 = vld [vmem:[%s1671_s3 + $0x170] sm:$0xff]  ;;  %v850_v0 = vpack.c.bf16 %v148_v58, %v143_v57  ;;  %v136_v1 = vld [vmem:[%s1671_s3 + $0xb8] sm:$0xff] }
   0xe   :  { %v154_v62 = vld [vmem:[%s1671_s3 + $0x148] sm:$0xff]  ;;  %v141_v3 = vld [vmem:[%s1671_s3 + $0xe0] sm:$0xff]  ;;  %v914_v4 = vpack.c.bf16 %v130_v61, %v125_v59  ;;  %v135_v8 = vld [vmem:[%s1671_s3 + $0xb0] sm:$0xff] }
   0xf   :  { %847 = vmatpush1.bf16.msra.mxu1 %v846_v44  ;;  %782 = vmatmul.mubr.msk.f32.vlgmr.msra.gmra.mrb[4].mxu0 %vm108_vm1, %v1171_v54  ;;  %v852_v5 = vpack.c.bf16 %v159_v63, %v154_v62  ;;  %v153_v6 = vld [vmem:[%s1671_s3 + $0x140] sm:$0xff]  ;;  %v158_v7 = vld [vmem:[%s1671_s3 + $0x168] sm:$0xff]  ;;  %v916_v9 = vpack.c.bf16 %v141_v3, %v136_v1  ;;  %v140_v10 = vld [vmem:[%s1671_s3 + $0xd8] sm:$0xff] }
  0x10   :  { %911 = vmatpush1.bf16.msra.mxu0 %v910_v50  ;;  %849 = vmatprep.subr.bf16.mxu1 %v848_v55  ;;  %v164_v11 = vld [vmem:[%s1671_s3 + $0x198] sm:$0xff]  ;;  %v169_v12 = vld [vmem:[%s1671_s3 + $0x1c0] sm:$0xff]  ;;  %v146_v13 = vld [vmem:[%s1671_s3 + $0x108] sm:$0xff]  ;;  %v854_v15 = vpack.c.bf16 %v158_v7, %v153_v6  ;;  %v918_v16 = vpack.c.bf16 %v140_v10, %v135_v8 }
  0x11   :  { %913 = vmatprep.subr.bf16.mxu0 %v912_v56  ;;  %378 = vmatprep.mubr.f32.mxu1 %v1184_v60  ;;  %v151_v14 = vld [vmem:[%s1671_s3 + $0x130] sm:$0xff]  ;;  %v856_v17 = vpack.c.bf16 %v169_v12, %v164_v11  ;;  %v168_v19 = vld [vmem:[%s1671_s3 + $0x1b8] sm:$0xff]  ;;  %v145_v20 = vld [vmem:[%s1671_s3 + $0x100] sm:$0xff] }
  0x12   :  { %520 = vmatprep.mubr.f32.mxu0 %v1184_v60  ;;  %v163_v18 = vld [vmem:[%s1671_s3 + $0x190] sm:$0xff]  ;;  %v920_v21 = vpack.c.bf16 %v151_v14, %v146_v13  ;;  %v150_v22 = vld [vmem:[%s1671_s3 + $0x128] sm:$0xff]  ;;  %v156_v25 = vld [vmem:[%s1671_s3 + $0x158] sm:$0xff] }
  0x13   :  { %851 = vmatpush1.bf16.msra.mxu1 %v850_v0  ;;  %v174_v23 = vld [vmem:[%s1671_s3 + $0x1e8] sm:$0xff]  ;;  %v179_v24 = vld [vmem:[%s1671_s3 + $0x210] sm:$0xff]  ;;  %v161_v26 = vld [vmem:[%s1671_s3 + $0x180] sm:$0xff]  ;;  %v858_v27 = vpack.c.bf16 %v168_v19, %v163_v18  ;;  %v922_v28 = vpack.c.bf16 %v150_v22, %v145_v20 }
  0x14   :  { %915 = vmatpush1.bf16.msra.mxu0 %v914_v4  ;;  %853 = vmatprep.subr.bf16.mxu1 %v852_v5  ;;  %v860_v29 = vpack.c.bf16 %v179_v24, %v174_v23  ;;  %v173_v30 = vld [vmem:[%s1671_s3 + $0x1e0] sm:$0xff]  ;;  %v178_v31 = vld [vmem:[%s1671_s3 + $0x208] sm:$0xff]  ;;  %v155_v32 = vld [vmem:[%s1671_s3 + $0x150] sm:$0xff]  ;;  %v924_v33 = vpack.c.bf16 %v161_v26, %v156_v25 }
  0x15   :  { %917 = vmatprep.subr.bf16.mxu0 %v916_v9  ;;  %v160_v34 = vld [vmem:[%s1671_s3 + $0x178] sm:$0xff]  ;;  %v189_v36 = vld [vmem:[%s1671_s3 + $0x260] sm:$0xff]  ;;  %v166_v37 = vld [vmem:[%s1671_s3 + $0x1a8] sm:$0xff]  ;;  %v862_v40 = vpack.c.bf16 %v178_v31, %v173_v30 }
  0x16   :  { %v184_v35 = vld [vmem:[%s1671_s3 + $0x238] sm:$0xff]  ;;  %v171_v39 = vld [vmem:[%s1671_s3 + $0x1d0] sm:$0xff]  ;;  %v926_v41 = vpack.c.bf16 %v160_v34, %v155_v32  ;;  %v165_v45 = vld [vmem:[%s1671_s3 + $0x1a0] sm:$0xff] }
  0x17   :  { %855 = vmatpush1.bf16.msra.mxu1 %v854_v15  ;;  %v864_v42 = vpack.c.bf16 %v189_v36, %v184_v35  ;;  %v183_v43 = vld [vmem:[%s1671_s3 + $0x230] sm:$0xff]  ;;  %v188_v44 = vld [vmem:[%s1671_s3 + $0x258] sm:$0xff]  ;;  %v928_v46 = vpack.c.bf16 %v171_v39, %v166_v37  ;;  %v170_v47 = vld [vmem:[%s1671_s3 + $0x1c8] sm:$0xff] }
  0x18   :  { %919 = vmatpush1.bf16.msra.mxu0 %v918_v16  ;;  %857 = vmatprep.subr.bf16.mxu1 %v856_v17  ;;  %v194_v48 = vld [vmem:[%s1671_s3 + $0x288] sm:$0xff]  ;;  %v199_v50 = vld [vmem:[%s1671_s3 + $0x2b0] sm:$0xff]  ;;  %v176_v51 = vld [vmem:[%s1671_s3 + $0x1f8] sm:$0xff]  ;;  %v866_v53 = vpack.c.bf16 %v188_v44, %v183_v43  ;;  %v930_v55 = vpack.c.bf16 %v170_v47, %v165_v45 }
  0x19   :  { %921 = vmatprep.subr.bf16.mxu0 %v920_v21  ;;  %v181_v52 = vld [vmem:[%s1671_s3 + $0x220] sm:$0xff]  ;;  %v868_v56 = vpack.c.bf16 %v199_v50, %v194_v48  ;;  %v198_v58 = vld [vmem:[%s1671_s3 + $0x2a8] sm:$0xff]  ;;  %v175_v59 = vld [vmem:[%s1671_s3 + $0x1f0] sm:$0xff] }
  0x1a   :  { %v193_v57 = vld [vmem:[%s1671_s3 + $0x280] sm:$0xff]  ;;  %v932_v61 = vpack.c.bf16 %v181_v52, %v176_v51  ;;  %v180_v62 = vld [vmem:[%s1671_s3 + $0x218] sm:$0xff]  ;;  %v186_v1 = vld [vmem:[%s1671_s3 + $0x248] sm:$0xff] }
  0x1b   :  { %859 = vmatpush1.bf16.msra.mxu1 %v858_v27  ;;  %v204_v63 = vld [vmem:[%s1671_s3 + $0x2d8] sm:$0xff]  ;;  %v209_v0 = vld [vmem:[%s1671_s3 + $0x300] sm:$0xff]  ;;  %v191_v3 = vld [vmem:[%s1671_s3 + $0x270] sm:$0xff]  ;;  %v870_v4 = vpack.c.bf16 %v198_v58, %v193_v57  ;;  %v934_v5 = vpack.c.bf16 %v180_v62, %v175_v59 }
  0x1c   :  { %923 = vmatpush1.bf16.msra.mxu0 %v922_v28  ;;  %861 = vmatprep.subr.bf16.mxu1 %v860_v29  ;;  %v872_v6 = vpack.c.bf16 %v209_v0, %v204_v63  ;;  %v203_v7 = vld [vmem:[%s1671_s3 + $0x2d0] sm:$0xff]  ;;  %v208_v8 = vld [vmem:[%s1671_s3 + $0x2f8] sm:$0xff]  ;;  %v185_v9 = vld [vmem:[%s1671_s3 + $0x240] sm:$0xff]  ;;  %v936_v10 = vpack.c.bf16 %v191_v3, %v186_v1 }
  0x1d   :  { %925 = vmatprep.subr.bf16.mxu0 %v924_v33  ;;  %v190_v11 = vld [vmem:[%s1671_s3 + $0x268] sm:$0xff]  ;;  %v219_v13 = vld [vmem:[%s1671_s3 + $0x350] sm:$0xff]  ;;  %v196_v14 = vld [vmem:[%s1671_s3 + $0x298] sm:$0xff]  ;;  %v874_v16 = vpack.c.bf16 %v208_v8, %v203_v7 }
  0x1e   :  { %v214_v12 = vld [vmem:[%s1671_s3 + $0x328] sm:$0xff]  ;;  %v201_v15 = vld [vmem:[%s1671_s3 + $0x2c0] sm:$0xff]  ;;  %v938_v17 = vpack.c.bf16 %v190_v11, %v185_v9  ;;  %v195_v21 = vld [vmem:[%s1671_s3 + $0x290] sm:$0xff] }
  0x1f   :  { %863 = vmatpush1.bf16.msra.mxu1 %v862_v40  ;;  %v876_v18 = vpack.c.bf16 %v219_v13, %v214_v12  ;;  %v213_v19 = vld [vmem:[%s1671_s3 + $0x320] sm:$0xff]  ;;  %v218_v20 = vld [vmem:[%s1671_s3 + $0x348] sm:$0xff]  ;;  %v940_v22 = vpack.c.bf16 %v201_v15, %v196_v14  ;;  %v200_v23 = vld [vmem:[%s1671_s3 + $0x2b8] sm:$0xff] }
  0x20   :  { %927 = vmatpush1.bf16.msra.mxu0 %v926_v41  ;;  %865 = vmatprep.subr.bf16.mxu1 %v864_v42  ;;  %v224_v24 = vld [vmem:[%s1671_s3 + $0x378] sm:$0xff]  ;;  %v229_v25 = vld [vmem:[%s1671_s3 + $0x3a0] sm:$0xff]  ;;  %v206_v26 = vld [vmem:[%s1671_s3 + $0x2e8] sm:$0xff]  ;;  %v878_v28 = vpack.c.bf16 %v218_v20, %v213_v19  ;;  %v942_v29 = vpack.c.bf16 %v200_v23, %v195_v21 }
  0x21   :  { %929 = vmatprep.subr.bf16.mxu0 %v928_v46  ;;  %v211_v27 = vld [vmem:[%s1671_s3 + $0x310] sm:$0xff]  ;;  %v880_v30 = vpack.c.bf16 %v229_v25, %v224_v24  ;;  %v228_v32 = vld [vmem:[%s1671_s3 + $0x398] sm:$0xff]  ;;  %v205_v33 = vld [vmem:[%s1671_s3 + $0x2e0] sm:$0xff] }
  0x22   :  { %v223_v31 = vld [vmem:[%s1671_s3 + $0x370] sm:$0xff]  ;;  %v944_v34 = vpack.c.bf16 %v211_v27, %v206_v26  ;;  %v210_v35 = vld [vmem:[%s1671_s3 + $0x308] sm:$0xff]  ;;  %v216_v39 = vld [vmem:[%s1671_s3 + $0x338] sm:$0xff] }
  0x23   :  { %867 = vmatpush1.bf16.msra.mxu1 %v866_v53  ;;  %v234_v36 = vld [vmem:[%s1671_s3 + $0x3c8] sm:$0xff]  ;;  %v239_v37 = vld [vmem:[%s1671_s3 + $0x3f0] sm:$0xff]  ;;  %v221_v40 = vld [vmem:[%s1671_s3 + $0x360] sm:$0xff]  ;;  %v882_v41 = vpack.c.bf16 %v228_v32, %v223_v31  ;;  %v946_v42 = vpack.c.bf16 %v210_v35, %v205_v33 }
  0x24   :  { %931 = vmatpush1.bf16.msra.mxu0 %v930_v55  ;;  %869 = vmatprep.subr.bf16.mxu1 %v868_v56  ;;  %v884_v43 = vpack.c.bf16 %v239_v37, %v234_v36  ;;  %v233_v44 = vld [vmem:[%s1671_s3 + $0x3c0] sm:$0xff]  ;;  %v238_v45 = vld [vmem:[%s1671_s3 + $0x3e8] sm:$0xff]  ;;  %v215_v46 = vld [vmem:[%s1671_s3 + $0x330] sm:$0xff]  ;;  %v948_v47 = vpack.c.bf16 %v221_v40, %v216_v39 }
  0x25   :  { %933 = vmatprep.subr.bf16.mxu0 %v932_v61  ;;  %v220_v48 = vld [vmem:[%s1671_s3 + $0x358] sm:$0xff]  ;;  %v249_v51 = vld [vmem:[%s1671_s3 + $0x440] sm:$0xff]  ;;  %v226_v52 = vld [vmem:[%s1671_s3 + $0x388] sm:$0xff]  ;;  %v886_v55 = vpack.c.bf16 %v238_v45, %v233_v44 }
  0x26   :  { %v244_v50 = vld [vmem:[%s1671_s3 + $0x418] sm:$0xff]  ;;  %v231_v53 = vld [vmem:[%s1671_s3 + $0x3b0] sm:$0xff]  ;;  %v950_v56 = vpack.c.bf16 %v220_v48, %v215_v46  ;;  %v225_v61 = vld [vmem:[%s1671_s3 + $0x380] sm:$0xff] }
  0x27   :  { %871 = vmatpush1.bf16.msra.mxu1 %v870_v4  ;;  %v888_v57 = vpack.c.bf16 %v249_v51, %v244_v50  ;;  %v243_v58 = vld [vmem:[%s1671_s3 + $0x410] sm:$0xff]  ;;  %v248_v59 = vld [vmem:[%s1671_s3 + $0x438] sm:$0xff]  ;;  %v952_v62 = vpack.c.bf16 %v231_v53, %v226_v52  ;;  %v230_v63 = vld [vmem:[%s1671_s3 + $0x3a8] sm:$0xff] }
  0x28   :  { %935 = vmatpush1.bf16.msra.mxu0 %v934_v5  ;;  %873 = vmatprep.subr.bf16.mxu1 %v872_v6  ;;  %v254_v0 = vld [vmem:[%s1671_s3 + $0x468] sm:$0xff]  ;;  %v259_v1 = vld [vmem:[%s1671_s3 + $0x490] sm:$0xff]  ;;  %v236_v3 = vld [vmem:[%s1671_s3 + $0x3d8] sm:$0xff]  ;;  %v890_v5 = vpack.c.bf16 %v248_v59, %v243_v58  ;;  %v954_v6 = vpack.c.bf16 %v230_v63, %v225_v61 }
  0x29   :  { %937 = vmatprep.subr.bf16.mxu0 %v936_v10  ;;  %v241_v4 = vld [vmem:[%s1671_s3 + $0x400] sm:$0xff]  ;;  %v892_v7 = vpack.c.bf16 %v259_v1, %v254_v0  ;;  %v258_v9 = vld [vmem:[%s1671_s3 + $0x488] sm:$0xff]  ;;  %v235_v10 = vld [vmem:[%s1671_s3 + $0x3d0] sm:$0xff] }
  0x2a   :  { %v253_v8 = vld [vmem:[%s1671_s3 + $0x460] sm:$0xff]  ;;  %v956_v11 = vpack.c.bf16 %v241_v4, %v236_v3  ;;  %v240_v12 = vld [vmem:[%s1671_s3 + $0x3f8] sm:$0xff]  ;;  %v246_v15 = vld [vmem:[%s1671_s3 + $0x428] sm:$0xff] }
  0x2b   :  { %875 = vmatpush1.bf16.msra.mxu1 %v874_v16  ;;  %v264_v13 = vld [vmem:[%s1671_s3 + $0x4b8] sm:$0xff]  ;;  %v269_v14 = vld [vmem:[%s1671_s3 + $0x4e0] sm:$0xff]  ;;  %v251_v16 = vld [vmem:[%s1671_s3 + $0x450] sm:$0xff] }
  0x2c   :  { %939 = vmatpush1.bf16.msra.mxu0 %v938_v17  ;;  %877 = vmatprep.subr.bf16.mxu1 %v876_v18  ;;  %v894_v17 = vpack.c.bf16 %v258_v9, %v253_v8  ;;  %v958_v18 = vpack.c.bf16 %v240_v12, %v235_v10  ;;  %v896_v19 = vpack.c.bf16 %v269_v14, %v264_v13  ;;  %v263_v20 = vld [vmem:[%s1671_s3 + $0x4b0] sm:$0xff]  ;;  %v268_v21 = vld [vmem:[%s1671_s3 + $0x4d8] sm:$0xff]  ;;  %v250_v24 = vld [vmem:[%s1671_s3 + $0x448] sm:$0xff] }
  0x2d   :  { %941 = vmatprep.subr.bf16.mxu0 %v940_v22  ;;  %v245_v22 = vld [vmem:[%s1671_s3 + $0x420] sm:$0xff]  ;;  %v960_v23 = vpack.c.bf16 %v251_v16, %v246_v15  ;;  %v202_v26 = vld [vmem:[%s1671_s3 + $0x2c8] sm:$0xff]  ;;  %v256_v27 = vld [vmem:[%s1671_s3 + $0x478] sm:$0xff] }
  0x2e   :  { %v197_v25 = vld [vmem:[%s1671_s3 + $0x2a0] sm:$0xff]  ;;  %v255_v32 = vld [vmem:[%s1671_s3 + $0x470] sm:$0xff]  ;;  %v260_v36 = vld [vmem:[%s1671_s3 + $0x498] sm:$0xff] }
  0x2f   :  { %879 = vmatpush1.bf16.msra.mxu1 %v878_v28  ;;  %v261_v28 = vld [vmem:[%s1671_s3 + $0x4a0] sm:$0xff]  ;;  %v980_v31 = vpack.c.bf16 %v202_v26, %v197_v25  ;;  %v207_v37 = vld [vmem:[%s1671_s3 + $0x2f0] sm:$0xff]  ;;  %v212_v39 = vld [vmem:[%s1671_s3 + $0x318] sm:$0xff] }
  0x30   :  { %943 = vmatpush1.bf16.msra.mxu0 %v942_v29  ;;  %881 = vmatprep.subr.bf16.mxu1 %v880_v30  ;;  %v898_v29 = vpack.c.bf16 %v268_v21, %v263_v20  ;;  %v962_v30 = vpack.c.bf16 %v250_v24, %v245_v22  ;;  %v117_v33 = vld [vmem:[%s1671_s3 + $0x20] sm:$0xff]  ;;  %v964_v35 = vpack.c.bf16 %v261_v28, %v256_v27  ;;  %v266_v40 = vld [vmem:[%s1671_s3 + $0x4c8] sm:$0xff]  ;;  %v127_v46 = vld [vmem:[%s1671_s3 + $0x70] sm:$0xff] }
  0x31   :  { %945 = vmatprep.subr.bf16.mxu0 %v944_v34  ;;  %v122_v34 = vld [vmem:[%s1671_s3 + $0x48] sm:$0xff]  ;;  %v984_v44 = vpack.c.bf16 %v212_v39, %v207_v37  ;;  %v265_v45 = vld [vmem:[%s1671_s3 + $0x4c0] sm:$0xff]  ;;  %v276_v53 = vld [vmem:[%s1671_s3 + $0x518] sm:$0xff] }
  0x32   :  { %v270_v50 = vld [vmem:[%s1671_s3 + $0x4e8] sm:$0xff]  ;;  %v217_v51 = vld [vmem:[%s1671_s3 + $0x340] sm:$0xff]  ;;  %v275_v59 = vld [vmem:[%s1671_s3 + $0x510] sm:$0xff] }
  0x33   :  { %883 = vmatpush1.bf16.msra.mxu1 %v882_v41  ;;  %v271_v41 = vld [vmem:[%s1671_s3 + $0x4f0] sm:$0xff]  ;;  %v222_v52 = vld [vmem:[%s1671_s3 + $0x368] sm:$0xff]  ;;  %v137_v61 = vld [vmem:[%s1671_s3 + $0xc0] sm:$0xff] }
  0x34   :  { %947 = vmatpush1.bf16.msra.mxu0 %v946_v42  ;;  %885 = vmatprep.subr.bf16.mxu1 %v884_v43  ;;  %v982_v42 = vpack.c.bf16 %v122_v34, %v117_v33  ;;  %v966_v43 = vpack.c.bf16 %v260_v36, %v255_v32  ;;  %v968_v48 = vpack.c.bf16 %v271_v41, %v266_v40  ;;  %v227_v0 = vld [vmem:[%s1671_s3 + $0x390] sm:$0xff]  ;;  %v232_v1 = vld [vmem:[%s1671_s3 + $0x3b8] sm:$0xff]  ;;  %v286_v3 = vld [vmem:[%s1671_s3 + $0x568] sm:$0xff] }
  0x35   :  { %949 = vmatprep.subr.bf16.mxu0 %v948_v47  ;;  %v132_v47 = vld [vmem:[%s1671_s3 + $0x98] sm:$0xff]  ;;  %v988_v58 = vpack.c.bf16 %v222_v52, %v217_v51  ;;  %v291_v4 = vld [vmem:[%s1671_s3 + $0x590] sm:$0xff]  ;;  %v285_v8 = vld [vmem:[%s1671_s3 + $0x560] sm:$0xff] }
  0x36   :  { %v147_v9 = vld [vmem:[%s1671_s3 + $0x110] sm:$0xff]  ;;  %v152_v10 = vld [vmem:[%s1671_s3 + $0x138] sm:$0xff]  ;;  %v290_v12 = vld [vmem:[%s1671_s3 + $0x588] sm:$0xff] }
  0x37   :  { %887 = vmatpush1.bf16.msra.mxu1 %v886_v55  ;;  %v281_v55 = vld [vmem:[%s1671_s3 + $0x540] sm:$0xff]  ;;  %v242_v14 = vld [vmem:[%s1671_s3 + $0x408] sm:$0xff]  ;;  %v994_v15 = vpack.c.bf16 %v152_v10, %v147_v9  ;;  %v978_v16 = vpack.c.bf16 %v290_v12, %v285_v8  ;;  %v247_v20 = vld [vmem:[%s1671_s3 + $0x430] sm:$0xff] }
  0x38   :  { %951 = vmatpush1.bf16.msra.mxu0 %v950_v56  ;;  %889 = vmatprep.subr.bf16.mxu1 %v888_v57  ;;  %v986_v56 = vpack.c.bf16 %v132_v47, %v127_v46  ;;  %v970_v57 = vpack.c.bf16 %v270_v50, %v265_v45  ;;  %v972_v63 = vpack.c.bf16 %v281_v55, %v276_v53  ;;  %v237_v13 = vld [vmem:[%s1671_s3 + $0x3e0] sm:$0xff]  ;;  %v252_v21 = vld [vmem:[%s1671_s3 + $0x458] sm:$0xff]  ;;  %v167_v26 = vld [vmem:[%s1671_s3 + $0x1b0] sm:$0xff] }
  0x39   :  { %953 = vmatprep.subr.bf16.mxu0 %v952_v62  ;;  %v142_v62 = vld [vmem:[%s1671_s3 + $0xe8] sm:$0xff]  ;;  %v277_v22 = vld [vmem:[%s1671_s3 + $0x520] sm:$0xff]  ;;  %v1000_v25 = vpack.c.bf16 %v252_v21, %v247_v20  ;;  %v172_v27 = vld [vmem:[%s1671_s3 + $0x1d8] sm:$0xff] }
  0x3a   :  { %v257_v28 = vld [vmem:[%s1671_s3 + $0x480] sm:$0xff]  ;;  %v287_v32 = vld [vmem:[%s1671_s3 + $0x570] sm:$0xff]  ;;  %v292_v33 = vld [vmem:[%s1671_s3 + $0x598] sm:$0xff]  ;;  %v1002_v34 = vpack.c.bf16 %v172_v27, %v167_v26 }
  0x3b   :  { %891 = vmatpush1.bf16.msra.mxu1 %v890_v5  ;;  %v990_v5 = vpack.c.bf16 %v142_v62, %v137_v61  ;;  %v177_v36 = vld [vmem:[%s1671_s3 + $0x200] sm:$0xff]  ;;  %v182_v37 = vld [vmem:[%s1671_s3 + $0x228] sm:$0xff]  ;;  %v1016_v39 = vpack.c.bf16 %v292_v33, %v287_v32  ;;  %v267_v40 = vld [vmem:[%s1671_s3 + $0x4d0] sm:$0xff] }
  0x3c   :  { %955 = vmatpush1.bf16.msra.mxu0 %v954_v6  ;;  %893 = vmatprep.subr.bf16.mxu1 %v892_v7  ;;  %v992_v7 = vpack.c.bf16 %v232_v1, %v227_v0  ;;  %v272_v41 = vld [vmem:[%s1671_s3 + $0x4f8] sm:$0xff] }
  0x3d   :  { %957 = vmatprep.subr.bf16.mxu0 %v956_v11  ;;  %v976_v11 = vpack.c.bf16 %v291_v4, %v286_v3  ;;  %v192_v45 = vld [vmem:[%s1671_s3 + $0x278] sm:$0xff] }
  0x3f   :  { %895 = vmatpush1.bf16.msra.mxu1 %v894_v17  ;;  %v996_v17 = vpack.c.bf16 %v242_v14, %v237_v13 }
  0x40   :  { %959 = vmatpush1.bf16.msra.mxu0 %v958_v18  ;;  %897 = vmatprep.subr.bf16.mxu1 %v896_v19  ;;  %v157_v18 = vld [vmem:[%s1671_s3 + $0x160] sm:$0xff]  ;;  %v162_v19 = vld [vmem:[%s1671_s3 + $0x188] sm:$0xff] }
  0x41   :  { %961 = vmatprep.subr.bf16.mxu0 %v960_v23  ;;  %v282_v23 = vld [vmem:[%s1671_s3 + $0x548] sm:$0xff]  ;;  %v998_v24 = vpack.c.bf16 %v162_v19, %v157_v18 }
  0x43   :  { %899 = vmatpush1.bf16.msra.mxu1 %v898_v29  ;;  %v1013_v29 = vpack.c.bf16 %v282_v23, %v277_v22 }
  0x44   :  { %963 = vmatpush1.bf16.msra.mxu0 %v962_v30  ;;  %981 = vmatprep.subr.bf16.mxu1 %v980_v31  ;;  %v262_v30 = vld [vmem:[%s1671_s3 + $0x4a8] sm:$0xff]  ;;  %v1029_v31 = vmov 0.0|0.0  }
  0x45   :  { %965 = vmatprep.subr.bf16.mxu0 %v964_v35  ;;  %v1004_v35 = vpack.c.bf16 %v262_v30, %v257_v28 }
  0x46   :  { %379 = vmatmul.mubr.f32.vlgmr.msra.gmra.mrb[0].mxu1 %v1159_v49 }
  0x47   :  { %983 = vmatpush3.bf16.msra.mxu1 %v982_v42  ;;  %662 = vmatprep.mubr.f32.mxu1 %v1184_v60  ;;  %v280_v60 = vld [vmem:[%s1671_s3 + $0x538] sm:$0xff]  ;;  %v1006_v42 = vpack.c.bf16 %v182_v37, %v177_v36 }
  0x48   :  { %967 = vmatpush1.bf16.msra.mxu0 %v966_v43  ;;  %985 = vmatprep.subr.bf16.mxu1 %v984_v44  ;;  %v974_v6 = vpack.c.bf16 %v280_v60, %v275_v59  ;;  %v1008_v43 = vpack.c.bf16 %v272_v41, %v267_v40  ;;  %v187_v44 = vld [vmem:[%s1671_s3 + $0x250] sm:$0xff] }
  0x49   :  { %969 = vmatprep.subr.bf16.mxu0 %v968_v48  ;;  %v1010_v46 = vpack.c.bf16 %v192_v45, %v187_v44 }
  0x4b   :  { %987 = vmatpush3.bf16.msra.mxu1 %v986_v56 }
  0x4c   :  { %971 = vmatpush1.bf16.msra.mxu0 %v970_v57  ;;  %989 = vmatprep.subr.bf16.mxu1 %v988_v58 }
  0x4d   :  { %973 = vmatprep.subr.bf16.mxu0 %v972_v63 }
  0x4f   :  { %521 = vmatmul.mubr.f32.vlgmr.msra.gmra.mrb[6].mxu0 %v1159_v49  ;;  %991 = vmatpush3.bf16.msra.mxu1 %v990_v5 }
  0x50   :  { %975 = vmatpush1.bf16.msra.mxu0 %v974_v6  ;;  %993 = vmatprep.subr.bf16.mxu1 %v992_v7 }
  0x51   :  { %977 = vmatprep.subr.bf16.mxu0 %v976_v11  ;;  %591 = vmatprep.mubr.f32.mxu0 %v1027_v2 }
  0x53   :  { %995 = vmatpush3.bf16.msra.mxu1 %v994_v15 }
  0x54   :  { %979 = vmatpush1.bf16.msra.mxu0 %v978_v16  ;;  %997 = vmatprep.subr.bf16.mxu1 %v996_v17 }
  0x55   :  { %1012 = vmatprep.subr.bf16.mxu0 %v1029_v31 }
  0x57   :  { %783 = vmatmul.mubr.msk.f32.vlgmr.msra.gmra.mrb[6].mxu0 %vm108_vm1, %v1171_v54  ;;  %999 = vmatpush3.bf16.msra.mxu1 %v998_v24 }
  0x58   :  { %1001 = vmatprep.subr.bf16.mxu1 %v1000_v25  ;;  %1014 = vmatpush3.bf16.msra.mxu0 %v1013_v29 }
  0x59   :  { %1015 = vmatprep.subr.bf16.mxu0 %v1029_v31  ;;  %833 = vmatprep.mubr.msk.f32.mxu0 %vm1030_vm2, %v1027_v2 }
  0x5b   :  { %1003 = vmatpush3.bf16.msra.mxu1 %v1002_v34 }
  0x5c   :  { %1005 = vmatprep.subr.bf16.mxu1 %v1004_v35  ;;  %1017 = vmatpush3.bf16.msra.mxu0 %v1016_v39 }
  0x5f   :  { %1007 = vmatpush3.bf16.msra.mxu1 %v1006_v42  ;;  %834 = vmatmul.mubr.msk.f32.vlgmr.msra.gmra.mrb[8].mxu0 %vm108_vm1, %v1171_v54 }
  0x60   :  { %1009 = vmatprep.subr.bf16.mxu1 %v1008_v43 }
  0x63   :  { %1011 = vmatpush3.bf16.msra.mxu1 %v1010_v46 }
  0x66   :  { %663 = vmatmul.mubr.f32.vlgmr.msra.gmra.mrb[2].mxu1 %v1159_v49 }
  0xd7   :  { %v96_v2 = vpop.f32.mrb[0].mxu0 }
  0xd8   :  { %107 = vst [vmem:[%s1674_s4] sm:$0xff] %v96_v2  ;;  %v98_v47 = vpop.f32.mrb[1].mxu0 }
  0xd9   :  { %109 = vst.msk [vmem:[%s1674_s4 + $0x8] sm:$0xff] %vm108_vm1, %v98_v47 }
  0xdc   :  { %v102_v48 = vpop.f32.mrb[2].mxu0 }
  0xdd   :  { %110 = vst [vmem:[%s1674_s4 + $0x10] sm:$0xff] %v102_v48  ;;  %v104_v54 = vpop.f32.mrb[3].mxu0 }
  0xde   :  { %111 = vst.msk [vmem:[%s1674_s4 + $0x18] sm:$0xff] %vm108_vm1, %v104_v54 }
  0xe2   :  { %v451_v49 = vpop.f32.mrb[4].mxu0 }
  0xe3   :  { %v453_v50 = vpop.f32.mrb[5].mxu0 }
 0x119   :  { %v380_v51 = vpop.f32.mrb[0].mxu1 }
 0x11a   :  { %v452_v52 = vadd.f32 %v451_v49, %v380_v51  ;;  %v382_v53 = vpop.f32.mrb[1].mxu1 }
 0x11b   :  { %v454_v55 = vadd.f32 %v453_v50, %v382_v53 }
 0x11d   :  { %v743_v56 = vcombine.low %v452_v52, %v454_v55 }
 0x11f   :  { %v751_v61 = vrot.slane %v743_v56, %v1136_v38 }
 0x12a   :  { %v593_v57 = vpop.f32.mrb[6].mxu0 }
 0x12b   :  { %v595_v58 = vpop.f32.mrb[7].mxu0 }
 0x12c   :  { %v744_v59 = vcombine.low %v593_v57, %v595_v58 }
 0x12e   :  { %v758_v62 = vrot.slane %v744_v59, %v1136_v38 }
 0x130   :  { %v759_v63 = vcombine.low %v751_v61, %v758_v62 }
 0x132   :  { %769 = vst [vmem:[%s1675_s5] sm:$0xff] %v759_v63  ;;  %v734_v60 = vpop.f32.mrb[8].mxu0 }
 0x133   :  { %v835_v0 = vpop.f32.mrb[9].mxu0 }
 0x139   :  { %v817_v1 = vpop.f32.mrb[2].mxu1 }
 0x13a   :  { %v818_v3 = vpop.f32.mrb[3].mxu1 }
 0x13b   :  { %v819_v4 = vadd.f32 %v818_v3, %v817_v1 }
 0x13d   :  { %v735_v5 = vadd.f32 %v819_v4, %v734_v60 }
 0x13f   :  { %v766_v6 = vrot.slane %v735_v5, %v1136_v38 }
 0x141   :  { %771 = vst.msk [vmem:[%s1675_s5 + $0x8] sm:$0x3] %vm770_vm3, %v766_v6 }

// kernel: _lambda_.14
= control target key start
LH: loop header
LB: loop body
LE: loop exit
PB: predicated region body
PF: predicated region fallthrough
CT: control target
= control target key end

     0   :  { %vm23_vm0 = vcmask 130048   ;;  %vm105_vm1 = vcmask 392192   ;;  %s611_s3 = inlined_call_operand.vmem [shape: f32[256,256], index: 3, kind: input, shape index: {}]   ;;  %s612_s0 = inlined_call_operand.vmem [shape: f32[16,48], index: 0, kind: input, shape index: {}]   ;;  %s613_s2 = inlined_call_operand.vmem [shape: f32[2,256], index: 2, kind: input, shape index: {}]   ;;  %s614_s1 = inlined_call_operand.vmem [shape: f32[16,16], index: 1, kind: input, shape index: {}]   ;;  %s615_s4 = inlined_call_operand.vmem [shape: f32[16,48], index: 4, kind: output, shape index: {0}]   ;;  %s616_s5 = inlined_call_operand.vmem [shape: f32[2,256], index: 5, kind: output, shape index: {1}]  }
   0x1   :  { %v110_v0 = vld [vmem:[%s611_s3 + $0x8] sm:$0xff]  ;;  %v112_v1 = vld [vmem:[%s611_s3 + $0x18] sm:$0xff]  ;;  %v109_v2 = vld [vmem:[%s611_s3] sm:$0xff] }
   0x2   :  { %v294_v3 = vpack.c.bf16 %v112_v1, %v110_v0  ;;  %v111_v4 = vld [vmem:[%s611_s3 + $0x10] sm:$0xff]  ;;  %v114_v5 = vld [vmem:[%s611_s3 + $0x28] sm:$0xff]  ;;  %v116_v6 = vld [vmem:[%s611_s3 + $0x38] sm:$0xff] }
   0x3   :  { %v296_v7 = vpack.c.bf16 %v111_v4, %v109_v2  ;;  %v298_v8 = vpack.c.bf16 %v116_v6, %v114_v5  ;;  %v113_v9 = vld [vmem:[%s611_s3 + $0x20] sm:$0xff]  ;;  %v115_v10 = vld [vmem:[%s611_s3 + $0x30] sm:$0xff]  ;;  %v118_v11 = vld [vmem:[%s611_s3 + $0x48] sm:$0xff] }
   0x4   :  { %295 = vmatprep.subr.bf16.mxu1 %v294_v3  ;;  %v120_v12 = vld [vmem:[%s611_s3 + $0x58] sm:$0xff]  ;;  %v300_v13 = vpack.c.bf16 %v115_v10, %v113_v9  ;;  %v117_v15 = vld [vmem:[%s611_s3 + $0x40] sm:$0xff]  ;;  %v119_v16 = vld [vmem:[%s611_s3 + $0x50] sm:$0xff] }
   0x5   :  { %297 = vmatpush1.bf16.msra.mxu1 %v296_v7  ;;  %v302_v14 = vpack.c.bf16 %v120_v12, %v118_v11  ;;  %v122_v17 = vld [vmem:[%s611_s3 + $0x68] sm:$0xff]  ;;  %v124_v18 = vld [vmem:[%s611_s3 + $0x78] sm:$0xff]  ;;  %v304_v19 = vpack.c.bf16 %v119_v16, %v117_v15  ;;  %v121_v21 = vld [vmem:[%s611_s3 + $0x60] sm:$0xff] }
   0x6   :  { %299 = vmatprep.subr.bf16.mxu1 %v298_v8  ;;  %v306_v20 = vpack.c.bf16 %v124_v18, %v122_v17  ;;  %v123_v22 = vld [vmem:[%s611_s3 + $0x70] sm:$0xff]  ;;  %v126_v23 = vld [vmem:[%s611_s3 + $0x88] sm:$0xff]  ;;  %v128_v24 = vld [vmem:[%s611_s3 + $0x98] sm:$0xff] }
   0x7   :  { %v308_v25 = vpack.c.bf16 %v123_v22, %v121_v21  ;;  %v310_v26 = vpack.c.bf16 %v128_v24, %v126_v23  ;;  %v125_v27 = vld [vmem:[%s611_s3 + $0x80] sm:$0xff]  ;;  %v127_v28 = vld [vmem:[%s611_s3 + $0x90] sm:$0xff]  ;;  %v130_v29 = vld [vmem:[%s611_s3 + $0xa8] sm:$0xff] }
   0x8   :  { %v132_v30 = vld [vmem:[%s611_s3 + $0xb8] sm:$0xff]  ;;  %v312_v31 = vpack.c.bf16 %v127_v28, %v125_v27  ;;  %v129_v33 = vld [vmem:[%s611_s3 + $0xa0] sm:$0xff]  ;;  %v131_v34 = vld [vmem:[%s611_s3 + $0xb0] sm:$0xff] }
   0x9   :  { %301 = vmatpush1.bf16.msra.mxu1 %v300_v13  ;;  %v314_v32 = vpack.c.bf16 %v132_v30, %v130_v29  ;;  %v134_v35 = vld [vmem:[%s611_s3 + $0xc8] sm:$0xff]  ;;  %v136_v36 = vld [vmem:[%s611_s3 + $0xd8] sm:$0xff]  ;;  %v316_v37 = vpack.c.bf16 %v131_v34, %v129_v33  ;;  %v133_v38 = vld [vmem:[%s611_s3 + $0xc0] sm:$0xff] }
   0xa   :  { %303 = vmatprep.subr.bf16.mxu1 %v302_v14  ;;  %v21_v39 = vld [vmem:[%s612_s0] sm:$0xff]  ;;  %v318_v40 = vpack.c.bf16 %v136_v36, %v134_v35  ;;  %v135_v41 = vld [vmem:[%s611_s3 + $0xd0] sm:$0xff]  ;;  %v138_v42 = vld [vmem:[%s611_s3 + $0xe8] sm:$0xff] }
   0xb   :  { %v22_v43 = vld [vmem:[%s612_s0 + $0x8] sm:$0xff]  ;;  %v140_v44 = vld [vmem:[%s611_s3 + $0xf8] sm:$0xff]  ;;  %v487_v46 = vld.sshfl [vmem:[%s613_s2] sm:$0x33 pattern:$0x76325410]  ;;  %v320_v49 = vpack.c.bf16 %v135_v41, %v133_v38 }
   0xc   :  { %v290_v45 = vpack.c.bf16 %v22_v43, %v21_v39  ;;  %v19_v47 = vld [vmem:[%s614_s1] sm:$0xff]  ;;  %v181_v48 = vcombine.high %v487_v46, %v487_v46  ;;  %v322_v50 = vpack.c.bf16 %v140_v44, %v138_v42  ;;  %v139_v52 = vld [vmem:[%s611_s3 + $0xf0] sm:$0xff]  ;;  %v20_v53 = vld [vmem:[%s614_s1 + $0x8] sm:$0xff] }
   0xd   :  { %305 = vmatpush1.bf16.msra.mxu1 %v304_v19  ;;  %287 = vmatprep.mubr.msk.f32.mxu0 %vm23_vm0, %v19_v47  ;;  %v137_v51 = vld [vmem:[%s611_s3 + $0xe0] sm:$0xff]  ;;  %v142_v54 = vld [vmem:[%s611_s3 + $0x108] sm:$0xff]  ;;  %v144_v55 = vld [vmem:[%s611_s3 + $0x118] sm:$0xff] }
   0xe   :  { %307 = vmatprep.subr.bf16.mxu1 %v306_v20  ;;  %291 = vmatprep.subr.bf16.mxu0 %v290_v45  ;;  %v324_v56 = vpack.c.bf16 %v139_v52, %v137_v51  ;;  %v326_v57 = vpack.c.bf16 %v144_v55, %v142_v54  ;;  %v141_v58 = vld [vmem:[%s611_s3 + $0x100] sm:$0xff]  ;;  %v143_v59 = vld [vmem:[%s611_s3 + $0x110] sm:$0xff]  ;;  %v146_v60 = vld [vmem:[%s611_s3 + $0x128] sm:$0xff] }
   0xf   :  { %293 = vmatpush3.bf16.msra.mxu0 %v290_v45  ;;  %248 = vmatprep.mubr.f32.mxu1 %v181_v48  ;;  %v148_v61 = vld [vmem:[%s611_s3 + $0x138] sm:$0xff]  ;;  %v328_v62 = vpack.c.bf16 %v143_v59, %v141_v58  ;;  %v145_v0 = vld [vmem:[%s611_s3 + $0x120] sm:$0xff]  ;;  %v147_v1 = vld [vmem:[%s611_s3 + $0x130] sm:$0xff] }
  0x10   :  { %v330_v63 = vpack.c.bf16 %v148_v61, %v146_v60  ;;  %v150_v2 = vld [vmem:[%s611_s3 + $0x148] sm:$0xff]  ;;  %v152_v3 = vld [vmem:[%s611_s3 + $0x158] sm:$0xff]  ;;  %v332_v4 = vpack.c.bf16 %v147_v1, %v145_v0  ;;  %v149_v6 = vld [vmem:[%s611_s3 + $0x140] sm:$0xff] }
  0x11   :  { %309 = vmatpush1.bf16.msra.mxu1 %v308_v25  ;;  %v334_v5 = vpack.c.bf16 %v152_v3, %v150_v2  ;;  %v151_v7 = vld [vmem:[%s611_s3 + $0x150] sm:$0xff]  ;;  %v154_v8 = vld [vmem:[%s611_s3 + $0x168] sm:$0xff]  ;;  %v156_v9 = vld [vmem:[%s611_s3 + $0x178] sm:$0xff] }
  0x12   :  { %311 = vmatprep.subr.bf16.mxu1 %v310_v26  ;;  %288 = vmatmul.mubr.msk.f32.vlgmr.msra.gmra.mrb[0].mxu0 %vm23_vm0, %v20_v53  ;;  %v336_v10 = vpack.c.bf16 %v151_v7, %v149_v6  ;;  %v338_v11 = vpack.c.bf16 %v156_v9, %v154_v8  ;;  %v153_v12 = vld [vmem:[%s611_s3 + $0x160] sm:$0xff]  ;;  %v155_v13 = vld [vmem:[%s611_s3 + $0x170] sm:$0xff]  ;;  %v158_v14 = vld [vmem:[%s611_s3 + $0x188] sm:$0xff] }
  0x13   :  { %v160_v15 = vld [vmem:[%s611_s3 + $0x198] sm:$0xff]  ;;  %v340_v16 = vpack.c.bf16 %v155_v13, %v153_v12  ;;  %v157_v18 = vld [vmem:[%s611_s3 + $0x180] sm:$0xff]  ;;  %v159_v19 = vld [vmem:[%s611_s3 + $0x190] sm:$0xff] }
  0x14   :  { %v342_v17 = vpack.c.bf16 %v160_v15, %v158_v14  ;;  %v162_v20 = vld [vmem:[%s611_s3 + $0x1a8] sm:$0xff]  ;;  %v164_v21 = vld [vmem:[%s611_s3 + $0x1b8] sm:$0xff]  ;;  %v344_v22 = vpack.c.bf16 %v159_v19, %v157_v18  ;;  %v161_v24 = vld [vmem:[%s611_s3 + $0x1a0] sm:$0xff] }
  0x15   :  { %313 = vmatpush1.bf16.msra.mxu1 %v312_v31  ;;  %v346_v23 = vpack.c.bf16 %v164_v21, %v162_v20  ;;  %v163_v25 = vld [vmem:[%s611_s3 + $0x1b0] sm:$0xff]  ;;  %v166_v26 = vld [vmem:[%s611_s3 + $0x1c8] sm:$0xff]  ;;  %v168_v27 = vld [vmem:[%s611_s3 + $0x1d8] sm:$0xff] }
  0x16   :  { %315 = vmatprep.subr.bf16.mxu1 %v314_v32  ;;  %v348_v28 = vpack.c.bf16 %v163_v25, %v161_v24  ;;  %v350_v29 = vpack.c.bf16 %v168_v27, %v166_v26  ;;  %v165_v30 = vld [vmem:[%s611_s3 + $0x1c0] sm:$0xff]  ;;  %v167_v31 = vld [vmem:[%s611_s3 + $0x1d0] sm:$0xff]  ;;  %v170_v32 = vld [vmem:[%s611_s3 + $0x1e8] sm:$0xff] }
  0x17   :  { %v172_v33 = vld [vmem:[%s611_s3 + $0x1f8] sm:$0xff]  ;;  %v352_v34 = vpack.c.bf16 %v167_v31, %v165_v30  ;;  %v169_v36 = vld [vmem:[%s611_s3 + $0x1e0] sm:$0xff] }
  0x18   :  { %v354_v35 = vpack.c.bf16 %v172_v33, %v170_v32 }
  0x19   :  { %317 = vmatpush1.bf16.msra.mxu1 %v316_v37  ;;  %v171_v37 = vld [vmem:[%s611_s3 + $0x1f0] sm:$0xff] }
  0x1a   :  { %319 = vmatprep.subr.bf16.mxu1 %v318_v40  ;;  %v356_v38 = vpack.c.bf16 %v171_v37, %v169_v36 }
  0x1d   :  { %321 = vmatpush1.bf16.msra.mxu1 %v320_v49 }
  0x1e   :  { %323 = vmatprep.subr.bf16.mxu1 %v322_v50 }
  0x21   :  { %325 = vmatpush1.bf16.msra.mxu1 %v324_v56 }
  0x22   :  { %327 = vmatprep.subr.bf16.mxu1 %v326_v57 }
  0x25   :  { %329 = vmatpush1.bf16.msra.mxu1 %v328_v62 }
  0x26   :  { %331 = vmatprep.subr.bf16.mxu1 %v330_v63 }
  0x29   :  { %333 = vmatpush1.bf16.msra.mxu1 %v332_v4 }
  0x2a   :  { %335 = vmatprep.subr.bf16.mxu1 %v334_v5 }
  0x2d   :  { %337 = vmatpush1.bf16.msra.mxu1 %v336_v10 }
  0x2e   :  { %339 = vmatprep.subr.bf16.mxu1 %v338_v11 }
  0x31   :  { %341 = vmatpush1.bf16.msra.mxu1 %v340_v16 }
  0x32   :  { %343 = vmatprep.subr.bf16.mxu1 %v342_v17 }
  0x35   :  { %345 = vmatpush1.bf16.msra.mxu1 %v344_v22 }
  0x36   :  { %347 = vmatprep.subr.bf16.mxu1 %v346_v23 }
  0x39   :  { %349 = vmatpush1.bf16.msra.mxu1 %v348_v28 }
  0x3a   :  { %351 = vmatprep.subr.bf16.mxu1 %v350_v29 }
  0x3d   :  { %353 = vmatpush1.bf16.msra.mxu1 %v352_v34 }
  0x3e   :  { %355 = vmatprep.subr.bf16.mxu1 %v354_v35 }
  0x41   :  { %357 = vmatpush1.bf16.msra.mxu1 %v356_v38 }
  0x44   :  { %249 = vmatmul.mubr.f32.vlgmr.msra.gmra.mrb[0].mxu1 %v487_v46 }
  0xe5   :  { %v289_v39 = vpop.f32.mrb[0].mxu0 }
  0xe6   :  { %107 = vst.msk [vmem:[%s615_s4 + $0x8] sm:$0xff] %vm105_vm1, %v289_v39  ;;  %v96_v40 = vpop.f32.mrb[1].mxu0 }
  0xe7   :  { %106 = vst.msk [vmem:[%s615_s4] sm:$0xff] %vm105_vm1, %v96_v40 }
 0x117   :  { %v250_v41 = vpop.f32.mrb[0].mxu1 }
 0x118   :  { %v252_v42 = vpop.f32.mrb[1].mxu1 }
 0x119   :  { %v257_v43 = vcombine.low %v250_v41, %v252_v42 }
 0x11b   :  { %278 = vst.sshfl [vmem:[%s616_s5] sm:$0x33 pattern:$0x76325410] %v257_v43 }

// kernel: _lambda_.15
= control target key start
LH: loop header
LB: loop body
LE: loop exit
PB: predicated region body
PF: predicated region fallthrough
CT: control target
= control target key end

     0   :  { %v262_v0 = vmov 0.0|0.0   ;;  %vm23_vm0 = vcmask 130048   ;;  %vm263_vm1 = vmmov 0   ;;  %v264_v4 = vmov 0.0   ;;  %s345_s3 = inlined_call_operand.vmem [shape: f32[64,64], index: 3, kind: input, shape index: {}]   ;;  %s346_s0 = inlined_call_operand.vmem [shape: f32[16,48], index: 0, kind: input, shape index: {}]   ;;  %s347_s1 = inlined_call_operand.vmem [shape: f32[16,16], index: 1, kind: input, shape index: {}]   ;;  %s348_s2 = inlined_call_operand.vmem [shape: f32[2,64], index: 2, kind: input, shape index: {}]   ;;  %s349_s4 = inlined_call_operand.vmem [shape: f32[16,48], index: 4, kind: output, shape index: {0}]   ;;  %s350_s5 = inlined_call_operand.vmem [shape: f32[2,64], index: 5, kind: output, shape index: {1}]  }
   0x1   :  { %247 = vmatprep.subr.bf16.mxu1 %v262_v0  ;;  %v109_v1 = vld [vmem:[%s345_s3] sm:$0xff]  ;;  %v110_v2 = vld [vmem:[%s345_s3 + $0x8] sm:$0xff]  ;;  %v111_v3 = vld [vmem:[%s345_s3 + $0x10] sm:$0xff]  ;;  %240 = vmatprep.mubr.msk.f32.mxu1 %vm263_vm1, %v264_v4  ;;  %vm117_vm2 = vcmask 523264   ;;  %vm105_vm3 = vcmask 392192   ;;  %vm191_vm4 = vcmask 517120  }
   0x2   :  { %v248_v5 = vpack.c.bf16 %v110_v2, %v109_v1  ;;  %v112_v6 = vld [vmem:[%s345_s3 + $0x18] sm:$0xff]  ;;  %v21_v7 = vld [vmem:[%s346_s0] sm:$0xff]  ;;  %v22_v8 = vld [vmem:[%s346_s0 + $0x8] sm:$0xff] }
   0x3   :  { %v19_v9 = vld [vmem:[%s347_s1] sm:$0xff]  ;;  %v251_v10 = vpack.c.bf16 %v112_v6, %v111_v3  ;;  %v243_v11 = vpack.c.bf16 %v22_v8, %v21_v7  ;;  %v114_v13 = vld [vmem:[%s345_s3 + $0x28] sm:$0xff]  ;;  %v115_v16 = vld [vmem:[%s345_s3 + $0x30] sm:$0xff] }
   0x4   :  { %249 = vmatpush3.bf16.msra.mxu1 %v248_v5  ;;  %221 = vmatprep.mubr.msk.f32.mxu0 %vm23_vm0, %v19_v9  ;;  %v113_v12 = vld [vmem:[%s345_s3 + $0x20] sm:$0xff]  ;;  %v20_v14 = vld [vmem:[%s347_s1 + $0x8] sm:$0xff]  ;;  %v116_v17 = vld [vmem:[%s345_s3 + $0x38] sm:$0xff] }
   0x5   :  { %250 = vmatprep.subr.bf16.mxu1 %v262_v0  ;;  %244 = vmatprep.subr.bf16.mxu0 %v243_v11  ;;  %v254_v15 = vpack.c.bf16 %v114_v13, %v113_v12  ;;  %v257_v18 = vpack.c.bf16 %v116_v17, %v115_v16  ;;  %v108_v19 = vld [vmem:[%s348_s2] sm:$0x3] }
   0x6   :  { %246 = vmatpush3.bf16.msra.mxu0 %v243_v11 }
   0x8   :  { %252 = vmatpush3.bf16.msra.mxu1 %v251_v10 }
   0x9   :  { %253 = vmatprep.subr.bf16.mxu1 %v262_v0  ;;  %222 = vmatmul.mubr.msk.f32.vlgmr.msra.gmra.mrb[0].mxu0 %vm23_vm0, %v20_v14 }
   0xc   :  { %255 = vmatpush3.bf16.msra.mxu1 %v254_v15 }
   0xd   :  { %256 = vmatprep.subr.bf16.mxu1 %v262_v0 }
  0x10   :  { %258 = vmatpush3.bf16.msra.mxu1 %v257_v18 }
  0x13   :  { %241 = vmatmul.mubr.msk.f32.vlgmr.msra.gmra.mrb[0].mxu1 %vm117_vm2, %v108_v19 }
  0xdc   :  { %v223_v20 = vpop.f32.mrb[0].mxu0 }
  0xdd   :  { %107 = vst.msk [vmem:[%s349_s4 + $0x8] sm:$0xff] %vm105_vm3, %v223_v20  ;;  %v96_v21 = vpop.f32.mrb[1].mxu0 }
  0xde   :  { %106 = vst.msk [vmem:[%s349_s4] sm:$0xff] %vm105_vm3, %v96_v21 }
  0xe6   :  { %v187_v22 = vpop.f32.mrb[0].mxu1 }
  0xe7   :  { %192 = vst.msk [vmem:[%s350_s5] sm:$0x3] %vm191_vm4, %v187_v22  ;;  %v242_v23 = vpop.f32.mrb[1].mxu1 }

// kernel: _lambda_.16
= control target key start
LH: loop header
LB: loop body
LE: loop exit
PB: predicated region body
PF: predicated region fallthrough
CT: control target
= control target key end

     0   :  { %v487_v3 = vmov 0.0   ;;  %vm28_vm0 = vcmask 261120   ;;  %v488_v55 = vmov 1983009808   ;;  %v175_v57 = vlaneseq  ;;  %s752_s0 = inlined_call_operand.vmem [shape: f32[32,160], index: 0, kind: input, shape index: {}]   ;;  %s753_s3 = inlined_call_operand.vmem [shape: f32[512,128], index: 3, kind: input, shape index: {}]   ;;  %s754_s1 = inlined_call_operand.vmem [shape: f32[8,32], index: 1, kind: input, shape index: {}]   ;;  %s755_s2 = inlined_call_operand.vmem [shape: f32[2,512], index: 2, kind: input, shape index: {}]   ;;  %s756_s4 = inlined_call_operand.vmem [shape: f32[8,160], index: 4, kind: output, shape index: {0}]   ;;  %s757_s5 = inlined_call_operand.vmem [shape: f32[2,128], index: 5, kind: output, shape index: {1}]  }
   0x1   :  { %v21_v0 = vld [vmem:[%s752_s0 + $0x8] sm:$0xff]  ;;  %v23_v1 = vld [vmem:[%s752_s0 + $0x18] sm:$0xff]  ;;  %v20_v2 = vld [vmem:[%s752_s0] sm:$0xff]  ;;  %96 = vmatprep.mubr.f32.mxu0 %v487_v3  ;;  %v173_v56 = vunpack.c.l.s4 %v488_v55 }
   0x2   :  { %v412_v4 = vpack.c.bf16 %v23_v1, %v21_v0  ;;  %v22_v5 = vld [vmem:[%s752_s0 + $0x10] sm:$0xff]  ;;  %v25_v6 = vld [vmem:[%s752_s0 + $0x28] sm:$0xff]  ;;  %v27_v7 = vld [vmem:[%s752_s0 + $0x38] sm:$0xff] }
   0x3   :  { %v414_v8 = vpack.c.bf16 %v22_v5, %v20_v2  ;;  %v416_v9 = vpack.c.bf16 %v27_v7, %v25_v6  ;;  %v24_v10 = vld [vmem:[%s752_s0 + $0x20] sm:$0xff]  ;;  %v26_v11 = vld [vmem:[%s752_s0 + $0x30] sm:$0xff]  ;;  %v123_v13 = vld [vmem:[%s753_s3 + $0x88] sm:$0xff]  ;;  %v174_v7 = vunpack.c.0.s8 %v173_v56 }
   0x4   :  { %v122_v12 = vld [vmem:[%s753_s3 + $0x80] sm:$0xff]  ;;  %413 = vmatprep.subr.bf16.mxu0 %v412_v4  ;;  %v418_v15 = vpack.c.bf16 %v26_v11, %v24_v10  ;;  %v107_v17 = vld [vmem:[%s753_s3 + $0x8] sm:$0xff]  ;;  %v124_v24 = vld [vmem:[%s753_s3 + $0x90] sm:$0xff] }
   0x5   :  { %v106_v14 = vld [vmem:[%s753_s3] sm:$0xff]  ;;  %415 = vmatpush1.bf16.msra.mxu0 %v414_v8  ;;  %v420_v16 = vpack.c.bf16 %v123_v13, %v122_v12  ;;  %v155_v19 = vld [vmem:[%s753_s3 + $0x188] sm:$0xff]  ;;  %v125_v25 = vld [vmem:[%s753_s3 + $0x98] sm:$0xff]  ;;  %v176_v8 = vshrl.u32 %v175_v57, 7 }
   0x6   :  { %v154_v18 = vld [vmem:[%s753_s3 + $0x180] sm:$0xff]  ;;  %417 = vmatprep.subr.bf16.mxu0 %v416_v9  ;;  %v422_v20 = vpack.c.bf16 %v107_v17, %v106_v14  ;;  %v139_v23 = vld [vmem:[%s753_s3 + $0x108] sm:$0xff]  ;;  %v108_v26 = vld [vmem:[%s753_s3 + $0x10] sm:$0xff]  ;;  %v424_v29 = vpack.c.bf16 %v125_v25, %v124_v24 }
   0x7   :  { %v452_v21 = vpack.c.bf16 %v155_v19, %v154_v18  ;;  %v138_v22 = vld [vmem:[%s753_s3 + $0x100] sm:$0xff]  ;;  %421 = vmatprep.subr.bf16.mxu1 %v420_v16  ;;  %v109_v27 = vld [vmem:[%s753_s3 + $0x18] sm:$0xff]  ;;  %v156_v31 = vld [vmem:[%s753_s3 + $0x190] sm:$0xff] }
   0x8   :  { %v19_v28 = vld [vmem:[%s754_s1] sm:$0xff]  ;;  %423 = vmatpush3.bf16.msra.mxu1 %v422_v20  ;;  %v426_v30 = vpack.c.bf16 %v109_v27, %v108_v26  ;;  %v157_v32 = vld [vmem:[%s753_s3 + $0x198] sm:$0xff]  ;;  %v454_v33 = vpack.c.bf16 %v139_v23, %v138_v22  ;;  %v140_v34 = vld [vmem:[%s753_s3 + $0x110] sm:$0xff] }
   0x9   :  { %419 = vmatpush1.bf16.msra.mxu0 %v418_v15  ;;  %v126_v35 = vld [vmem:[%s753_s3 + $0xa0] sm:$0xff]  ;;  %v127_v36 = vld [vmem:[%s753_s3 + $0xa8] sm:$0xff]  ;;  %425 = vmatprep.subr.bf16.mxu1 %v424_v29  ;;  %v456_v37 = vpack.c.bf16 %v157_v32, %v156_v31  ;;  %v141_v38 = vld [vmem:[%s753_s3 + $0x118] sm:$0xff] }
   0xa   :  { %453 = vmatprep.subr.bf16.mxu0 %v452_v21  ;;  %v428_v39 = vpack.c.bf16 %v127_v36, %v126_v35  ;;  %v110_v40 = vld [vmem:[%s753_s3 + $0x20] sm:$0xff]  ;;  %v111_v41 = vld [vmem:[%s753_s3 + $0x28] sm:$0xff]  ;;  %v128_v45 = vld [vmem:[%s753_s3 + $0xb0] sm:$0xff]  ;;  %v458_v47 = vpack.c.bf16 %v141_v38, %v140_v34  ;;  %v177_v21 = vsub.s32 %v174_v7, %v176_v8 }
   0xb   :  { %v158_v42 = vld [vmem:[%s753_s3 + $0x1a0] sm:$0xff]  ;;  %v159_v43 = vld [vmem:[%s753_s3 + $0x1a8] sm:$0xff]  ;;  %v430_v44 = vpack.c.bf16 %v111_v41, %v110_v40  ;;  %v129_v46 = vld [vmem:[%s753_s3 + $0xb8] sm:$0xff] }
   0xc   :  { %341 = vmatmul.mubr.msk.f32.vlgmr.msra.gmra.mrb[0].mxu0 %vm28_vm0, %v19_v28  ;;  %427 = vmatpush3.bf16.msra.mxu1 %v426_v30  ;;  %v432_v48 = vpack.c.bf16 %v129_v46, %v128_v45  ;;  %v112_v49 = vld [vmem:[%s753_s3 + $0x30] sm:$0xff]  ;;  %v113_v50 = vld [vmem:[%s753_s3 + $0x38] sm:$0xff]  ;;  %v460_v51 = vpack.c.bf16 %v159_v43, %v158_v42  ;;  %v142_v52 = vld [vmem:[%s753_s3 + $0x120] sm:$0xff] }
   0xd   :  { %455 = vmatpush3.bf16.msra.mxu0 %v454_v33  ;;  %429 = vmatprep.subr.bf16.mxu1 %v428_v39  ;;  %v143_v53 = vld [vmem:[%s753_s3 + $0x128] sm:$0xff]  ;;  %v130_v54 = vld [vmem:[%s753_s3 + $0xc0] sm:$0xff]  ;;  %v160_v58 = vld [vmem:[%s753_s3 + $0x1b0] sm:$0xff]  ;;  %v434_v61 = vpack.c.bf16 %v113_v50, %v112_v49 }
   0xe   :  { %457 = vmatprep.subr.bf16.mxu0 %v456_v37  ;;  %v161_v59 = vld [vmem:[%s753_s3 + $0x1b8] sm:$0xff]  ;;  %v131_v60 = vld [vmem:[%s753_s3 + $0xc8] sm:$0xff]  ;;  %v462_v62 = vpack.c.bf16 %v143_v53, %v142_v52  ;;  %v144_v63 = vld [vmem:[%s753_s3 + $0x130] sm:$0xff] }
   0xf   :  { %v436_v0 = vpack.c.bf16 %v131_v60, %v130_v54  ;;  %v114_v1 = vld [vmem:[%s753_s3 + $0x40] sm:$0xff]  ;;  %v115_v2 = vld [vmem:[%s753_s3 + $0x48] sm:$0xff]  ;;  %v464_v3 = vpack.c.bf16 %v161_v59, %v160_v58  ;;  %v145_v4 = vld [vmem:[%s753_s3 + $0x138] sm:$0xff] }
  0x10   :  { %431 = vmatpush3.bf16.msra.mxu1 %v430_v44  ;;  %v132_v5 = vld [vmem:[%s753_s3 + $0xd0] sm:$0xff]  ;;  %v133_v6 = vld [vmem:[%s753_s3 + $0xd8] sm:$0xff]  ;;  %v162_v9 = vld [vmem:[%s753_s3 + $0x1c0] sm:$0xff]  ;;  %v438_v11 = vpack.c.bf16 %v115_v2, %v114_v1  ;;  %v466_v12 = vpack.c.bf16 %v145_v4, %v144_v63 }
  0x11   :  { %459 = vmatpush3.bf16.msra.mxu0 %v458_v47  ;;  %433 = vmatprep.subr.bf16.mxu1 %v432_v48  ;;  %v163_v10 = vld [vmem:[%s753_s3 + $0x1c8] sm:$0xff]  ;;  %v146_v13 = vld [vmem:[%s753_s3 + $0x140] sm:$0xff]  ;;  %v440_v14 = vpack.c.bf16 %v133_v6, %v132_v5  ;;  %v116_v15 = vld [vmem:[%s753_s3 + $0x50] sm:$0xff] }
  0x12   :  { %461 = vmatprep.subr.bf16.mxu0 %v460_v51  ;;  %v117_v16 = vld [vmem:[%s753_s3 + $0x58] sm:$0xff]  ;;  %v468_v17 = vpack.c.bf16 %v163_v10, %v162_v9  ;;  %v147_v18 = vld [vmem:[%s753_s3 + $0x148] sm:$0xff]  ;;  %v134_v19 = vld [vmem:[%s753_s3 + $0xe0] sm:$0xff] }
  0x13   :  { %v135_v20 = vld [vmem:[%s753_s3 + $0xe8] sm:$0xff]  ;;  %v164_v22 = vld [vmem:[%s753_s3 + $0x1d0] sm:$0xff]  ;;  %v165_v23 = vld [vmem:[%s753_s3 + $0x1d8] sm:$0xff]  ;;  %v442_v24 = vpack.c.bf16 %v117_v16, %v116_v15  ;;  %v470_v26 = vpack.c.bf16 %v147_v18, %v146_v13 }
  0x14   :  { %435 = vmatpush3.bf16.msra.mxu1 %v434_v61  ;;  %v148_v25 = vld [vmem:[%s753_s3 + $0x150] sm:$0xff]  ;;  %v444_v27 = vpack.c.bf16 %v135_v20, %v134_v19  ;;  %v118_v28 = vld [vmem:[%s753_s3 + $0x60] sm:$0xff]  ;;  %v119_v29 = vld [vmem:[%s753_s3 + $0x68] sm:$0xff]  ;;  %v472_v31 = vpack.c.bf16 %v165_v23, %v164_v22 }
  0x15   :  { %463 = vmatpush3.bf16.msra.mxu0 %v462_v62  ;;  %437 = vmatprep.subr.bf16.mxu1 %v436_v0  ;;  %v105_v30 = vld [vmem:[%s755_s2] sm:$0xff]  ;;  %v149_v32 = vld [vmem:[%s753_s3 + $0x158] sm:$0xff]  ;;  %v136_v33 = vld [vmem:[%s753_s3 + $0xf0] sm:$0xff]  ;;  %v446_v39 = vpack.c.bf16 %v119_v29, %v118_v28 }
  0x16   :  { %465 = vmatprep.subr.bf16.mxu0 %v464_v3  ;;  %v137_v34 = vld [vmem:[%s753_s3 + $0xf8] sm:$0xff]  ;;  %v171_v35 = vcombine.high %v105_v30, %v105_v30  ;;  %v178_v36 = vrot.slane %v105_v30, %v177_v21  ;;  %v166_v37 = vld [vmem:[%s753_s3 + $0x1e0] sm:$0xff]  ;;  %v167_v38 = vld [vmem:[%s753_s3 + $0x1e8] sm:$0xff]  ;;  %v474_v42 = vpack.c.bf16 %v149_v32, %v148_v25 }
  0x17   :  { %v448_v43 = vpack.c.bf16 %v137_v34, %v136_v33  ;;  %v120_v44 = vld [vmem:[%s753_s3 + $0x70] sm:$0xff]  ;;  %v121_v45 = vld [vmem:[%s753_s3 + $0x78] sm:$0xff]  ;;  %v476_v46 = vpack.c.bf16 %v167_v38, %v166_v37  ;;  %v150_v47 = vld [vmem:[%s753_s3 + $0x160] sm:$0xff] }
  0x18   :  { %439 = vmatpush3.bf16.msra.mxu1 %v438_v11  ;;  %v186_v40 = vcombine.high %v178_v36, %v178_v36  ;;  %v185_v41 = vrot.slane %v171_v35, %v177_v21  ;;  %v151_v48 = vld [vmem:[%s753_s3 + $0x168] sm:$0xff]  ;;  %v168_v50 = vld [vmem:[%s753_s3 + $0x1f0] sm:$0xff]  ;;  %v169_v51 = vld [vmem:[%s753_s3 + $0x1f8] sm:$0xff]  ;;  %v450_v52 = vpack.c.bf16 %v121_v45, %v120_v44 }
  0x19   :  { %467 = vmatpush3.bf16.msra.mxu0 %v466_v12  ;;  %441 = vmatprep.subr.bf16.mxu1 %v440_v14  ;;  %v478_v53 = vpack.c.bf16 %v151_v48, %v150_v47  ;;  %v480_v54 = vpack.c.bf16 %v169_v51, %v168_v50  ;;  %v152_v55 = vld [vmem:[%s753_s3 + $0x170] sm:$0xff]  ;;  %v153_v56 = vld [vmem:[%s753_s3 + $0x178] sm:$0xff] }
  0x1a   :  { %469 = vmatprep.subr.bf16.mxu0 %v468_v17  ;;  %256 = vmatprep.mubr.f32.mxu1 %v186_v40  ;;  %v187_v49 = vcombine.high %v185_v41, %v185_v41  ;;  %v482_v57 = vpack.c.bf16 %v153_v56, %v152_v55 }
  0x1c   :  { %443 = vmatpush3.bf16.msra.mxu1 %v442_v24  ;;  %326 = vmatprep.mubr.f32.mxu0 %v187_v49 }
  0x1d   :  { %471 = vmatpush3.bf16.msra.mxu0 %v470_v26  ;;  %445 = vmatprep.subr.bf16.mxu1 %v444_v27 }
  0x1e   :  { %473 = vmatprep.subr.bf16.mxu0 %v472_v31 }
  0x20   :  { %447 = vmatpush3.bf16.msra.mxu1 %v446_v39 }
  0x21   :  { %475 = vmatpush3.bf16.msra.mxu0 %v474_v42  ;;  %449 = vmatprep.subr.bf16.mxu1 %v448_v43 }
  0x22   :  { %477 = vmatprep.subr.bf16.mxu0 %v476_v46 }
  0x24   :  { %451 = vmatpush3.bf16.msra.mxu1 %v450_v52 }
  0x25   :  { %479 = vmatpush3.bf16.msra.mxu0 %v478_v53 }
  0x26   :  { %481 = vmatprep.subr.bf16.mxu0 %v480_v54 }
  0x27   :  { %257 = vmatmul.mubr.f32.vlgmr.msra.gmra.mrb[0].mxu1 %v178_v36 }
  0x29   :  { %483 = vmatpush3.bf16.msra.mxu0 %v482_v57 }
  0x2c   :  { %327 = vmatmul.mubr.f32.vlgmr.msra.gmra.mrb[2].mxu0 %v185_v41 }
  0xdf   :  { %v98_v58 = vpop.f32.mrb[0].mxu0 }
  0xe0   :  { %103 = vst [vmem:[%s756_s4] sm:$0xff] %v98_v58  ;;  %v100_v59 = vpop.f32.mrb[1].mxu0 }
  0xe1   :  { %104 = vst.msk [vmem:[%s756_s4 + $0x8] sm:$0xff] %vm28_vm0, %v100_v59 }
  0xfa   :  { %v374_v60 = vpop.f32.mrb[0].mxu1 }
  0xfb   :  { %v375_v61 = vpop.f32.mrb[1].mxu1 }
  0xfc   :  { %v376_v62 = vadd.f32 %v375_v61, %v374_v60 }
  0xff   :  { %v409_v63 = vpop.f32.mrb[2].mxu0 }
 0x100   :  { %v410_v0 = vpop.f32.mrb[3].mxu0 }
 0x101   :  { %v411_v1 = vadd.f32 %v410_v0, %v409_v63 }
 0x103   :  { %v329_v2 = vadd.f32 %v411_v1, %v376_v62 }
 0x105   :  { %332 = vst [vmem:[%s757_s5] sm:$0x3] %v329_v2 }

// kernel: _lambda_.17
= control target key start
LH: loop header
LB: loop body
LE: loop exit
PB: predicated region body
PF: predicated region fallthrough
CT: control target
= control target key end

     0   :  { %v767_v3 = vmov 0.0   ;;  %vm26_vm0 = vcmask 130048   ;;  %v768_v32 = vmov 0.0|0.0   ;;  %vm769_vm1 = vmmov 0   ;;  %s1289_s3 = inlined_call_operand.vmem [shape: f32[576,144], index: 3, kind: input, shape index: {}]   ;;  %s1290_s0 = inlined_call_operand.vmem [shape: f32[16,336], index: 0, kind: input, shape index: {}]   ;;  %s1291_s1 = inlined_call_operand.vmem [shape: f32[4,16], index: 1, kind: input, shape index: {}]   ;;  %s1292_s2 = inlined_call_operand.vmem [shape: f32[2,576], index: 2, kind: input, shape index: {}]   ;;  %s1293_s4 = inlined_call_operand.vmem [shape: f32[4,336], index: 4, kind: output, shape index: {0}]   ;;  %s1294_s5 = inlined_call_operand.vmem [shape: f32[2,144], index: 5, kind: output, shape index: {1}]  }
   0x1   :  { %v245_v0 = vld [vmem:[%s1289_s3 + $0x208] sm:$0xff]  ;;  %v247_v1 = vld [vmem:[%s1289_s3 + $0x218] sm:$0xff]  ;;  %v244_v2 = vld [vmem:[%s1289_s3 + $0x200] sm:$0xff]  ;;  %94 = vmatprep.mubr.f32.mxu1 %v767_v3  ;;  %vm354_vm2 = vcmask 523264   ;;  %vm176_vm3 = vcmask 650240   ;;  %vm581_vm4 = vcmask 1041408  }
   0x2   :  { %v678_v4 = vpack.c.bf16 %v247_v1, %v245_v0  ;;  %v246_v5 = vld [vmem:[%s1289_s3 + $0x210] sm:$0xff]  ;;  %v249_v6 = vld [vmem:[%s1289_s3 + $0x228] sm:$0xff]  ;;  %v251_v7 = vld [vmem:[%s1289_s3 + $0x238] sm:$0xff]  ;;  %vm582_vm5 = vcmask 125954  }
   0x3   :  { %v680_v8 = vpack.c.bf16 %v246_v5, %v244_v2  ;;  %v682_v9 = vpack.c.bf16 %v251_v7, %v249_v6  ;;  %v248_v10 = vld [vmem:[%s1289_s3 + $0x220] sm:$0xff]  ;;  %v250_v11 = vld [vmem:[%s1289_s3 + $0x230] sm:$0xff]  ;;  %v21_v12 = vld [vmem:[%s1290_s0 + $0x8] sm:$0xff] }
   0x4   :  { %679 = vmatprep.subr.bf16.mxu0 %v678_v4  ;;  %v24_v13 = vld [vmem:[%s1290_s0 + $0x20] sm:$0xff]  ;;  %v23_v15 = vld [vmem:[%s1290_s0 + $0x18] sm:$0xff]  ;;  %v684_v16 = vpack.c.bf16 %v250_v11, %v248_v10  ;;  %v253_v19 = vld [vmem:[%s1289_s3 + $0x248] sm:$0xff] }
   0x5   :  { %v20_v14 = vld [vmem:[%s1290_s0] sm:$0xff]  ;;  %681 = vmatpush1.bf16.msra.mxu0 %v680_v8  ;;  %v607_v17 = vpack.c.bf16 %v24_v13, %v21_v12  ;;  %v255_v20 = vld [vmem:[%s1289_s3 + $0x258] sm:$0xff]  ;;  %v254_v23 = vld [vmem:[%s1289_s3 + $0x250] sm:$0xff] }
   0x6   :  { %v609_v18 = vpack.c.bf16 %v23_v15, %v20_v14  ;;  %683 = vmatprep.subr.bf16.mxu0 %v682_v9  ;;  %v686_v21 = vpack.c.bf16 %v255_v20, %v253_v19  ;;  %v252_v22 = vld [vmem:[%s1289_s3 + $0x240] sm:$0xff]  ;;  %v22_v24 = vld [vmem:[%s1290_s0 + $0x10] sm:$0xff]  ;;  %v25_v25 = vld [vmem:[%s1290_s0 + $0x28] sm:$0xff] }
   0x7   :  { %608 = vmatprep.subr.bf16.mxu1 %v607_v17  ;;  %v257_v26 = vld [vmem:[%s1289_s3 + $0x268] sm:$0xff]  ;;  %v259_v27 = vld [vmem:[%s1289_s3 + $0x278] sm:$0xff]  ;;  %v19_v28 = vld [vmem:[%s1291_s1] sm:$0xf]  ;;  %v612_v29 = vpack.c.bf16 %v25_v25, %v22_v24  ;;  %v688_v31 = vpack.c.bf16 %v254_v23, %v252_v22 }
   0x8   :  { %610 = vmatpush1.bf16.msra.mxu1 %v609_v18  ;;  %v181_v30 = vld [vmem:[%s1289_s3 + $0x8] sm:$0xff]  ;;  %v183_v33 = vld [vmem:[%s1289_s3 + $0x18] sm:$0xff]  ;;  %v180_v34 = vld [vmem:[%s1289_s3] sm:$0xff]  ;;  %v690_v36 = vpack.c.bf16 %v259_v27, %v257_v26 }
   0x9   :  { %685 = vmatpush1.bf16.msra.mxu0 %v684_v16  ;;  %611 = vmatprep.subr.bf16.mxu1 %v768_v32  ;;  %v182_v35 = vld [vmem:[%s1289_s3 + $0x10] sm:$0xff]  ;;  %v256_v37 = vld [vmem:[%s1289_s3 + $0x260] sm:$0xff]  ;;  %v614_v39 = vpack.c.bf16 %v183_v33, %v181_v30  ;;  %v261_v40 = vld [vmem:[%s1289_s3 + $0x288] sm:$0xff] }
   0xa   :  { %687 = vmatprep.subr.bf16.mxu0 %v686_v21  ;;  %v258_v38 = vld [vmem:[%s1289_s3 + $0x270] sm:$0xff]  ;;  %v263_v41 = vld [vmem:[%s1289_s3 + $0x298] sm:$0xff]  ;;  %v185_v42 = vld [vmem:[%s1289_s3 + $0x28] sm:$0xff]  ;;  %v616_v44 = vpack.c.bf16 %v182_v35, %v180_v34 }
   0xb   :  { %593 = vmatmul.mubr.msk.f32.vlgmr.msra.gmra.mrb[0].mxu1 %vm26_vm0, %v19_v28  ;;  %v187_v43 = vld [vmem:[%s1289_s3 + $0x38] sm:$0xff]  ;;  %v692_v45 = vpack.c.bf16 %v258_v38, %v256_v37  ;;  %v260_v46 = vld [vmem:[%s1289_s3 + $0x280] sm:$0xff]  ;;  %v186_v49 = vld [vmem:[%s1289_s3 + $0x30] sm:$0xff]  ;;  %v694_v50 = vpack.c.bf16 %v263_v41, %v261_v40 }
   0xc   :  { %613 = vmatpush3.bf16.msra.mxu1 %v612_v29  ;;  %604 = vmatprep.mubr.msk.f32.mxu1 %vm769_vm1, %v767_v3  ;;  %v618_v47 = vpack.c.bf16 %v187_v43, %v185_v42  ;;  %v184_v48 = vld [vmem:[%s1289_s3 + $0x20] sm:$0xff]  ;;  %v262_v51 = vld [vmem:[%s1289_s3 + $0x290] sm:$0xff]  ;;  %v189_v52 = vld [vmem:[%s1289_s3 + $0x48] sm:$0xff] }
   0xd   :  { %689 = vmatpush1.bf16.msra.mxu0 %v688_v31  ;;  %615 = vmatprep.subr.bf16.mxu1 %v614_v39  ;;  %v191_v53 = vld [vmem:[%s1289_s3 + $0x58] sm:$0xff]  ;;  %v265_v54 = vld [vmem:[%s1289_s3 + $0x2a8] sm:$0xff]  ;;  %v620_v56 = vpack.c.bf16 %v186_v49, %v184_v48  ;;  %v696_v57 = vpack.c.bf16 %v262_v51, %v260_v46  ;;  %v264_v58 = vld [vmem:[%s1289_s3 + $0x2a0] sm:$0xff]  ;;  %v330_v49 = vlaneseq }
   0xe   :  { %691 = vmatprep.subr.bf16.mxu0 %v690_v36  ;;  %v267_v55 = vld [vmem:[%s1289_s3 + $0x2b8] sm:$0xff]  ;;  %v622_v59 = vpack.c.bf16 %v191_v53, %v189_v52  ;;  %v188_v60 = vld [vmem:[%s1289_s3 + $0x40] sm:$0xff]  ;;  %v190_v61 = vld [vmem:[%s1289_s3 + $0x50] sm:$0xff] }
   0xf   :  { %605 = vmatmul.mubr.msk.f32.vlgmr.msra.gmra.mrb[2].mxu1 %vm26_vm0, %v19_v28  ;;  %v698_v62 = vpack.c.bf16 %v267_v55, %v265_v54  ;;  %v266_v63 = vld [vmem:[%s1289_s3 + $0x2b0] sm:$0xff]  ;;  %v193_v0 = vld [vmem:[%s1289_s3 + $0x68] sm:$0xff]  ;;  %v195_v1 = vld [vmem:[%s1289_s3 + $0x78] sm:$0xff]  ;;  %v624_v5 = vpack.c.bf16 %v190_v61, %v188_v60 }
  0x10   :  { %617 = vmatpush1.bf16.msra.mxu1 %v616_v44  ;;  %v269_v2 = vld [vmem:[%s1289_s3 + $0x2c8] sm:$0xff]  ;;  %v271_v4 = vld [vmem:[%s1289_s3 + $0x2d8] sm:$0xff]  ;;  %v700_v6 = vpack.c.bf16 %v266_v63, %v264_v58  ;;  %v268_v7 = vld [vmem:[%s1289_s3 + $0x2c0] sm:$0xff]  ;;  %v626_v8 = vpack.c.bf16 %v195_v1, %v193_v0  ;;  %v331_v63 = vshrl.u32 %v330_v49, 7 }
  0x11   :  { %693 = vmatpush1.bf16.msra.mxu0 %v692_v45  ;;  %619 = vmatprep.subr.bf16.mxu1 %v618_v47  ;;  %v192_v9 = vld [vmem:[%s1289_s3 + $0x60] sm:$0xff]  ;;  %v194_v10 = vld [vmem:[%s1289_s3 + $0x70] sm:$0xff]  ;;  %v702_v11 = vpack.c.bf16 %v271_v4, %v269_v2  ;;  %v197_v13 = vld [vmem:[%s1289_s3 + $0x88] sm:$0xff]  ;;  %v770_v47 = vmov 1983009808  }
  0x12   :  { %695 = vmatprep.subr.bf16.mxu0 %v694_v50  ;;  %v270_v12 = vld [vmem:[%s1289_s3 + $0x2d0] sm:$0xff]  ;;  %v199_v14 = vld [vmem:[%s1289_s3 + $0x98] sm:$0xff]  ;;  %v273_v15 = vld [vmem:[%s1289_s3 + $0x2e8] sm:$0xff]  ;;  %v628_v17 = vpack.c.bf16 %v194_v10, %v192_v9  ;;  %v328_v48 = vunpack.c.l.s4 %v770_v47 }
  0x13   :  { %v275_v16 = vld [vmem:[%s1289_s3 + $0x2f8] sm:$0xff]  ;;  %v704_v18 = vpack.c.bf16 %v270_v12, %v268_v7  ;;  %v272_v19 = vld [vmem:[%s1289_s3 + $0x2e0] sm:$0xff]  ;;  %v630_v20 = vpack.c.bf16 %v199_v14, %v197_v13  ;;  %v198_v22 = vld [vmem:[%s1289_s3 + $0x90] sm:$0xff] }
  0x14   :  { %621 = vmatpush1.bf16.msra.mxu1 %v620_v56  ;;  %v196_v21 = vld [vmem:[%s1289_s3 + $0x80] sm:$0xff]  ;;  %v706_v23 = vpack.c.bf16 %v275_v16, %v273_v15  ;;  %v274_v24 = vld [vmem:[%s1289_s3 + $0x2f0] sm:$0xff]  ;;  %v201_v25 = vld [vmem:[%s1289_s3 + $0xa8] sm:$0xff] }
  0x15   :  { %697 = vmatpush1.bf16.msra.mxu0 %v696_v57  ;;  %623 = vmatprep.subr.bf16.mxu1 %v622_v59  ;;  %v203_v26 = vld [vmem:[%s1289_s3 + $0xb8] sm:$0xff]  ;;  %v277_v27 = vld [vmem:[%s1289_s3 + $0x308] sm:$0xff]  ;;  %v632_v29 = vpack.c.bf16 %v198_v22, %v196_v21  ;;  %v708_v30 = vpack.c.bf16 %v274_v24, %v272_v19  ;;  %v276_v31 = vld [vmem:[%s1289_s3 + $0x300] sm:$0xff] }
  0x16   :  { %699 = vmatprep.subr.bf16.mxu0 %v698_v62  ;;  %v279_v28 = vld [vmem:[%s1289_s3 + $0x318] sm:$0xff]  ;;  %v634_v32 = vpack.c.bf16 %v203_v26, %v201_v25  ;;  %v200_v33 = vld [vmem:[%s1289_s3 + $0xa0] sm:$0xff]  ;;  %v202_v34 = vld [vmem:[%s1289_s3 + $0xb0] sm:$0xff]  ;;  %v329_v62 = vunpack.c.0.s8 %v328_v48 }
  0x17   :  { %v710_v35 = vpack.c.bf16 %v279_v28, %v277_v27  ;;  %v278_v36 = vld [vmem:[%s1289_s3 + $0x310] sm:$0xff]  ;;  %v205_v37 = vld [vmem:[%s1289_s3 + $0xc8] sm:$0xff]  ;;  %v207_v38 = vld [vmem:[%s1289_s3 + $0xd8] sm:$0xff]  ;;  %v636_v41 = vpack.c.bf16 %v202_v34, %v200_v33 }
  0x18   :  { %625 = vmatpush1.bf16.msra.mxu1 %v624_v5  ;;  %v281_v39 = vld [vmem:[%s1289_s3 + $0x328] sm:$0xff]  ;;  %v283_v40 = vld [vmem:[%s1289_s3 + $0x338] sm:$0xff]  ;;  %v712_v42 = vpack.c.bf16 %v278_v36, %v276_v31  ;;  %v280_v43 = vld [vmem:[%s1289_s3 + $0x320] sm:$0xff]  ;;  %v638_v44 = vpack.c.bf16 %v207_v38, %v205_v37  ;;  %v1078_v14 = vsub.s32 %v329_v62, %v331_v63 }
  0x19   :  { %701 = vmatpush1.bf16.msra.mxu0 %v700_v6  ;;  %627 = vmatprep.subr.bf16.mxu1 %v626_v8  ;;  %v204_v45 = vld [vmem:[%s1289_s3 + $0xc0] sm:$0xff]  ;;  %v206_v46 = vld [vmem:[%s1289_s3 + $0xd0] sm:$0xff]  ;;  %v714_v50 = vpack.c.bf16 %v283_v40, %v281_v39  ;;  %v209_v52 = vld [vmem:[%s1289_s3 + $0xe8] sm:$0xff] }
  0x1a   :  { %703 = vmatprep.subr.bf16.mxu0 %v702_v11  ;;  %v282_v51 = vld [vmem:[%s1289_s3 + $0x330] sm:$0xff]  ;;  %v211_v53 = vld [vmem:[%s1289_s3 + $0xf8] sm:$0xff]  ;;  %v285_v54 = vld [vmem:[%s1289_s3 + $0x348] sm:$0xff]  ;;  %v640_v56 = vpack.c.bf16 %v206_v46, %v204_v45 }
  0x1b   :  { %v287_v55 = vld [vmem:[%s1289_s3 + $0x358] sm:$0xff]  ;;  %v716_v57 = vpack.c.bf16 %v282_v51, %v280_v43  ;;  %v284_v58 = vld [vmem:[%s1289_s3 + $0x340] sm:$0xff]  ;;  %v642_v59 = vpack.c.bf16 %v211_v53, %v209_v52  ;;  %v210_v61 = vld [vmem:[%s1289_s3 + $0xf0] sm:$0xff] }
  0x1c   :  { %629 = vmatpush1.bf16.msra.mxu1 %v628_v17  ;;  %v208_v60 = vld [vmem:[%s1289_s3 + $0xe0] sm:$0xff]  ;;  %v718_v0 = vpack.c.bf16 %v287_v55, %v285_v54  ;;  %v286_v1 = vld [vmem:[%s1289_s3 + $0x350] sm:$0xff]  ;;  %v213_v2 = vld [vmem:[%s1289_s3 + $0x108] sm:$0xff] }
  0x1d   :  { %705 = vmatpush1.bf16.msra.mxu0 %v704_v18  ;;  %631 = vmatprep.subr.bf16.mxu1 %v630_v20  ;;  %v215_v4 = vld [vmem:[%s1289_s3 + $0x118] sm:$0xff]  ;;  %v289_v5 = vld [vmem:[%s1289_s3 + $0x368] sm:$0xff]  ;;  %v644_v7 = vpack.c.bf16 %v210_v61, %v208_v60  ;;  %v288_v8 = vld [vmem:[%s1289_s3 + $0x360] sm:$0xff]  ;;  %v720_v9 = vpack.c.bf16 %v286_v1, %v284_v58 }
  0x1e   :  { %707 = vmatprep.subr.bf16.mxu0 %v706_v23  ;;  %v291_v6 = vld [vmem:[%s1289_s3 + $0x378] sm:$0xff]  ;;  %v290_v10 = vld [vmem:[%s1289_s3 + $0x370] sm:$0xff]  ;;  %v646_v11 = vpack.c.bf16 %v215_v4, %v213_v2  ;;  %v212_v12 = vld [vmem:[%s1289_s3 + $0x100] sm:$0xff] }
  0x1f   :  { %v214_v13 = vld [vmem:[%s1289_s3 + $0x110] sm:$0xff]  ;;  %v722_v15 = vpack.c.bf16 %v291_v6, %v289_v5  ;;  %v217_v16 = vld [vmem:[%s1289_s3 + $0x128] sm:$0xff]  ;;  %v219_v17 = vld [vmem:[%s1289_s3 + $0x138] sm:$0xff]  ;;  %v724_v24 = vpack.c.bf16 %v290_v10, %v288_v8 }
  0x20   :  { %633 = vmatpush1.bf16.msra.mxu1 %v632_v29  ;;  %v178_v18 = vld [vmem:[%s1292_s2] sm:$0xff]  ;;  %v293_v19 = vld [vmem:[%s1289_s3 + $0x388] sm:$0xff]  ;;  %v295_v20 = vld [vmem:[%s1289_s3 + $0x398] sm:$0xff]  ;;  %v648_v23 = vpack.c.bf16 %v214_v13, %v212_v12  ;;  %v650_v26 = vpack.c.bf16 %v219_v17, %v217_v16 }
  0x21   :  { %709 = vmatpush1.bf16.msra.mxu0 %v708_v30  ;;  %635 = vmatprep.subr.bf16.mxu1 %v634_v32  ;;  %v326_v21 = vcombine.high %v178_v18, %v178_v18  ;;  %v1096_v22 = vrot.slane %v178_v18, %v1078_v14  ;;  %v292_v25 = vld [vmem:[%s1289_s3 + $0x380] sm:$0xff]  ;;  %v218_v28 = vld [vmem:[%s1289_s3 + $0x130] sm:$0xff]  ;;  %v726_v30 = vpack.c.bf16 %v295_v20, %v293_v19  ;;  %v221_v32 = vld [vmem:[%s1289_s3 + $0x148] sm:$0xff] }
  0x22   :  { %711 = vmatprep.subr.bf16.mxu0 %v710_v35  ;;  %v216_v27 = vld [vmem:[%s1289_s3 + $0x120] sm:$0xff]  ;;  %v294_v31 = vld [vmem:[%s1289_s3 + $0x390] sm:$0xff]  ;;  %v223_v33 = vld [vmem:[%s1289_s3 + $0x158] sm:$0xff] }
  0x23   :  { %v1108_v29 = vrot.slane %v326_v21, %v1078_v14  ;;  %v341_v34 = vcombine.high %v1096_v22, %v1096_v22  ;;  %v297_v35 = vld [vmem:[%s1289_s3 + $0x3a8] sm:$0xff]  ;;  %v299_v36 = vld [vmem:[%s1289_s3 + $0x3b8] sm:$0xff]  ;;  %v652_v38 = vpack.c.bf16 %v218_v28, %v216_v27  ;;  %v728_v39 = vpack.c.bf16 %v294_v31, %v292_v25  ;;  %v296_v40 = vld [vmem:[%s1289_s3 + $0x3a0] sm:$0xff] }
  0x24   :  { %637 = vmatpush1.bf16.msra.mxu1 %v636_v41  ;;  %v654_v41 = vpack.c.bf16 %v223_v33, %v221_v32  ;;  %v222_v43 = vld [vmem:[%s1289_s3 + $0x150] sm:$0xff]  ;;  %v225_v46 = vld [vmem:[%s1289_s3 + $0x168] sm:$0xff]  ;;  %v227_v47 = vld [vmem:[%s1289_s3 + $0x178] sm:$0xff] }
  0x25   :  { %713 = vmatpush1.bf16.msra.mxu0 %v712_v42  ;;  %639 = vmatprep.subr.bf16.mxu1 %v638_v44  ;;  %v342_v37 = vcombine.high %v1108_v29, %v1108_v29  ;;  %v220_v42 = vld [vmem:[%s1289_s3 + $0x140] sm:$0xff]  ;;  %v730_v44 = vpack.c.bf16 %v299_v36, %v297_v35  ;;  %v298_v45 = vld [vmem:[%s1289_s3 + $0x3b0] sm:$0xff]  ;;  %v301_v48 = vld [vmem:[%s1289_s3 + $0x3c8] sm:$0xff]  ;;  %v658_v53 = vpack.c.bf16 %v227_v47, %v225_v46 }
  0x26   :  { %715 = vmatprep.subr.bf16.mxu0 %v714_v50  ;;  %421 = vmatprep.mubr.f32.mxu1 %v341_v34  ;;  %v303_v49 = vld [vmem:[%s1289_s3 + $0x3d8] sm:$0xff]  ;;  %v656_v50 = vpack.c.bf16 %v222_v43, %v220_v42  ;;  %v732_v51 = vpack.c.bf16 %v298_v45, %v296_v40  ;;  %v300_v52 = vld [vmem:[%s1289_s3 + $0x3c0] sm:$0xff]  ;;  %v226_v55 = vld [vmem:[%s1289_s3 + $0x170] sm:$0xff] }
  0x27   :  { %492 = vmatprep.mubr.f32.mxu0 %v342_v37  ;;  %v224_v54 = vld [vmem:[%s1289_s3 + $0x160] sm:$0xff]  ;;  %v229_v58 = vld [vmem:[%s1289_s3 + $0x188] sm:$0xff]  ;;  %v307_v61 = vld [vmem:[%s1289_s3 + $0x3f8] sm:$0xff] }
  0x28   :  { %641 = vmatpush1.bf16.msra.mxu1 %v640_v56  ;;  %v734_v56 = vpack.c.bf16 %v303_v49, %v301_v48  ;;  %v305_v60 = vld [vmem:[%s1289_s3 + $0x3e8] sm:$0xff]  ;;  %v660_v62 = vpack.c.bf16 %v226_v55, %v224_v54  ;;  %v228_v2 = vld [vmem:[%s1289_s3 + $0x180] sm:$0xff]  ;;  %v230_v4 = vld [vmem:[%s1289_s3 + $0x190] sm:$0xff] }
  0x29   :  { %717 = vmatpush1.bf16.msra.mxu0 %v716_v57  ;;  %643 = vmatprep.subr.bf16.mxu1 %v642_v59  ;;  %v302_v57 = vld [vmem:[%s1289_s3 + $0x3d0] sm:$0xff]  ;;  %v231_v59 = vld [vmem:[%s1289_s3 + $0x198] sm:$0xff]  ;;  %v738_v5 = vpack.c.bf16 %v307_v61, %v305_v60  ;;  %v308_v13 = vld [vmem:[%s1289_s3 + $0x400] sm:$0xff] }
  0x2a   :  { %719 = vmatprep.subr.bf16.mxu0 %v718_v0  ;;  %v736_v63 = vpack.c.bf16 %v302_v57, %v300_v52  ;;  %v304_v0 = vld [vmem:[%s1289_s3 + $0x3e0] sm:$0xff]  ;;  %v662_v1 = vpack.c.bf16 %v231_v59, %v229_v58  ;;  %v306_v6 = vld [vmem:[%s1289_s3 + $0x3f0] sm:$0xff]  ;;  %v235_v8 = vld [vmem:[%s1289_s3 + $0x1b8] sm:$0xff] }
  0x2b   :  { %v311_v10 = vld [vmem:[%s1289_s3 + $0x418] sm:$0xff]  ;;  %v740_v12 = vpack.c.bf16 %v306_v6, %v304_v0  ;;  %v232_v16 = vld [vmem:[%s1289_s3 + $0x1a0] sm:$0xff]  ;;  %v234_v17 = vld [vmem:[%s1289_s3 + $0x1b0] sm:$0xff] }
  0x2c   :  { %645 = vmatpush1.bf16.msra.mxu1 %v644_v7  ;;  %v233_v7 = vld [vmem:[%s1289_s3 + $0x1a8] sm:$0xff]  ;;  %v310_v19 = vld [vmem:[%s1289_s3 + $0x410] sm:$0xff]  ;;  %v239_v21 = vld [vmem:[%s1289_s3 + $0x1d8] sm:$0xff]  ;;  %v668_v25 = vpack.c.bf16 %v234_v17, %v232_v16 }
  0x2d   :  { %721 = vmatpush1.bf16.msra.mxu0 %v720_v9  ;;  %647 = vmatprep.subr.bf16.mxu1 %v646_v11  ;;  %v309_v9 = vld [vmem:[%s1289_s3 + $0x408] sm:$0xff]  ;;  %v664_v11 = vpack.c.bf16 %v230_v4, %v228_v2  ;;  %v312_v27 = vld [vmem:[%s1289_s3 + $0x420] sm:$0xff]  ;;  %v238_v31 = vld [vmem:[%s1289_s3 + $0x1d0] sm:$0xff] }
  0x2e   :  { %723 = vmatprep.subr.bf16.mxu0 %v722_v15  ;;  %v666_v15 = vpack.c.bf16 %v235_v8, %v233_v7  ;;  %v742_v18 = vpack.c.bf16 %v311_v10, %v309_v9  ;;  %v237_v20 = vld [vmem:[%s1289_s3 + $0x1c8] sm:$0xff]  ;;  %v314_v33 = vld [vmem:[%s1289_s3 + $0x430] sm:$0xff]  ;;  %v243_v35 = vld [vmem:[%s1289_s3 + $0x1f8] sm:$0xff] }
  0x2f   :  { %v670_v28 = vpack.c.bf16 %v239_v21, %v237_v20  ;;  %v241_v34 = vld [vmem:[%s1289_s3 + $0x1e8] sm:$0xff]  ;;  %v319_v37 = vld [vmem:[%s1289_s3 + $0x458] sm:$0xff]  ;;  %v242_v42 = vld [vmem:[%s1289_s3 + $0x1f0] sm:$0xff] }
  0x30   :  { %649 = vmatpush1.bf16.msra.mxu1 %v648_v23  ;;  %v313_v23 = vld [vmem:[%s1289_s3 + $0x428] sm:$0xff]  ;;  %v674_v40 = vpack.c.bf16 %v243_v35, %v241_v34  ;;  %v323_v46 = vld [vmem:[%s1289_s3 + $0x478] sm:$0xff]  ;;  %vm583_vm6 = vmor %vm582_vm5, %vm581_vm4 }
  0x31   :  { %725 = vmatpush1.bf16.msra.mxu0 %v724_v24  ;;  %651 = vmatprep.subr.bf16.mxu1 %v650_v26  ;;  %v315_v24 = vld [vmem:[%s1289_s3 + $0x438] sm:$0xff]  ;;  %v744_v26 = vpack.c.bf16 %v310_v19, %v308_v13  ;;  %v317_v36 = vld [vmem:[%s1289_s3 + $0x448] sm:$0xff] }
  0x32   :  { %727 = vmatprep.subr.bf16.mxu0 %v726_v30  ;;  %v236_v30 = vld [vmem:[%s1289_s3 + $0x1c0] sm:$0xff]  ;;  %v746_v32 = vpack.c.bf16 %v315_v24, %v313_v23  ;;  %v750_v43 = vpack.c.bf16 %v319_v37, %v317_v36  ;;  %v321_v45 = vld [vmem:[%s1289_s3 + $0x468] sm:$0xff] }
  0x33   :  { %v754_v49 = vpack.c.bf16 %v323_v46, %v321_v45  ;;  %v595_v52 = vld.sshfl [vmem:[%s1292_s2 + $0x8] sm:$0x3 pattern:$0x76325410] }
  0x34   :  { %653 = vmatpush1.bf16.msra.mxu1 %v652_v38  ;;  %v672_v38 = vpack.c.bf16 %v238_v31, %v236_v30 }
  0x35   :  { %729 = vmatpush1.bf16.msra.mxu0 %v728_v39  ;;  %655 = vmatprep.subr.bf16.mxu1 %v654_v41  ;;  %v748_v39 = vpack.c.bf16 %v314_v33, %v312_v27  ;;  %v240_v41 = vld [vmem:[%s1289_s3 + $0x1e0] sm:$0xff] }
  0x36   :  { %731 = vmatprep.subr.bf16.mxu0 %v730_v44  ;;  %v318_v44 = vld [vmem:[%s1289_s3 + $0x450] sm:$0xff]  ;;  %v676_v47 = vpack.c.bf16 %v242_v42, %v240_v41 }
  0x38   :  { %657 = vmatpush1.bf16.msra.mxu1 %v656_v50  ;;  %v320_v50 = vld [vmem:[%s1289_s3 + $0x460] sm:$0xff] }
  0x39   :  { %733 = vmatpush1.bf16.msra.mxu0 %v732_v51  ;;  %659 = vmatprep.subr.bf16.mxu1 %v658_v53 }
  0x3a   :  { %735 = vmatprep.subr.bf16.mxu0 %v734_v56 }
  0x3c   :  { %661 = vmatpush1.bf16.msra.mxu1 %v660_v62 }
  0x3d   :  { %737 = vmatpush1.bf16.msra.mxu0 %v736_v63  ;;  %663 = vmatprep.subr.bf16.mxu1 %v662_v1 }
  0x3e   :  { %739 = vmatprep.subr.bf16.mxu0 %v738_v5 }
  0x40   :  { %665 = vmatpush1.bf16.msra.mxu1 %v664_v11 }
  0x41   :  { %741 = vmatpush1.bf16.msra.mxu0 %v740_v12  ;;  %667 = vmatprep.subr.bf16.mxu1 %v666_v15 }
  0x42   :  { %743 = vmatprep.subr.bf16.mxu0 %v742_v18 }
  0x44   :  { %493 = vmatmul.mubr.f32.vlgmr.msra.gmra.mrb[0].mxu0 %v1108_v29  ;;  %669 = vmatpush1.bf16.msra.mxu1 %v668_v25  ;;  %v316_v29 = vld [vmem:[%s1289_s3 + $0x440] sm:$0xff] }
  0x45   :  { %745 = vmatpush1.bf16.msra.mxu0 %v744_v26  ;;  %671 = vmatprep.subr.bf16.mxu1 %v670_v28  ;;  %v752_v48 = vpack.c.bf16 %v318_v44, %v316_v29 }
  0x46   :  { %747 = vmatprep.subr.bf16.mxu0 %v746_v32  ;;  %563 = vmatprep.mubr.f32.mxu0 %v767_v3  ;;  %v322_v3 = vld [vmem:[%s1289_s3 + $0x470] sm:$0xff] }
  0x47   :  { %v756_v51 = vpack.c.bf16 %v322_v3, %v320_v50 }
  0x48   :  { %673 = vmatpush1.bf16.msra.mxu1 %v672_v38 }
  0x49   :  { %749 = vmatpush1.bf16.msra.mxu0 %v748_v39  ;;  %675 = vmatprep.subr.bf16.mxu1 %v674_v40 }
  0x4a   :  { %751 = vmatprep.subr.bf16.mxu0 %v750_v43 }
  0x4c   :  { %677 = vmatpush1.bf16.msra.mxu1 %v676_v47 }
  0x4d   :  { %753 = vmatpush1.bf16.msra.mxu0 %v752_v48 }
  0x4e   :  { %755 = vmatprep.subr.bf16.mxu0 %v754_v49 }
  0x4f   :  { %422 = vmatmul.mubr.f32.vlgmr.msra.gmra.mrb[4].mxu1 %v1096_v22 }
  0x51   :  { %757 = vmatpush1.bf16.msra.mxu0 %v756_v51 }
  0x54   :  { %596 = vmatmul.mubr.msk.f32.vlgmr.msra.gmra.mrb[0].mxu0 %vm354_vm2, %v595_v52 }
  0xde   :  { %v96_v53 = vpop.f32.mrb[0].mxu1 }
  0xdf   :  { %v98_v54 = vpop.f32.mrb[1].mxu1 }
  0xe0   :  { %v173_v55 = vcombine.low %v96_v53, %v98_v54 }
  0xe2   :  { %175 = vst [vmem:[%s1293_s4] sm:$0xff] %v173_v55  ;;  %v167_v56 = vpop.f32.mrb[2].mxu1 }
  0xe3   :  { %177 = vst.msk [vmem:[%s1293_s4 + $0x8] sm:$0xf] %vm176_vm3, %v167_v56  ;;  %v606_v22 = vpop.f32.mrb[3].mxu1 }
 0x122   :  { %v423_v57 = vpop.f32.mrb[4].mxu1 }
 0x123   :  { %v425_v58 = vpop.f32.mrb[5].mxu1 }
 0x127   :  { %v565_v59 = vpop.f32.mrb[0].mxu0 }
 0x128   :  { %v758_v60 = vadd.f32 %v565_v59, %v423_v57  ;;  %v567_v61 = vpop.f32.mrb[1].mxu0 }
 0x129   :  { %v759_v62 = vadd.f32 %v567_v61, %v425_v58 }
 0x12b   :  { %v572_v63 = vcombine.low %v758_v60, %v759_v62 }
 0x12d   :  { %v579_v0 = vrot.slane %v572_v63, %v1078_v14 }
 0x12f   :  { %584 = vst.msk [vmem:[%s1294_s5] sm:$0xf] %vm583_vm6, %v579_v0 }

// kernel: _lambda_.19
= control target key start
LH: loop header
LB: loop body
LE: loop exit
PB: predicated region body
PF: predicated region fallthrough
CT: control target
= control target key end

     0   :  { %v233_v3 = vmov 0.0   ;;  %vm28_vm0 = vcmask 64512   ;;  %v234_v7 = vmov 0   ;;  %v176_v8 = vlaneseq  ;;  %s285_s1 = inlined_call_operand.vmem [shape: f32[8,512], index: 1, kind: input, shape index: {}]   ;;  %s286_s0 = inlined_call_operand.vmem [shape: f32[2,8], index: 0, kind: input, shape index: {}]   ;;  %s287_s2 = inlined_call_operand.vmem [shape: f32[2,1], index: 2, kind: input, shape index: {}]   ;;  %s288_s3 = inlined_call_operand.vmem [shape: f32[1,512], index: 3, kind: input, shape index: {}]   ;;  %s289_s4 = inlined_call_operand.vmem [shape: f32[2,512], index: 4, kind: output, shape index: {}]  }
   0x1   :  { %v19_v0 = vld [vmem:[%s285_s1 + $0x8] sm:$0xff]  ;;  %v21_v1 = vld [vmem:[%s285_s1 + $0x18] sm:$0xff]  ;;  %v18_v2 = vld [vmem:[%s285_s1] sm:$0xff]  ;;  %96 = vmatprep.mubr.f32.mxu0 %v233_v3  ;;  %167 = vmatprep.mubr.f32.mxu1 %v233_v3  ;;  %v235_v14 = vmov 1983009808  }
   0x2   :  { %32 = vmatprep.subr.mxu0 %v19_v0  ;;  %103 = vmatprep.subr.mxu1 %v21_v1  ;;  %v20_v4 = vld [vmem:[%s285_s1 + $0x10] sm:$0xff]  ;;  %v17_v5 = vld [vmem:[%s286_s0] sm:$0x3]  ;;  %v177_v9 = vshrl.u32 %v176_v8, 7  ;;  %v207_v15 = vunpack.c.l.s4 %v235_v14 }
   0x3   :  { %33 = vmatpush1.msra.mxu0 %v18_v2  ;;  %104 = vmatpush1.msra.mxu1 %v20_v4  ;;  %v22_v6 = vld [vmem:[%s287_s2] sm:$0x3] }
   0x4   :  { %227 = vmatmul.mubr.msk.f32.vlgmr.msra.gmra.mrb[0].mxu0 %vm28_vm0, %v17_v5  ;;  %228 = vmatmul.mubr.msk.f32.vlgmr.msra.gmra.mrb[0].mxu1 %vm28_vm0, %v17_v5  ;;  %v178_v10 = vsub.s32 0, %v177_v9  ;;  %v186_v11 = vsub.s32 2, %v177_v9  ;;  %v174_v12 = vld [vmem:[%s288_s3] sm:$0xf]  ;;  %v182_v13 = vsub.s32 1, %v177_v9  ;;  %v190_v16 = vsub.s32 3, %v177_v9 }
   0x5   :  { %232 = vset.pattern.permute.xlu0 %v234_v7  ;;  %v208_v23 = vunpack.c.0.s8 %v207_v15 }
   0x6   :  { %25 = vperm.xlu0 %232, %v22_v6   ;;  %v179_v18 = vrot.slane %v174_v12, %v178_v10  ;;  %v187_v19 = vrot.slane %v174_v12, %v186_v11  ;;  %v183_v22 = vrot.slane %v174_v12, %v182_v13  ;;  %v191_v24 = vrot.slane %v174_v12, %v190_v16 }
   0x7   :  { %v211_v34 = vsub.s32 %v208_v23, %v177_v9 }
  0x85   :  { %v26_v17 = vpop.permute.xlu0 %25 }
  0xd7   :  { %v98_v20 = vpop.f32.mrb[0].mxu0  ;;  %v169_v21 = vpop.f32.mrb[0].mxu1 }
  0xd8   :  { %v99_v25 = vadd.f32 %v98_v20, %v26_v17  ;;  %v170_v26 = vadd.f32 %v169_v21, %v26_v17  ;;  %v100_v27 = vpop.f32.mrb[1].mxu0  ;;  %v171_v28 = vpop.f32.mrb[1].mxu1 }
  0xd9   :  { %v101_v29 = vadd.f32 %v100_v27, %v26_v17  ;;  %v172_v30 = vadd.f32 %v171_v28, %v26_v17 }
  0xda   :  { %v196_v31 = vmul.f32 %v179_v18, %v99_v25  ;;  %v198_v32 = vmul.f32 %v187_v19, %v170_v26 }
  0xdb   :  { %v197_v33 = vmul.f32 %v183_v22, %v101_v29  ;;  %v199_v35 = vmul.f32 %v191_v24, %v172_v30 }
  0xdd   :  { %v204_v36 = vcombine.low %v196_v31, %v197_v33  ;;  %v205_v37 = vcombine.low %v198_v32, %v199_v35 }
  0xdf   :  { %v212_v38 = vrot.slane %v204_v36, %v211_v34  ;;  %v219_v39 = vrot.slane %v205_v37, %v211_v34 }
  0xe1   :  { %v220_v40 = vcombine.low %v212_v38, %v219_v39 }
  0xe3   :  { %222 = vst [vmem:[%s289_s4] sm:$0xff] %v220_v40 }

// kernel: _lambda_.18
= control target key start
LH: loop header
LB: loop body
LE: loop exit
PB: predicated region body
PF: predicated region fallthrough
CT: control target
= control target key end

     0   :  { %v711_v2 = vmov 0.0   ;;  %vm25_vm0 = vcmask 64512   ;;  %vm712_vm1 = vmmov 0   ;;  %vm251_vm2 = vcmask 519168   ;;  %s1174_s0 = inlined_call_operand.vmem [shape: f32[8,576], index: 0, kind: input, shape index: {}]   ;;  %s1175_s1 = inlined_call_operand.vmem [shape: f32[4,8], index: 1, kind: input, shape index: {}]   ;;  %s1176_s3 = inlined_call_operand.vmem [shape: f32[512,256], index: 3, kind: input, shape index: {}]   ;;  %s1177_s2 = inlined_call_operand.vmem [shape: f32[2,512], index: 2, kind: input, shape index: {}]   ;;  %s1178_s4 = inlined_call_operand.vmem [shape: f32[4,576], index: 4, kind: output, shape index: {0}]   ;;  %s1179_s5 = inlined_call_operand.vmem [shape: f32[2,256], index: 5, kind: output, shape index: {1}]  }
   0x1   :  { %v21_v0 = vld [vmem:[%s1174_s0 + $0x8] sm:$0xff]  ;;  %v20_v1 = vld [vmem:[%s1174_s0] sm:$0xff]  ;;  %93 = vmatprep.mubr.f32.mxu0 %v711_v2  ;;  %164 = vmatprep.mubr.f32.mxu1 %v711_v2  ;;  %v23_v4 = vld [vmem:[%s1174_s0 + $0x18] sm:$0xff] }
   0x2   :  { %v19_v3 = vld [vmem:[%s1175_s1] sm:$0xf]  ;;  %29 = vmatprep.subr.mxu0 %v21_v0  ;;  %v22_v6 = vld [vmem:[%s1174_s0 + $0x10] sm:$0xff]  ;;  %100 = vmatprep.subr.mxu1 %v23_v4  ;;  %v255_v7 = vld [vmem:[%s1176_s3 + $0x8] sm:$0xff] }
   0x3   :  { %v24_v5 = vld [vmem:[%s1174_s0 + $0x20] sm:$0xff]  ;;  %30 = vmatpush1.msra.mxu0 %v20_v1  ;;  %v257_v8 = vld [vmem:[%s1176_s3 + $0x18] sm:$0xff]  ;;  %v319_v9 = vld [vmem:[%s1176_s3 + $0x208] sm:$0xff]  ;;  %101 = vmatpush1.msra.mxu1 %v22_v6 }
   0x4   :  { %566 = vmatmul.mubr.msk.f32.vlgmr.msra.gmra.mrb[0].mxu0 %vm25_vm0, %v19_v3  ;;  %572 = vmatprep.subr.mxu0 %v711_v2  ;;  %v577_v10 = vpack.c.bf16 %v257_v8, %v255_v7  ;;  %v321_v11 = vld [vmem:[%s1176_s3 + $0x218] sm:$0xff]  ;;  %v254_v12 = vld [vmem:[%s1176_s3] sm:$0xff]  ;;  %v256_v13 = vld [vmem:[%s1176_s3 + $0x10] sm:$0xff] }
   0x5   :  { %573 = vmatpush3.msra.mxu0 %v24_v5  ;;  %v641_v14 = vpack.c.bf16 %v321_v11, %v319_v9  ;;  %v579_v15 = vpack.c.bf16 %v256_v13, %v254_v12  ;;  %v318_v16 = vld [vmem:[%s1176_s3 + $0x200] sm:$0xff]  ;;  %v320_v17 = vld [vmem:[%s1176_s3 + $0x210] sm:$0xff]  ;;  %v259_v18 = vld [vmem:[%s1176_s3 + $0x28] sm:$0xff]  ;;  %574 = vmatprep.mubr.msk.f32.mxu0 %vm712_vm1, %v711_v2 }
   0x6   :  { %578 = vmatprep.subr.bf16.mxu0 %v577_v10  ;;  %v643_v19 = vpack.c.bf16 %v320_v17, %v318_v16  ;;  %v261_v20 = vld [vmem:[%s1176_s3 + $0x38] sm:$0xff]  ;;  %v323_v21 = vld [vmem:[%s1176_s3 + $0x228] sm:$0xff]  ;;  %567 = vmatmul.mubr.msk.f32.vlgmr.msra.gmra.mrb[0].mxu1 %vm25_vm0, %v19_v3  ;;  %v258_v25 = vld [vmem:[%s1176_s3 + $0x20] sm:$0xff] }
   0x7   :  { %v325_v22 = vld [vmem:[%s1176_s3 + $0x238] sm:$0xff]  ;;  %642 = vmatprep.subr.bf16.mxu1 %v641_v14  ;;  %v581_v23 = vpack.c.bf16 %v261_v20, %v259_v18  ;;  %v260_v26 = vld [vmem:[%s1176_s3 + $0x30] sm:$0xff]  ;;  %v322_v27 = vld [vmem:[%s1176_s3 + $0x220] sm:$0xff] }
   0x8   :  { %v645_v24 = vpack.c.bf16 %v325_v22, %v323_v21  ;;  %575 = vmatmul.mubr.msk.f32.vlgmr.msra.gmra.mrb[2].mxu0 %vm25_vm0, %v19_v3  ;;  %644 = vmatpush1.bf16.msra.mxu1 %v643_v19  ;;  %v324_v28 = vld [vmem:[%s1176_s3 + $0x230] sm:$0xff]  ;;  %v263_v29 = vld [vmem:[%s1176_s3 + $0x48] sm:$0xff]  ;;  %v265_v30 = vld [vmem:[%s1176_s3 + $0x58] sm:$0xff]  ;;  %v583_v31 = vpack.c.bf16 %v260_v26, %v258_v25 }
   0x9   :  { %580 = vmatpush1.bf16.msra.mxu0 %v579_v15  ;;  %v647_v32 = vpack.c.bf16 %v324_v28, %v322_v27  ;;  %v327_v33 = vld [vmem:[%s1176_s3 + $0x248] sm:$0xff]  ;;  %v329_v34 = vld [vmem:[%s1176_s3 + $0x258] sm:$0xff]  ;;  %v262_v35 = vld [vmem:[%s1176_s3 + $0x40] sm:$0xff]  ;;  %v585_v36 = vpack.c.bf16 %v265_v30, %v263_v29 }
   0xa   :  { %646 = vmatprep.subr.bf16.mxu1 %v645_v24  ;;  %582 = vmatprep.subr.bf16.mxu0 %v581_v23  ;;  %v649_v37 = vpack.c.bf16 %v329_v34, %v327_v33  ;;  %v264_v38 = vld [vmem:[%s1176_s3 + $0x50] sm:$0xff]  ;;  %v326_v39 = vld [vmem:[%s1176_s3 + $0x240] sm:$0xff]  ;;  %v267_v41 = vld [vmem:[%s1176_s3 + $0x68] sm:$0xff] }
   0xb   :  { %v328_v40 = vld [vmem:[%s1176_s3 + $0x250] sm:$0xff]  ;;  %v269_v42 = vld [vmem:[%s1176_s3 + $0x78] sm:$0xff]  ;;  %v331_v43 = vld [vmem:[%s1176_s3 + $0x268] sm:$0xff]  ;;  %v587_v46 = vpack.c.bf16 %v264_v38, %v262_v35 }
   0xc   :  { %648 = vmatpush1.bf16.msra.mxu1 %v647_v32  ;;  %v651_v44 = vpack.c.bf16 %v328_v40, %v326_v39  ;;  %v333_v45 = vld [vmem:[%s1176_s3 + $0x278] sm:$0xff]  ;;  %v266_v48 = vld [vmem:[%s1176_s3 + $0x60] sm:$0xff]  ;;  %v332_v50 = vld [vmem:[%s1176_s3 + $0x270] sm:$0xff]  ;;  %v589_v51 = vpack.c.bf16 %v269_v42, %v267_v41 }
   0xd   :  { %584 = vmatpush1.bf16.msra.mxu0 %v583_v31  ;;  %650 = vmatprep.subr.bf16.mxu1 %v649_v37  ;;  %v653_v47 = vpack.c.bf16 %v333_v45, %v331_v43  ;;  %v330_v49 = vld [vmem:[%s1176_s3 + $0x260] sm:$0xff]  ;;  %v268_v52 = vld [vmem:[%s1176_s3 + $0x70] sm:$0xff]  ;;  %v335_v53 = vld [vmem:[%s1176_s3 + $0x288] sm:$0xff] }
   0xe   :  { %586 = vmatprep.subr.bf16.mxu0 %v585_v36  ;;  %v337_v54 = vld [vmem:[%s1176_s3 + $0x298] sm:$0xff]  ;;  %v271_v55 = vld [vmem:[%s1176_s3 + $0x88] sm:$0xff]  ;;  %v655_v57 = vpack.c.bf16 %v332_v50, %v330_v49  ;;  %v591_v58 = vpack.c.bf16 %v268_v52, %v266_v48  ;;  %v270_v60 = vld [vmem:[%s1176_s3 + $0x80] sm:$0xff] }
   0xf   :  { %v273_v56 = vld [vmem:[%s1176_s3 + $0x98] sm:$0xff]  ;;  %v657_v59 = vpack.c.bf16 %v337_v54, %v335_v53  ;;  %v334_v61 = vld [vmem:[%s1176_s3 + $0x280] sm:$0xff]  ;;  %v336_v62 = vld [vmem:[%s1176_s3 + $0x290] sm:$0xff]  ;;  %v387_v53 = vlaneseq }
  0x10   :  { %652 = vmatpush1.bf16.msra.mxu1 %v651_v44  ;;  %v593_v63 = vpack.c.bf16 %v273_v56, %v271_v55  ;;  %v272_v0 = vld [vmem:[%s1176_s3 + $0x90] sm:$0xff]  ;;  %v339_v1 = vld [vmem:[%s1176_s3 + $0x2a8] sm:$0xff]  ;;  %v341_v2 = vld [vmem:[%s1176_s3 + $0x2b8] sm:$0xff]  ;;  %v659_v5 = vpack.c.bf16 %v336_v62, %v334_v61 }
  0x11   :  { %588 = vmatpush1.bf16.msra.mxu0 %v587_v46  ;;  %654 = vmatprep.subr.bf16.mxu1 %v653_v47  ;;  %v275_v3 = vld [vmem:[%s1176_s3 + $0xa8] sm:$0xff]  ;;  %v277_v4 = vld [vmem:[%s1176_s3 + $0xb8] sm:$0xff]  ;;  %v595_v6 = vpack.c.bf16 %v272_v0, %v270_v60  ;;  %v661_v7 = vpack.c.bf16 %v341_v2, %v339_v1  ;;  %v274_v8 = vld [vmem:[%s1176_s3 + $0xa0] sm:$0xff] }
  0x12   :  { %590 = vmatprep.subr.bf16.mxu0 %v589_v51  ;;  %v338_v9 = vld [vmem:[%s1176_s3 + $0x2a0] sm:$0xff]  ;;  %v340_v10 = vld [vmem:[%s1176_s3 + $0x2b0] sm:$0xff]  ;;  %v597_v11 = vpack.c.bf16 %v277_v4, %v275_v3  ;;  %v343_v13 = vld [vmem:[%s1176_s3 + $0x2c8] sm:$0xff]  ;;  %v713_v51 = vmov 1983009808   ;;  %v388_v3 = vshrl.u32 %v387_v53, 7 }
  0x13   :  { %v276_v12 = vld [vmem:[%s1176_s3 + $0xb0] sm:$0xff]  ;;  %v345_v14 = vld [vmem:[%s1176_s3 + $0x2d8] sm:$0xff]  ;;  %v279_v15 = vld [vmem:[%s1176_s3 + $0xc8] sm:$0xff]  ;;  %v663_v17 = vpack.c.bf16 %v340_v10, %v338_v9  ;;  %v385_v52 = vunpack.c.l.s4 %v713_v51 }
  0x14   :  { %656 = vmatpush1.bf16.msra.mxu1 %v655_v57  ;;  %v281_v16 = vld [vmem:[%s1176_s3 + $0xd8] sm:$0xff]  ;;  %v599_v18 = vpack.c.bf16 %v276_v12, %v274_v8  ;;  %v665_v19 = vpack.c.bf16 %v345_v14, %v343_v13  ;;  %v278_v20 = vld [vmem:[%s1176_s3 + $0xc0] sm:$0xff]  ;;  %v344_v22 = vld [vmem:[%s1176_s3 + $0x2d0] sm:$0xff] }
  0x15   :  { %592 = vmatpush1.bf16.msra.mxu0 %v591_v58  ;;  %658 = vmatprep.subr.bf16.mxu1 %v657_v59  ;;  %v342_v21 = vld [vmem:[%s1176_s3 + $0x2c0] sm:$0xff]  ;;  %v601_v23 = vpack.c.bf16 %v281_v16, %v279_v15  ;;  %v280_v24 = vld [vmem:[%s1176_s3 + $0xd0] sm:$0xff]  ;;  %v347_v25 = vld [vmem:[%s1176_s3 + $0x2e8] sm:$0xff]  ;;  %v386_v2 = vunpack.c.0.s8 %v385_v52 }
  0x16   :  { %594 = vmatprep.subr.bf16.mxu0 %v593_v63  ;;  %v349_v26 = vld [vmem:[%s1176_s3 + $0x2f8] sm:$0xff]  ;;  %v283_v27 = vld [vmem:[%s1176_s3 + $0xe8] sm:$0xff]  ;;  %v667_v29 = vpack.c.bf16 %v344_v22, %v342_v21  ;;  %v603_v30 = vpack.c.bf16 %v280_v24, %v278_v20  ;;  %v282_v32 = vld [vmem:[%s1176_s3 + $0xe0] sm:$0xff] }
  0x17   :  { %v285_v28 = vld [vmem:[%s1176_s3 + $0xf8] sm:$0xff]  ;;  %v669_v31 = vpack.c.bf16 %v349_v26, %v347_v25  ;;  %v346_v33 = vld [vmem:[%s1176_s3 + $0x2e0] sm:$0xff]  ;;  %v348_v34 = vld [vmem:[%s1176_s3 + $0x2f0] sm:$0xff]  ;;  %v389_v16 = vsub.s32 %v386_v2, %v388_v3 }
  0x18   :  { %660 = vmatpush1.bf16.msra.mxu1 %v659_v5  ;;  %v605_v35 = vpack.c.bf16 %v285_v28, %v283_v27  ;;  %v284_v36 = vld [vmem:[%s1176_s3 + $0xf0] sm:$0xff]  ;;  %v351_v37 = vld [vmem:[%s1176_s3 + $0x308] sm:$0xff]  ;;  %v353_v38 = vld [vmem:[%s1176_s3 + $0x318] sm:$0xff]  ;;  %v671_v41 = vpack.c.bf16 %v348_v34, %v346_v33 }
  0x19   :  { %596 = vmatpush1.bf16.msra.mxu0 %v595_v6  ;;  %662 = vmatprep.subr.bf16.mxu1 %v661_v7  ;;  %v287_v39 = vld [vmem:[%s1176_s3 + $0x108] sm:$0xff]  ;;  %v289_v40 = vld [vmem:[%s1176_s3 + $0x118] sm:$0xff]  ;;  %v607_v42 = vpack.c.bf16 %v284_v36, %v282_v32  ;;  %v673_v43 = vpack.c.bf16 %v353_v38, %v351_v37  ;;  %v286_v44 = vld [vmem:[%s1176_s3 + $0x100] sm:$0xff] }
  0x1a   :  { %598 = vmatprep.subr.bf16.mxu0 %v597_v11  ;;  %v350_v45 = vld [vmem:[%s1176_s3 + $0x300] sm:$0xff]  ;;  %v352_v46 = vld [vmem:[%s1176_s3 + $0x310] sm:$0xff]  ;;  %v609_v47 = vpack.c.bf16 %v289_v40, %v287_v39  ;;  %v355_v49 = vld [vmem:[%s1176_s3 + $0x328] sm:$0xff] }
  0x1b   :  { %v288_v48 = vld [vmem:[%s1176_s3 + $0x110] sm:$0xff]  ;;  %v357_v50 = vld [vmem:[%s1176_s3 + $0x338] sm:$0xff]  ;;  %v291_v54 = vld [vmem:[%s1176_s3 + $0x128] sm:$0xff]  ;;  %v675_v56 = vpack.c.bf16 %v352_v46, %v350_v45 }
  0x1c   :  { %664 = vmatpush1.bf16.msra.mxu1 %v663_v17  ;;  %v293_v55 = vld [vmem:[%s1176_s3 + $0x138] sm:$0xff]  ;;  %v611_v57 = vpack.c.bf16 %v288_v48, %v286_v44  ;;  %v677_v58 = vpack.c.bf16 %v357_v50, %v355_v49  ;;  %v290_v59 = vld [vmem:[%s1176_s3 + $0x120] sm:$0xff]  ;;  %v356_v61 = vld [vmem:[%s1176_s3 + $0x330] sm:$0xff] }
  0x1d   :  { %600 = vmatpush1.bf16.msra.mxu0 %v599_v18  ;;  %666 = vmatprep.subr.bf16.mxu1 %v665_v19  ;;  %v354_v60 = vld [vmem:[%s1176_s3 + $0x320] sm:$0xff]  ;;  %v613_v62 = vpack.c.bf16 %v293_v55, %v291_v54  ;;  %v292_v63 = vld [vmem:[%s1176_s3 + $0x130] sm:$0xff]  ;;  %v359_v0 = vld [vmem:[%s1176_s3 + $0x348] sm:$0xff] }
  0x1e   :  { %602 = vmatprep.subr.bf16.mxu0 %v601_v23  ;;  %v361_v1 = vld [vmem:[%s1176_s3 + $0x358] sm:$0xff]  ;;  %v295_v4 = vld [vmem:[%s1176_s3 + $0x148] sm:$0xff]  ;;  %v679_v6 = vpack.c.bf16 %v356_v61, %v354_v60  ;;  %v615_v7 = vpack.c.bf16 %v292_v63, %v290_v59  ;;  %v294_v9 = vld [vmem:[%s1176_s3 + $0x140] sm:$0xff] }
  0x1f   :  { %v297_v5 = vld [vmem:[%s1176_s3 + $0x158] sm:$0xff]  ;;  %v681_v8 = vpack.c.bf16 %v361_v1, %v359_v0  ;;  %v358_v10 = vld [vmem:[%s1176_s3 + $0x340] sm:$0xff]  ;;  %v360_v11 = vld [vmem:[%s1176_s3 + $0x350] sm:$0xff] }
  0x20   :  { %668 = vmatpush1.bf16.msra.mxu1 %v667_v29  ;;  %v617_v12 = vpack.c.bf16 %v297_v5, %v295_v4  ;;  %v296_v13 = vld [vmem:[%s1176_s3 + $0x150] sm:$0xff]  ;;  %v363_v14 = vld [vmem:[%s1176_s3 + $0x368] sm:$0xff]  ;;  %v365_v15 = vld [vmem:[%s1176_s3 + $0x378] sm:$0xff]  ;;  %v683_v19 = vpack.c.bf16 %v360_v11, %v358_v10 }
  0x21   :  { %604 = vmatpush1.bf16.msra.mxu0 %v603_v30  ;;  %670 = vmatprep.subr.bf16.mxu1 %v669_v31  ;;  %v299_v17 = vld [vmem:[%s1176_s3 + $0x168] sm:$0xff]  ;;  %v301_v18 = vld [vmem:[%s1176_s3 + $0x178] sm:$0xff]  ;;  %v298_v20 = vld [vmem:[%s1176_s3 + $0x160] sm:$0xff]  ;;  %v619_v21 = vpack.c.bf16 %v296_v13, %v294_v9  ;;  %v685_v22 = vpack.c.bf16 %v365_v15, %v363_v14 }
  0x22   :  { %606 = vmatprep.subr.bf16.mxu0 %v605_v35  ;;  %v362_v23 = vld [vmem:[%s1176_s3 + $0x360] sm:$0xff]  ;;  %v364_v24 = vld [vmem:[%s1176_s3 + $0x370] sm:$0xff]  ;;  %v621_v26 = vpack.c.bf16 %v301_v18, %v299_v17  ;;  %v367_v28 = vld [vmem:[%s1176_s3 + $0x388] sm:$0xff] }
  0x23   :  { %v253_v25 = vld [vmem:[%s1177_s2] sm:$0xff]  ;;  %v300_v27 = vld [vmem:[%s1176_s3 + $0x170] sm:$0xff]  ;;  %v369_v29 = vld [vmem:[%s1176_s3 + $0x398] sm:$0xff]  ;;  %v687_v34 = vpack.c.bf16 %v364_v24, %v362_v23 }
  0x24   :  { %672 = vmatpush1.bf16.msra.mxu1 %v671_v41  ;;  %v1062_v30 = vrot.slane %v253_v25, %v389_v16  ;;  %v383_v31 = vcombine.high %v253_v25, %v253_v25  ;;  %v303_v32 = vld [vmem:[%s1176_s3 + $0x188] sm:$0xff]  ;;  %v305_v33 = vld [vmem:[%s1176_s3 + $0x198] sm:$0xff]  ;;  %v623_v37 = vpack.c.bf16 %v300_v27, %v298_v20  ;;  %v689_v38 = vpack.c.bf16 %v369_v29, %v367_v28  ;;  %v302_v39 = vld [vmem:[%s1176_s3 + $0x180] sm:$0xff] }
  0x25   :  { %608 = vmatpush1.bf16.msra.mxu0 %v607_v42  ;;  %674 = vmatprep.subr.bf16.mxu1 %v673_v43  ;;  %v366_v40 = vld [vmem:[%s1176_s3 + $0x380] sm:$0xff]  ;;  %v368_v41 = vld [vmem:[%s1176_s3 + $0x390] sm:$0xff]  ;;  %v625_v42 = vpack.c.bf16 %v305_v33, %v303_v32  ;;  %v371_v44 = vld [vmem:[%s1176_s3 + $0x3a8] sm:$0xff] }
  0x26   :  { %610 = vmatprep.subr.bf16.mxu0 %v609_v47  ;;  %v398_v35 = vcombine.high %v1062_v30, %v1062_v30  ;;  %v1072_v36 = vrot.slane %v383_v31, %v389_v16  ;;  %v304_v43 = vld [vmem:[%s1176_s3 + $0x190] sm:$0xff]  ;;  %v373_v45 = vld [vmem:[%s1176_s3 + $0x3b8] sm:$0xff]  ;;  %v307_v47 = vld [vmem:[%s1176_s3 + $0x1a8] sm:$0xff]  ;;  %v691_v49 = vpack.c.bf16 %v368_v41, %v366_v40 }
  0x27   :  { %v309_v48 = vld [vmem:[%s1176_s3 + $0x1b8] sm:$0xff]  ;;  %v627_v50 = vpack.c.bf16 %v304_v43, %v302_v39  ;;  %v693_v51 = vpack.c.bf16 %v373_v45, %v371_v44  ;;  %v306_v52 = vld [vmem:[%s1176_s3 + $0x1a0] sm:$0xff]  ;;  %v372_v54 = vld [vmem:[%s1176_s3 + $0x3b0] sm:$0xff] }
  0x28   :  { %676 = vmatpush1.bf16.msra.mxu1 %v675_v56  ;;  %468 = vmatprep.mubr.f32.mxu0 %v398_v35  ;;  %v399_v46 = vcombine.high %v1072_v36, %v1072_v36  ;;  %v370_v53 = vld [vmem:[%s1176_s3 + $0x3a0] sm:$0xff]  ;;  %v629_v55 = vpack.c.bf16 %v309_v48, %v307_v47  ;;  %v308_v56 = vld [vmem:[%s1176_s3 + $0x1b0] sm:$0xff]  ;;  %v311_v59 = vld [vmem:[%s1176_s3 + $0x1c8] sm:$0xff] }
  0x29   :  { %612 = vmatpush1.bf16.msra.mxu0 %v611_v57  ;;  %678 = vmatprep.subr.bf16.mxu1 %v677_v58  ;;  %v375_v57 = vld [vmem:[%s1176_s3 + $0x3c8] sm:$0xff]  ;;  %v377_v58 = vld [vmem:[%s1176_s3 + $0x3d8] sm:$0xff]  ;;  %v695_v61 = vpack.c.bf16 %v372_v54, %v370_v53  ;;  %v310_v0 = vld [vmem:[%s1176_s3 + $0x1c0] sm:$0xff] }
  0x2a   :  { %614 = vmatprep.subr.bf16.mxu0 %v613_v62  ;;  %539 = vmatprep.mubr.f32.mxu1 %v399_v46  ;;  %v313_v60 = vld [vmem:[%s1176_s3 + $0x1d8] sm:$0xff]  ;;  %v631_v62 = vpack.c.bf16 %v308_v56, %v306_v52  ;;  %v697_v63 = vpack.c.bf16 %v377_v58, %v375_v57  ;;  %v374_v1 = vld [vmem:[%s1176_s3 + $0x3c0] sm:$0xff]  ;;  %v376_v2 = vld [vmem:[%s1176_s3 + $0x3d0] sm:$0xff] }
  0x2b   :  { %v633_v3 = vpack.c.bf16 %v313_v60, %v311_v59  ;;  %v312_v4 = vld [vmem:[%s1176_s3 + $0x1d0] sm:$0xff]  ;;  %v379_v5 = vld [vmem:[%s1176_s3 + $0x3e8] sm:$0xff]  ;;  %v699_v9 = vpack.c.bf16 %v376_v2, %v374_v1  ;;  %v314_v15 = vld [vmem:[%s1176_s3 + $0x1e0] sm:$0xff] }
  0x2c   :  { %680 = vmatpush1.bf16.msra.mxu1 %v679_v6  ;;  %v381_v6 = vld [vmem:[%s1176_s3 + $0x3f8] sm:$0xff]  ;;  %v635_v10 = vpack.c.bf16 %v312_v4, %v310_v0  ;;  %v380_v13 = vld [vmem:[%s1176_s3 + $0x3f0] sm:$0xff] }
  0x2d   :  { %616 = vmatpush1.bf16.msra.mxu0 %v615_v7  ;;  %682 = vmatprep.subr.bf16.mxu1 %v681_v8  ;;  %v315_v7 = vld [vmem:[%s1176_s3 + $0x1e8] sm:$0xff]  ;;  %v317_v8 = vld [vmem:[%s1176_s3 + $0x1f8] sm:$0xff]  ;;  %v701_v11 = vpack.c.bf16 %v381_v6, %v379_v5  ;;  %v316_v16 = vld [vmem:[%s1176_s3 + $0x1f0] sm:$0xff] }
  0x2e   :  { %618 = vmatprep.subr.bf16.mxu0 %v617_v12  ;;  %v378_v12 = vld [vmem:[%s1176_s3 + $0x3e0] sm:$0xff]  ;;  %v637_v14 = vpack.c.bf16 %v317_v8, %v315_v7  ;;  %v639_v18 = vpack.c.bf16 %v316_v16, %v314_v15 }
  0x2f   :  { %v703_v17 = vpack.c.bf16 %v380_v13, %v378_v12 }
  0x30   :  { %684 = vmatpush1.bf16.msra.mxu1 %v683_v19 }
  0x31   :  { %620 = vmatpush1.bf16.msra.mxu0 %v619_v21  ;;  %686 = vmatprep.subr.bf16.mxu1 %v685_v22 }
  0x32   :  { %622 = vmatprep.subr.bf16.mxu0 %v621_v26 }
  0x34   :  { %688 = vmatpush1.bf16.msra.mxu1 %v687_v34 }
  0x35   :  { %624 = vmatpush1.bf16.msra.mxu0 %v623_v37  ;;  %690 = vmatprep.subr.bf16.mxu1 %v689_v38 }
  0x36   :  { %626 = vmatprep.subr.bf16.mxu0 %v625_v42 }
  0x38   :  { %692 = vmatpush1.bf16.msra.mxu1 %v691_v49 }
  0x39   :  { %628 = vmatpush1.bf16.msra.mxu0 %v627_v50  ;;  %694 = vmatprep.subr.bf16.mxu1 %v693_v51 }
  0x3a   :  { %630 = vmatprep.subr.bf16.mxu0 %v629_v55 }
  0x3c   :  { %696 = vmatpush1.bf16.msra.mxu1 %v695_v61 }
  0x3d   :  { %632 = vmatpush1.bf16.msra.mxu0 %v631_v62  ;;  %698 = vmatprep.subr.bf16.mxu1 %v697_v63 }
  0x3e   :  { %634 = vmatprep.subr.bf16.mxu0 %v633_v3 }
  0x40   :  { %700 = vmatpush1.bf16.msra.mxu1 %v699_v9 }
  0x41   :  { %636 = vmatpush1.bf16.msra.mxu0 %v635_v10  ;;  %702 = vmatprep.subr.bf16.mxu1 %v701_v11 }
  0x42   :  { %638 = vmatprep.subr.bf16.mxu0 %v637_v14 }
  0x44   :  { %704 = vmatpush1.bf16.msra.mxu1 %v703_v17 }
  0x45   :  { %640 = vmatpush1.bf16.msra.mxu0 %v639_v18 }
  0x47   :  { %540 = vmatmul.mubr.f32.vlgmr.msra.gmra.mrb[2].mxu1 %v1072_v36 }
  0x48   :  { %469 = vmatmul.mubr.f32.vlgmr.msra.gmra.mrb[4].mxu0 %v1062_v30 }
  0xd7   :  { %v95_v19 = vpop.f32.mrb[0].mxu0 }
  0xd8   :  { %v97_v20 = vpop.f32.mrb[1].mxu0 }
  0xd9   :  { %v245_v21 = vcombine.low %v95_v19, %v97_v20  ;;  %v166_v22 = vpop.f32.mrb[0].mxu1 }
  0xda   :  { %v168_v24 = vpop.f32.mrb[1].mxu1 }
  0xdb   :  { %249 = vst [vmem:[%s1178_s4] sm:$0xff] %v245_v21  ;;  %v237_v23 = vpop.f32.mrb[2].mxu0  ;;  %v246_v25 = vcombine.low %v166_v22, %v168_v24 }
  0xdc   :  { %252 = vst.msk [vmem:[%s1178_s4 + $0x10] sm:$0xf] %vm251_vm2, %v237_v23  ;;  %v576_v26 = vpop.f32.mrb[3].mxu0 }
  0xdd   :  { %250 = vst [vmem:[%s1178_s4 + $0x8] sm:$0xff] %v246_v25 }
 0x11a   :  { %v541_v27 = vpop.f32.mrb[2].mxu1 }
 0x11b   :  { %v470_v28 = vpop.f32.mrb[4].mxu0  ;;  %v543_v29 = vpop.f32.mrb[3].mxu1 }
 0x11c   :  { %v542_v30 = vadd.f32 %v541_v27, %v470_v28  ;;  %v472_v31 = vpop.f32.mrb[5].mxu0 }
 0x11d   :  { %v544_v32 = vadd.f32 %v543_v29, %v472_v31 }
 0x11f   :  { %v548_v33 = vcombine.low %v542_v30, %v544_v32 }
 0x121   :  { %569 = vst.sshfl [vmem:[%s1179_s5] sm:$0x33 pattern:$0x76325410] %v548_v33 }

</bundles_post_ra>
